<compile_context>
chip_gen: v6e
topology: v6e:2x2x1
jax: 0.10.0
libtpu: 0.0.40
codegen_flags: <defaults>
</compile_context>

<pallas_src>
import functools

import jax
import jax.numpy as jnp
from jax import lax
from jax.experimental import pallas as pl
from jax.experimental.pallas import tpu as pltpu


def _layernorm(x, gamma, beta, eps=1e-5):
    # PyTorch nn.LayerNorm: biased variance, eps inside sqrt. Pure f32.
    mu = jnp.mean(x, axis=-1, keepdims=True)
    var = jnp.mean((x - mu) ** 2, axis=-1, keepdims=True)
    return (x - mu) * lax.rsqrt(var + eps) * gamma + beta


def _encoder_block_kernel(n_heads, fuse_wo,
                          q_ref, k_ref, v_ref,
                          wq_ref, bq_ref, wk_ref, bk_ref, wv_ref, bv_ref,
                          wo_ref, bo_ref,
                          g1_ref, b1n_ref,
                          w1_ref, bf1_ref, w2_ref, bf2_ref,
                          g2_ref, b2n_ref,
                          o_ref,
                          kp_sc, vp_sc, *ctx_scratch):
    sq = pl.program_id(1)            # seq-tile index (inner, "arbitrary" axis)

    q = q_ref[...]                   # (TQ, E) f32 — this Q tile
    TQ, E = q.shape
    head_dim = E // n_heads
    scale = 1.0 / (head_dim ** 0.5)
    bf16 = jnp.bfloat16
    f32 = jnp.float32

    # --- K/V projections: once per batch, cached in bf16 VMEM scratch -------
    @pl.when(sq == 0)
    def _():
        k_bf = k_ref[...].astype(bf16)                       # (S, E) bf16
        v_bf = v_ref[...].astype(bf16)
        kp_sc[...] = (jnp.dot(k_bf, wk_ref[...], preferred_element_type=f32)
                      + bk_ref[...]).astype(bf16)
        vp_sc[...] = (jnp.dot(v_bf, wv_ref[...], preferred_element_type=f32)
                      + bv_ref[...]).astype(bf16)

    # --- Q projection for this tile (scale hoisted out of the head loop) ----
    qp = jnp.dot(q.astype(bf16), wq_ref[...],
                 preferred_element_type=f32) + bq_ref[...]   # (TQ, E) f32
    qp = qp * scale
    kp = kp_sc[...]                                          # (S, E) bf16
    vp = vp_sc[...]

    # --- Multi-head attention: 2-D bf16 matmuls, f32 softmax ----------------
    # concat_h(ctx_h) @ Wo  ==  sum_h ctx_h @ Wo[h*Dh:(h+1)*Dh, :]
    # TODO(synk): switch the static head loop to lax.fori_loop (pl.ds slices)
    # if bundle dumps show vreg spills at n_heads >= 8.
    # TODO(synk): flash-style KV tiling (emit_pipeline over S chunks) for
    # sequences where the resident (S, E) K/V + projections exceed VMEM.
    attn_out = jnp.zeros((TQ, E), f32)
    if fuse_wo:
        (ctx_sc,) = ctx_scratch                              # (TQ, E) bf16
    for h in range(n_heads):                                 # static unroll
        s0 = h * head_dim
        qh = qp[:, s0:s0 + head_dim].astype(bf16)            # (TQ, Dh)
        kh = kp[:, s0:s0 + head_dim]                         # (S,  Dh) bf16
        vh = vp[:, s0:s0 + head_dim]                         # (S,  Dh) bf16
        # qh @ kh^T without an explicit transpose: contract dim 1 of both.
        scores = lax.dot_general(qh, kh, (((1,), (1,)), ((), ())),
                                 preferred_element_type=f32)  # (TQ, S) f32
        m = jnp.max(scores, axis=-1, keepdims=True)
        p = jnp.exp(scores - m)                               # <= 1, bf16-safe
        denom = jnp.sum(p, axis=-1, keepdims=True)
        # Normalize AFTER the PV matmul: (TQ, Dh) multiply instead of (TQ, S).
        ctx = jnp.dot(p.astype(bf16), vh,
                      preferred_element_type=f32)             # (TQ, Dh) f32
        ctx = ctx * pl.reciprocal(denom, approx=True)
        if fuse_wo:
            # Lane-aligned column write (Dh % 128 == 0); Wo applied once below.
            ctx_sc[:, s0:s0 + head_dim] = ctx.astype(bf16)
        else:
            attn_out = attn_out + jnp.dot(
                ctx.astype(bf16), wo_ref[s0:s0 + head_dim, :],
                preferred_element_type=f32)                   # (TQ, E) f32
    if fuse_wo:
        # One full-depth (TQ,E)@(E,E) MXU matmul for the output projection.
        attn_out = jnp.dot(ctx_sc[...], wo_ref[...],
                           preferred_element_type=f32)
    attn_out = attn_out + bo_ref[...]

    # --- Residual + LayerNorm1 (Dropout == identity in eval) ----------------
    int_res = _layernorm(attn_out + q, g1_ref[...], b1n_ref[...])

    # --- FeedForward: Linear -> ReLU -> Linear (tiled over TQ rows) ----------
    h1 = jnp.dot(int_res.astype(bf16), w1_ref[...],
                 preferred_element_type=f32) + bf1_ref[...]
    h1 = jnp.maximum(h1, 0.0)
    ff = jnp.dot(h1.astype(bf16), w2_ref[...],
                 preferred_element_type=f32) + bf2_ref[...]

    # --- Residual + LayerNorm2 -----------------------------------------------
    out = _layernorm(ff + int_res, g2_ref[...], b2n_ref[...])
    o_ref[...] = out.astype(o_ref.dtype)


def _default_tq():
    # v5e: 4x128x128 MXU + single vst slot -> TQ=128. v6e/v7x: 256.
    try:
        kind = jax.devices()[0].device_kind.lower()
    except Exception:
        return 256
    return 128 if "v5" in kind else 256


def _physical_vmem_bytes():
    try:
        info = pltpu.get_tpu_info()
        return int(getattr(info, "vmem_capacity_bytes", 64 * 1024 * 1024))
    except Exception:
        return 64 * 1024 * 1024     # conservative (v7x per-TC)


def encoder_block(Q, K, V, params, n_heads, *, tq=None, vmem_limit_bytes=None,
                  single_buffer_invariants=True):
    """params: dict from init_params (bf16 weights, f32 biases/LN).

    Q: (B, S, E) float32 (kept f32 for the residual path).
    K, V: (B, S, E) float32 or bfloat16 (cast to bf16 at the boundary;
          ideally the caller passes bf16 so the cast fuses upstream).
    tq: Q-row tile; must divide S. Defaults to 128 on v5*, 256 otherwise.
    """
    B, S, E = Q.shape
    Eexp = params["w1"].shape[1]
    assert E % n_heads == 0
    head_dim = E // n_heads
    if tq is None:
        tq = _default_tq()
    tq = min(tq, S)
    assert S % tq == 0, "sequence length must be divisible by the Q tile"
    n_sq = S // tq
    fuse_wo = (head_dim % 128 == 0)

    # K/V are only used as bf16 MXU operands inside the kernel.
    Kb = K.astype(jnp.bfloat16)
    Vb = V.astype(jnp.bfloat16)

    weight_list = [
        params["wq"], params["bq"], params["wk"], params["bk"],
        params["wv"], params["bv"], params["wo"], params["bo"],
        params["g1"], params["b1n"],
        params["w1"], params["bf1"], params["w2"], params["bf2"],
        params["g2"], params["b2n"],
    ]

    # --- VMEM budget (rough) + limit clamped to ~90% of physical ------------
    if vmem_limit_bytes is None:
        w_bytes = sum(w.size * w.dtype.itemsize for w in weight_list)
        kv_block = 2 * S * E * 2                      # bf16 K + V blocks
        qo_tiles = 2 * (2 * tq * E * 4)               # dbuf Q in + out (f32)
        scratch_b = 2 * S * E * 2 + (tq * E * 2 if fuse_wo else 0)
        act = 2 * tq * S * 4 + tq * Eexp * 4          # scores/p + FFN hidden
        mult = 1 if single_buffer_invariants else 2
        need = mult * (w_bytes + kv_block) + qo_tiles + scratch_b + act \
            + (8 << 20)                               # compiler headroom
        vmem_limit_bytes = int(min(max(need, 32 << 20),
                                   0.9 * _physical_vmem_bytes()))

    # Advisory cost estimate for the XLA scheduler.
    flops = int(B * (8 * S * E * E + 4 * S * S * E + 4 * S * E * Eexp))
    transcendentals = int(B * n_heads * S * S)
    bytes_accessed = int(B * S * E * (4 + 2 + 2 + 4)
                         + sum(w.size * w.dtype.itemsize for w in weight_list))

    kernel = functools.partial(_encoder_block_kernel, n_heads, fuse_wo)

    def build(buffered_invariants):
        # Grid-invariant blocks (weights; K/V only change with the batch):
        # single-buffer them to halve their VMEM footprint.
        def inv(shape, index_map):
            if buffered_invariants:
                return pl.BlockSpec(shape, index_map,
                                    pipeline_mode=pl.Buffered(1))
            return pl.BlockSpec(shape, index_map)

        qo_spec = pl.BlockSpec((None, tq, E), lambda b, s: (b, s, 0))
        kv_spec = inv((None, S, E), lambda b, s: (b, 0, 0))
        weight_specs = [inv(w.shape, lambda b, s: (0, 0)) for w in weight_list]

        scratch = [pltpu.VMEM((S, E), jnp.bfloat16),   # cached K projection
                   pltpu.VMEM((S, E), jnp.bfloat16)]   # cached V projection
        if fuse_wo:
            scratch.append(pltpu.VMEM((tq, E), jnp.bfloat16))  # concat ctx

        return pl.pallas_call(
            kernel,
            out_shape=jax.ShapeDtypeStruct((B, S, E), jnp.float32),
            grid_spec=pltpu.PrefetchScalarGridSpec(
                num_scalar_prefetch=0,
                grid=(B, n_sq),
                in_specs=[qo_spec, kv_spec, kv_spec] + weight_specs,
                out_specs=pl.BlockSpec((None, tq, E), lambda b, s: (b, s, 0)),
                scratch_shapes=scratch,
            ),
            compiler_params=pltpu.CompilerParams(
                # seq-tile axis is "arbitrary" so the per-batch K/V projection
                # cache (written at sq == 0) is valid for the following tiles.
                # TODO(synk): for B == 1 on v7x, hoist the K/V projections out
                # of the kernel and mark the seq axis "parallel" (2nd TC).
                dimension_semantics=("parallel", "arbitrary"),
                vmem_limit_bytes=vmem_limit_bytes),
            cost_estimate=pl.CostEstimate(flops=flops,
                                          transcendentals=transcendentals,
                                          bytes_accessed=bytes_accessed),
        )

    if single_buffer_invariants:
        try:
            return build(True)(Q, Kb, Vb, *weight_list)
        except Exception:
            # Older/newer JAX may reject Buffered(1); fall back to the
            # default double-buffered specs (correct, just more VMEM).
            pass
    return build(False)(Q, Kb, Vb, *weight_list)


def init_params(key, size_embed, n_heads, expansion):
    E = size_embed
    Eexp = E * expansion
    ks = jax.random.split(key, 6)
    scale = 0.02
    f32 = jnp.float32

    def mat(k, shape):
        # Weights stored bf16 (MXU inputs); biases / LayerNorm params in f32.
        return (scale * jax.random.normal(k, shape, dtype=f32)).astype(jnp.bfloat16)

    return {
        # attention projections (in, out) + biases (1, out)
        "wq": mat(ks[0], (E, E)), "bq": jnp.zeros((1, E), f32),
        "wk": mat(ks[1], (E, E)), "bk": jnp.zeros((1, E), f32),
        "wv": mat(ks[2], (E, E)), "bv": jnp.zeros((1, E), f32),
        "wo": mat(ks[3], (E, E)), "bo": jnp.zeros((1, E), f32),
        # LayerNorm1
        "g1": jnp.ones((1, E), f32), "b1n": jnp.zeros((1, E), f32),
        # FeedForward
        "w1": mat(ks[4], (E, Eexp)), "bf1": jnp.zeros((1, Eexp), f32),
        "w2": mat(ks[5], (Eexp, E)), "bf2": jnp.zeros((1, E), f32),
        # LayerNorm2
        "g2": jnp.ones((1, E), f32), "b2n": jnp.zeros((1, E), f32),
    }


if __name__ == "__main__":
    # Small shapes consistent with the module: batch=2, seq=8, size_embed=32,
    # n_heads=4, expansion=4 (dropout_p irrelevant in eval mode).
    B, S, E = 2, 8, 32
    n_heads, expansion = 4, 4

    key = jax.random.PRNGKey(0)
    kq, kk, kv, kp = jax.random.split(key, 4)
    Q = jax.random.normal(kq, (B, S, E), dtype=jnp.float32)
    K = jax.random.normal(kk, (B, S, E), dtype=jnp.float32)
    V = jax.random.normal(kv, (B, S, E), dtype=jnp.float32)
    params = init_params(kp, E, n_heads, expansion)

    out = encoder_block(Q, K, V, params, n_heads)
    jax.block_until_ready(out)
    assert out.shape == (B, S, E)
    assert bool(jnp.all(jnp.isfinite(out)))
    print("KERNEL_OK")
</pallas_src>

<mosaic_0001>
module attributes {stable_mosaic.version = 11 : i64} {
  func.func @_encoder_block_kernel(%arg0: i32, %arg1: i32, %arg2: memref<1x8x32xf32, #tpu.memory_space<vmem>>, %arg3: memref<1x8x32xbf16, #tpu.memory_space<vmem>>, %arg4: memref<1x8x32xbf16, #tpu.memory_space<vmem>>, %arg5: memref<32x32xbf16, #tpu.memory_space<vmem>>, %arg6: memref<1x32xf32, #tpu.memory_space<vmem>>, %arg7: memref<32x32xbf16, #tpu.memory_space<vmem>>, %arg8: memref<1x32xf32, #tpu.memory_space<vmem>>, %arg9: memref<32x32xbf16, #tpu.memory_space<vmem>>, %arg10: memref<1x32xf32, #tpu.memory_space<vmem>>, %arg11: memref<32x32xbf16, #tpu.memory_space<vmem>>, %arg12: memref<1x32xf32, #tpu.memory_space<vmem>>, %arg13: memref<1x32xf32, #tpu.memory_space<vmem>>, %arg14: memref<1x32xf32, #tpu.memory_space<vmem>>, %arg15: memref<32x128xbf16, #tpu.memory_space<vmem>>, %arg16: memref<1x128xf32, #tpu.memory_space<vmem>>, %arg17: memref<128x32xbf16, #tpu.memory_space<vmem>>, %arg18: memref<1x32xf32, #tpu.memory_space<vmem>>, %arg19: memref<1x32xf32, #tpu.memory_space<vmem>>, %arg20: memref<1x32xf32, #tpu.memory_space<vmem>>, %arg21: memref<1x8x32xf32, #tpu.memory_space<vmem>>, %arg22: memref<8x32xbf16, #tpu.memory_space<vmem>>, %arg23: memref<8x32xbf16, #tpu.memory_space<vmem>>) attributes {dimension_semantics = [#tpu.dimension_semantics<parallel>, #tpu.dimension_semantics<arbitrary>], iteration_bounds = array<i64: 2, 1>, scalar_prefetch = 0 : i64, scratch_operands = 2 : i64, tpu.core_type = #tpu.core_type<tc>, window_params = [{transform_indices = @transform_0, window_bounds = array<i64: 1, 8, 32>}, {pipeline_mode = #tpu.pipeline_mode<synchronous>, transform_indices = @transform_1, window_bounds = array<i64: 1, 8, 32>}, {pipeline_mode = #tpu.pipeline_mode<synchronous>, transform_indices = @transform_2, window_bounds = array<i64: 1, 8, 32>}, {pipeline_mode = #tpu.pipeline_mode<synchronous>, transform_indices = @transform_3, window_bounds = array<i64: 32, 32>}, {pipeline_mode = #tpu.pipeline_mode<synchronous>, transform_indices = @transform_4, window_bounds = array<i64: 1, 32>}, {pipeline_mode = #tpu.pipeline_mode<synchronous>, transform_indices = @transform_5, window_bounds = array<i64: 32, 32>}, {pipeline_mode = #tpu.pipeline_mode<synchronous>, transform_indices = @transform_6, window_bounds = array<i64: 1, 32>}, {pipeline_mode = #tpu.pipeline_mode<synchronous>, transform_indices = @transform_7, window_bounds = array<i64: 32, 32>}, {pipeline_mode = #tpu.pipeline_mode<synchronous>, transform_indices = @transform_8, window_bounds = array<i64: 1, 32>}, {pipeline_mode = #tpu.pipeline_mode<synchronous>, transform_indices = @transform_9, window_bounds = array<i64: 32, 32>}, {pipeline_mode = #tpu.pipeline_mode<synchronous>, transform_indices = @transform_10, window_bounds = array<i64: 1, 32>}, {pipeline_mode = #tpu.pipeline_mode<synchronous>, transform_indices = @transform_11, window_bounds = array<i64: 1, 32>}, {pipeline_mode = #tpu.pipeline_mode<synchronous>, transform_indices = @transform_12, window_bounds = array<i64: 1, 32>}, {pipeline_mode = #tpu.pipeline_mode<synchronous>, transform_indices = @transform_13, window_bounds = array<i64: 32, 128>}, {pipeline_mode = #tpu.pipeline_mode<synchronous>, transform_indices = @transform_14, window_bounds = array<i64: 1, 128>}, {pipeline_mode = #tpu.pipeline_mode<synchronous>, transform_indices = @transform_15, window_bounds = array<i64: 128, 32>}, {pipeline_mode = #tpu.pipeline_mode<synchronous>, transform_indices = @transform_16, window_bounds = array<i64: 1, 32>}, {pipeline_mode = #tpu.pipeline_mode<synchronous>, transform_indices = @transform_17, window_bounds = array<i64: 1, 32>}, {pipeline_mode = #tpu.pipeline_mode<synchronous>, transform_indices = @transform_18, window_bounds = array<i64: 1, 32>}, {transform_indices = @transform_19, window_bounds = array<i64: 1, 8, 32>}]} {
    %c0 = arith.constant 0 : index
    %c0_0 = arith.constant 0 : index
    %c0_1 = arith.constant 0 : index
    %0 = vector.load %arg2[%c0, %c0_0, %c0_1] : memref<1x8x32xf32, #tpu.memory_space<vmem>>, vector<1x8x32xf32>
    %1 = vector.shape_cast %0 : vector<1x8x32xf32> to vector<8x32xf32>
    %c0_i32 = arith.constant 0 : i32
    %2 = arith.cmpi eq, %arg1, %c0_i32 : i32
    %3 = arith.extui %2 : i1 to i32
    %c0_i32_2 = arith.constant 0 : i32
    %4 = arith.cmpi ne, %3, %c0_i32_2 : i32
    scf.if %4 {
      %c0_72 = arith.constant 0 : index
      %c0_73 = arith.constant 0 : index
      %c0_74 = arith.constant 0 : index
      %170 = vector.load %arg3[%c0_72, %c0_73, %c0_74] : memref<1x8x32xbf16, #tpu.memory_space<vmem>>, vector<1x8x32xbf16>
      %171 = vector.shape_cast %170 : vector<1x8x32xbf16> to vector<8x32xbf16>
      %c0_75 = arith.constant 0 : index
      %c0_76 = arith.constant 0 : index
      %c0_77 = arith.constant 0 : index
      %172 = vector.load %arg4[%c0_75, %c0_76, %c0_77] : memref<1x8x32xbf16, #tpu.memory_space<vmem>>, vector<1x8x32xbf16>
      %173 = vector.shape_cast %172 : vector<1x8x32xbf16> to vector<8x32xbf16>
      %c0_78 = arith.constant 0 : index
      %c0_79 = arith.constant 0 : index
      %174 = vector.load %arg7[%c0_78, %c0_79] : memref<32x32xbf16, #tpu.memory_space<vmem>>, vector<32x32xbf16>
      %cst_80 = arith.constant dense<0.000000e+00> : vector<8x32xf32>
      %175 = tpu.matmul %171, %174, %cst_80 {dimension_numbers = #tpu.dot_dimension_numbers<[1], [0], [0], [1], [0, 0, 1, 1], [], []>} : vector<8x32xbf16>, vector<32x32xbf16>, vector<8x32xf32> -> vector<8x32xf32>
      %c0_81 = arith.constant 0 : index
      %c0_82 = arith.constant 0 : index
      %176 = vector.load %arg8[%c0_81, %c0_82] : memref<1x32xf32, #tpu.memory_space<vmem>>, vector<1x32xf32>
      %177 = vector.broadcast %176 : vector<1x32xf32> to vector<8x32xf32>
      %178 = arith.addf %175, %177 : vector<8x32xf32>
      %179 = arith.truncf %178 : vector<8x32xf32> to vector<8x32xbf16>
      %c0_83 = arith.constant 0 : index
      %c0_84 = arith.constant 0 : index
      %180 = vector.load %arg22[%c0_83, %c0_84] : memref<8x32xbf16, #tpu.memory_space<vmem>>, vector<8x32xbf16>
      tpu.vector_store %arg22[%c0_83, %c0_84], %179 {strides = array<i32>} : memref<8x32xbf16, #tpu.memory_space<vmem>>, vector<8x32xbf16>,
      %c0_85 = arith.constant 0 : index
      %c0_86 = arith.constant 0 : index
      %181 = vector.load %arg9[%c0_85, %c0_86] : memref<32x32xbf16, #tpu.memory_space<vmem>>, vector<32x32xbf16>
      %cst_87 = arith.constant dense<0.000000e+00> : vector<8x32xf32>
      %182 = tpu.matmul %173, %181, %cst_87 {dimension_numbers = #tpu.dot_dimension_numbers<[1], [0], [0], [1], [0, 0, 1, 1], [], []>} : vector<8x32xbf16>, vector<32x32xbf16>, vector<8x32xf32> -> vector<8x32xf32>
      %c0_88 = arith.constant 0 : index
      %c0_89 = arith.constant 0 : index
      %183 = vector.load %arg10[%c0_88, %c0_89] : memref<1x32xf32, #tpu.memory_space<vmem>>, vector<1x32xf32>
      %184 = vector.broadcast %183 : vector<1x32xf32> to vector<8x32xf32>
      %185 = arith.addf %182, %184 : vector<8x32xf32>
      %186 = arith.truncf %185 : vector<8x32xf32> to vector<8x32xbf16>
      %c0_90 = arith.constant 0 : index
      %c0_91 = arith.constant 0 : index
      %187 = vector.load %arg23[%c0_90, %c0_91] : memref<8x32xbf16, #tpu.memory_space<vmem>>, vector<8x32xbf16>
      tpu.vector_store %arg23[%c0_90, %c0_91], %186 {strides = array<i32>} : memref<8x32xbf16, #tpu.memory_space<vmem>>, vector<8x32xbf16>,
    } else {
    }
    %5 = arith.truncf %1 : vector<8x32xf32> to vector<8x32xbf16>
    %c0_3 = arith.constant 0 : index
    %c0_4 = arith.constant 0 : index
    %6 = vector.load %arg5[%c0_3, %c0_4] : memref<32x32xbf16, #tpu.memory_space<vmem>>, vector<32x32xbf16>
    %cst = arith.constant dense<0.000000e+00> : vector<8x32xf32>
    %7 = tpu.matmul %5, %6, %cst {dimension_numbers = #tpu.dot_dimension_numbers<[1], [0], [0], [1], [0, 0, 1, 1], [], []>} : vector<8x32xbf16>, vector<32x32xbf16>, vector<8x32xf32> -> vector<8x32xf32>
    %c0_5 = arith.constant 0 : index
    %c0_6 = arith.constant 0 : index
    %8 = vector.load %arg6[%c0_5, %c0_6] : memref<1x32xf32, #tpu.memory_space<vmem>>, vector<1x32xf32>
    %9 = vector.broadcast %8 : vector<1x32xf32> to vector<8x32xf32>
    %10 = arith.addf %7, %9 : vector<8x32xf32>
    %cst_7 = arith.constant 0.353553385 : f32
    %11 = vector.broadcast %cst_7 : f32 to vector<8x32xf32>
    %12 = arith.mulf %10, %11 : vector<8x32xf32>
    %c0_8 = arith.constant 0 : index
    %c0_9 = arith.constant 0 : index
    %13 = vector.load %arg22[%c0_8, %c0_9] : memref<8x32xbf16, #tpu.memory_space<vmem>>, vector<8x32xbf16>
    %c0_10 = arith.constant 0 : index
    %c0_11 = arith.constant 0 : index
    %14 = vector.load %arg23[%c0_10, %c0_11] : memref<8x32xbf16, #tpu.memory_space<vmem>>, vector<8x32xbf16>
    %cst_12 = arith.constant 0.000000e+00 : f32
    %15 = vector.broadcast %cst_12 : f32 to vector<8x32xf32>
    %16 = vector.extract_strided_slice %12 {offsets = [0, 0], sizes = [8, 8], strides = [1, 1]} : vector<8x32xf32> to vector<8x8xf32>
    %17 = arith.truncf %16 : vector<8x8xf32> to vector<8x8xbf16>
    %18 = vector.extract_strided_slice %13 {offsets = [0, 0], sizes = [8, 8], strides = [1, 1]} : vector<8x32xbf16> to vector<8x8xbf16>
    %19 = vector.extract_strided_slice %14 {offsets = [0, 0], sizes = [8, 8], strides = [1, 1]} : vector<8x32xbf16> to vector<8x8xbf16>
    %cst_13 = arith.constant dense<0.000000e+00> : vector<8x8xf32>
    %20 = tpu.matmul %17, %18, %cst_13 {dimension_numbers = #tpu.dot_dimension_numbers<[1], [1], [0], [0], [0, 0, 1, 0], [], []>} : vector<8x8xbf16>, vector<8x8xbf16>, vector<8x8xf32> -> vector<8x8xf32>
    %cst_14 = arith.constant dense<0xFF800000> : vector<8xf32>
    %21 = vector.multi_reduction <maximumf>, %20, %cst_14 [1] : vector<8x8xf32> to vector<8xf32>
    %22 = vector.shape_cast %21 : vector<8xf32> to vector<8x1xf32>
    %23 = vector.broadcast %22 : vector<8x1xf32> to vector<8x8xf32>
    %24 = arith.subf %20, %23 : vector<8x8xf32>
    %25 = math.exp %24 : vector<8x8xf32>
    %cst_15 = arith.constant dense<0.000000e+00> : vector<8xf32>
    %26 = vector.multi_reduction <add>, %25, %cst_15 [1] : vector<8x8xf32> to vector<8xf32>
    %27 = vector.shape_cast %26 : vector<8xf32> to vector<8x1xf32>
    %28 = arith.truncf %25 : vector<8x8xf32> to vector<8x8xbf16>
    %cst_16 = arith.constant dense<0.000000e+00> : vector<8x8xf32>
    %29 = tpu.matmul %28, %19, %cst_16 {dimension_numbers = #tpu.dot_dimension_numbers<[1], [0], [0], [1], [0, 0, 1, 1], [], []>} : vector<8x8xbf16>, vector<8x8xbf16>, vector<8x8xf32> -> vector<8x8xf32>
    %30 = tpu.reciprocal %27 {approx = true} : vector<8x1xf32> -> vector<8x1xf32>
    %31 = vector.broadcast %30 : vector<8x1xf32> to vector<8x8xf32>
    %32 = arith.mulf %29, %31 : vector<8x8xf32>
    %33 = arith.truncf %32 : vector<8x8xf32> to vector<8x8xbf16>
    %c0_17 = arith.constant 0 : index
    %c0_18 = arith.constant 0 : index
    %34 = vector.load %arg11[%c0_17, %c0_18] : memref<32x32xbf16, #tpu.memory_space<vmem>>, vector<8x32xbf16>
    %cst_19 = arith.constant dense<0.000000e+00> : vector<8x32xf32>
    %35 = tpu.matmul %33, %34, %cst_19 {dimension_numbers = #tpu.dot_dimension_numbers<[1], [0], [0], [1], [0, 0, 1, 1], [], []>} : vector<8x8xbf16>, vector<8x32xbf16>, vector<8x32xf32> -> vector<8x32xf32>
    %36 = arith.addf %15, %35 : vector<8x32xf32>
    %37 = vector.extract_strided_slice %12 {offsets = [0, 8], sizes = [8, 8], strides = [1, 1]} : vector<8x32xf32> to vector<8x8xf32>
    %38 = arith.truncf %37 : vector<8x8xf32> to vector<8x8xbf16>
    %39 = vector.extract_strided_slice %13 {offsets = [0, 8], sizes = [8, 8], strides = [1, 1]} : vector<8x32xbf16> to vector<8x8xbf16>
    %40 = vector.extract_strided_slice %14 {offsets = [0, 8], sizes = [8, 8], strides = [1, 1]} : vector<8x32xbf16> to vector<8x8xbf16>
    %cst_20 = arith.constant dense<0.000000e+00> : vector<8x8xf32>
    %41 = tpu.matmul %38, %39, %cst_20 {dimension_numbers = #tpu.dot_dimension_numbers<[1], [1], [0], [0], [0, 0, 1, 0], [], []>} : vector<8x8xbf16>, vector<8x8xbf16>, vector<8x8xf32> -> vector<8x8xf32>
    %cst_21 = arith.constant dense<0xFF800000> : vector<8xf32>
    %42 = vector.multi_reduction <maximumf>, %41, %cst_21 [1] : vector<8x8xf32> to vector<8xf32>
    %43 = vector.shape_cast %42 : vector<8xf32> to vector<8x1xf32>
    %44 = vector.broadcast %43 : vector<8x1xf32> to vector<8x8xf32>
    %45 = arith.subf %41, %44 : vector<8x8xf32>
    %46 = math.exp %45 : vector<8x8xf32>
    %cst_22 = arith.constant dense<0.000000e+00> : vector<8xf32>
    %47 = vector.multi_reduction <add>, %46, %cst_22 [1] : vector<8x8xf32> to vector<8xf32>
    %48 = vector.shape_cast %47 : vector<8xf32> to vector<8x1xf32>
    %49 = arith.truncf %46 : vector<8x8xf32> to vector<8x8xbf16>
    %cst_23 = arith.constant dense<0.000000e+00> : vector<8x8xf32>
    %50 = tpu.matmul %49, %40, %cst_23 {dimension_numbers = #tpu.dot_dimension_numbers<[1], [0], [0], [1], [0, 0, 1, 1], [], []>} : vector<8x8xbf16>, vector<8x8xbf16>, vector<8x8xf32> -> vector<8x8xf32>
    %51 = tpu.reciprocal %48 {approx = true} : vector<8x1xf32> -> vector<8x1xf32>
    %52 = vector.broadcast %51 : vector<8x1xf32> to vector<8x8xf32>
    %53 = arith.mulf %50, %52 : vector<8x8xf32>
    %54 = arith.truncf %53 : vector<8x8xf32> to vector<8x8xbf16>
    %c8 = arith.constant 8 : index
    %c0_24 = arith.constant 0 : index
    %55 = vector.load %arg11[%c8, %c0_24] : memref<32x32xbf16, #tpu.memory_space<vmem>>, vector<8x32xbf16>
    %cst_25 = arith.constant dense<0.000000e+00> : vector<8x32xf32>
    %56 = tpu.matmul %54, %55, %cst_25 {dimension_numbers = #tpu.dot_dimension_numbers<[1], [0], [0], [1], [0, 0, 1, 1], [], []>} : vector<8x8xbf16>, vector<8x32xbf16>, vector<8x32xf32> -> vector<8x32xf32>
    %57 = arith.addf %36, %56 : vector<8x32xf32>
    %58 = vector.extract_strided_slice %12 {offsets = [0, 16], sizes = [8, 8], strides = [1, 1]} : vector<8x32xf32> to vector<8x8xf32>
    %59 = arith.truncf %58 : vector<8x8xf32> to vector<8x8xbf16>
    %60 = vector.extract_strided_slice %13 {offsets = [0, 16], sizes = [8, 8], strides = [1, 1]} : vector<8x32xbf16> to vector<8x8xbf16>
    %61 = vector.extract_strided_slice %14 {offsets = [0, 16], sizes = [8, 8], strides = [1, 1]} : vector<8x32xbf16> to vector<8x8xbf16>
    %cst_26 = arith.constant dense<0.000000e+00> : vector<8x8xf32>
    %62 = tpu.matmul %59, %60, %cst_26 {dimension_numbers = #tpu.dot_dimension_numbers<[1], [1], [0], [0], [0, 0, 1, 0], [], []>} : vector<8x8xbf16>, vector<8x8xbf16>, vector<8x8xf32> -> vector<8x8xf32>
    %cst_27 = arith.constant dense<0xFF800000> : vector<8xf32>
    %63 = vector.multi_reduction <maximumf>, %62, %cst_27 [1] : vector<8x8xf32> to vector<8xf32>
    %64 = vector.shape_cast %63 : vector<8xf32> to vector<8x1xf32>
    %65 = vector.broadcast %64 : vector<8x1xf32> to vector<8x8xf32>
    %66 = arith.subf %62, %65 : vector<8x8xf32>
    %67 = math.exp %66 : vector<8x8xf32>
    %cst_28 = arith.constant dense<0.000000e+00> : vector<8xf32>
    %68 = vector.multi_reduction <add>, %67, %cst_28 [1] : vector<8x8xf32> to vector<8xf32>
    %69 = vector.shape_cast %68 : vector<8xf32> to vector<8x1xf32>
    %70 = arith.truncf %67 : vector<8x8xf32> to vector<8x8xbf16>
    %cst_29 = arith.constant dense<0.000000e+00> : vector<8x8xf32>
    %71 = tpu.matmul %70, %61, %cst_29 {dimension_numbers = #tpu.dot_dimension_numbers<[1], [0], [0], [1], [0, 0, 1, 1], [], []>} : vector<8x8xbf16>, vector<8x8xbf16>, vector<8x8xf32> -> vector<8x8xf32>
    %72 = tpu.reciprocal %69 {approx = true} : vector<8x1xf32> -> vector<8x1xf32>
    %73 = vector.broadcast %72 : vector<8x1xf32> to vector<8x8xf32>
    %74 = arith.mulf %71, %73 : vector<8x8xf32>
    %75 = arith.truncf %74 : vector<8x8xf32> to vector<8x8xbf16>
    %c16 = arith.constant 16 : index
    %c0_30 = arith.constant 0 : index
    %76 = vector.load %arg11[%c16, %c0_30] : memref<32x32xbf16, #tpu.memory_space<vmem>>, vector<8x32xbf16>
    %cst_31 = arith.constant dense<0.000000e+00> : vector<8x32xf32>
    %77 = tpu.matmul %75, %76, %cst_31 {dimension_numbers = #tpu.dot_dimension_numbers<[1], [0], [0], [1], [0, 0, 1, 1], [], []>} : vector<8x8xbf16>, vector<8x32xbf16>, vector<8x32xf32> -> vector<8x32xf32>
    %78 = arith.addf %57, %77 : vector<8x32xf32>
    %79 = vector.extract_strided_slice %12 {offsets = [0, 24], sizes = [8, 8], strides = [1, 1]} : vector<8x32xf32> to vector<8x8xf32>
    %80 = arith.truncf %79 : vector<8x8xf32> to vector<8x8xbf16>
    %81 = vector.extract_strided_slice %13 {offsets = [0, 24], sizes = [8, 8], strides = [1, 1]} : vector<8x32xbf16> to vector<8x8xbf16>
    %82 = vector.extract_strided_slice %14 {offsets = [0, 24], sizes = [8, 8], strides = [1, 1]} : vector<8x32xbf16> to vector<8x8xbf16>
    %cst_32 = arith.constant dense<0.000000e+00> : vector<8x8xf32>
    %83 = tpu.matmul %80, %81, %cst_32 {dimension_numbers = #tpu.dot_dimension_numbers<[1], [1], [0], [0], [0, 0, 1, 0], [], []>} : vector<8x8xbf16>, vector<8x8xbf16>, vector<8x8xf32> -> vector<8x8xf32>
    %cst_33 = arith.constant dense<0xFF800000> : vector<8xf32>
    %84 = vector.multi_reduction <maximumf>, %83, %cst_33 [1] : vector<8x8xf32> to vector<8xf32>
    %85 = vector.shape_cast %84 : vector<8xf32> to vector<8x1xf32>
    %86 = vector.broadcast %85 : vector<8x1xf32> to vector<8x8xf32>
    %87 = arith.subf %83, %86 : vector<8x8xf32>
    %88 = math.exp %87 : vector<8x8xf32>
    %cst_34 = arith.constant dense<0.000000e+00> : vector<8xf32>
    %89 = vector.multi_reduction <add>, %88, %cst_34 [1] : vector<8x8xf32> to vector<8xf32>
    %90 = vector.shape_cast %89 : vector<8xf32> to vector<8x1xf32>
    %91 = arith.truncf %88 : vector<8x8xf32> to vector<8x8xbf16>
    %cst_35 = arith.constant dense<0.000000e+00> : vector<8x8xf32>
    %92 = tpu.matmul %91, %82, %cst_35 {dimension_numbers = #tpu.dot_dimension_numbers<[1], [0], [0], [1], [0, 0, 1, 1], [], []>} : vector<8x8xbf16>, vector<8x8xbf16>, vector<8x8xf32> -> vector<8x8xf32>
    %93 = tpu.reciprocal %90 {approx = true} : vector<8x1xf32> -> vector<8x1xf32>
    %94 = vector.broadcast %93 : vector<8x1xf32> to vector<8x8xf32>
    %95 = arith.mulf %92, %94 : vector<8x8xf32>
    %96 = arith.truncf %95 : vector<8x8xf32> to vector<8x8xbf16>
    %c24 = arith.constant 24 : index
    %c0_36 = arith.constant 0 : index
    %97 = vector.load %arg11[%c24, %c0_36] : memref<32x32xbf16, #tpu.memory_space<vmem>>, vector<8x32xbf16>
    %cst_37 = arith.constant dense<0.000000e+00> : vector<8x32xf32>
    %98 = tpu.matmul %96, %97, %cst_37 {dimension_numbers = #tpu.dot_dimension_numbers<[1], [0], [0], [1], [0, 0, 1, 1], [], []>} : vector<8x8xbf16>, vector<8x32xbf16>, vector<8x32xf32> -> vector<8x32xf32>
    %99 = arith.addf %78, %98 : vector<8x32xf32>
    %c0_38 = arith.constant 0 : index
    %c0_39 = arith.constant 0 : index
    %100 = vector.load %arg12[%c0_38, %c0_39] : memref<1x32xf32, #tpu.memory_space<vmem>>, vector<1x32xf32>
    %101 = vector.broadcast %100 : vector<1x32xf32> to vector<8x32xf32>
    %102 = arith.addf %99, %101 : vector<8x32xf32>
    %103 = arith.addf %102, %1 : vector<8x32xf32>
    %c0_40 = arith.constant 0 : index
    %c0_41 = arith.constant 0 : index
    %104 = vector.load %arg13[%c0_40, %c0_41] : memref<1x32xf32, #tpu.memory_space<vmem>>, vector<1x32xf32>
    %c0_42 = arith.constant 0 : index
    %c0_43 = arith.constant 0 : index
    %105 = vector.load %arg14[%c0_42, %c0_43] : memref<1x32xf32, #tpu.memory_space<vmem>>, vector<1x32xf32>
    %cst_44 = arith.constant dense<0.000000e+00> : vector<8xf32>
    %106 = vector.multi_reduction <add>, %103, %cst_44 [1] : vector<8x32xf32> to vector<8xf32>
    %107 = vector.shape_cast %106 : vector<8xf32> to vector<8x1xf32>
    %cst_45 = arith.constant 3.200000e+01 : f32
    %108 = vector.broadcast %cst_45 : f32 to vector<8x1xf32>
    %109 = arith.divf %107, %108 : vector<8x1xf32>
    %110 = vector.broadcast %109 : vector<8x1xf32> to vector<8x32xf32>
    %111 = arith.subf %103, %110 : vector<8x32xf32>
    %112 = arith.mulf %111, %111 : vector<8x32xf32>
    %cst_46 = arith.constant dense<0.000000e+00> : vector<8xf32>
    %113 = vector.multi_reduction <add>, %112, %cst_46 [1] : vector<8x32xf32> to vector<8xf32>
    %114 = vector.shape_cast %113 : vector<8xf32> to vector<8x1xf32>
    %cst_47 = arith.constant 3.200000e+01 : f32
    %115 = vector.broadcast %cst_47 : f32 to vector<8x1xf32>
    %116 = arith.divf %114, %115 : vector<8x1xf32>
    %117 = vector.broadcast %109 : vector<8x1xf32> to vector<8x32xf32>
    %118 = arith.subf %103, %117 : vector<8x32xf32>
    %cst_48 = arith.constant 9.99999974E-6 : f32
    %119 = vector.broadcast %cst_48 : f32 to vector<8x1xf32>
    %120 = arith.addf %116, %119 : vector<8x1xf32>
    %121 = math.rsqrt %120 : vector<8x1xf32>
    %122 = vector.broadcast %121 : vector<8x1xf32> to vector<8x32xf32>
    %123 = arith.mulf %118, %122 : vector<8x32xf32>
    %124 = vector.broadcast %104 : vector<1x32xf32> to vector<8x32xf32>
    %125 = arith.mulf %123, %124 : vector<8x32xf32>
    %126 = vector.broadcast %105 : vector<1x32xf32> to vector<8x32xf32>
    %127 = arith.addf %125, %126 : vector<8x32xf32>
    %128 = arith.truncf %127 : vector<8x32xf32> to vector<8x32xbf16>
    %c0_49 = arith.constant 0 : index
    %c0_50 = arith.constant 0 : index
    %129 = vector.load %arg15[%c0_49, %c0_50] : memref<32x128xbf16, #tpu.memory_space<vmem>>, vector<32x128xbf16>
    %cst_51 = arith.constant dense<0.000000e+00> : vector<8x128xf32>
    %130 = tpu.matmul %128, %129, %cst_51 {dimension_numbers = #tpu.dot_dimension_numbers<[1], [0], [0], [1], [0, 0, 1, 1], [], []>} : vector<8x32xbf16>, vector<32x128xbf16>, vector<8x128xf32> -> vector<8x128xf32>
    %c0_52 = arith.constant 0 : index
    %c0_53 = arith.constant 0 : index
    %131 = vector.load %arg16[%c0_52, %c0_53] : memref<1x128xf32, #tpu.memory_space<vmem>>, vector<1x128xf32>
    %132 = vector.broadcast %131 : vector<1x128xf32> to vector<8x128xf32>
    %133 = arith.addf %130, %132 : vector<8x128xf32>
    %cst_54 = arith.constant 0.000000e+00 : f32
    %134 = vector.broadcast %cst_54 : f32 to vector<8x128xf32>
    %135 = arith.maximumf %133, %134 : vector<8x128xf32>
    %136 = arith.truncf %135 : vector<8x128xf32> to vector<8x128xbf16>
    %c0_55 = arith.constant 0 : index
    %c0_56 = arith.constant 0 : index
    %137 = vector.load %arg17[%c0_55, %c0_56] : memref<128x32xbf16, #tpu.memory_space<vmem>>, vector<128x32xbf16>
    %cst_57 = arith.constant dense<0.000000e+00> : vector<8x32xf32>
    %138 = tpu.matmul %136, %137, %cst_57 {dimension_numbers = #tpu.dot_dimension_numbers<[1], [0], [0], [1], [0, 0, 1, 1], [], []>} : vector<8x128xbf16>, vector<128x32xbf16>, vector<8x32xf32> -> vector<8x32xf32>
    %c0_58 = arith.constant 0 : index
    %c0_59 = arith.constant 0 : index
    %139 = vector.load %arg18[%c0_58, %c0_59] : memref<1x32xf32, #tpu.memory_space<vmem>>, vector<1x32xf32>
    %140 = vector.broadcast %139 : vector<1x32xf32> to vector<8x32xf32>
    %141 = arith.addf %138, %140 : vector<8x32xf32>
    %142 = arith.addf %141, %127 : vector<8x32xf32>
    %c0_60 = arith.constant 0 : index
    %c0_61 = arith.constant 0 : index
    %143 = vector.load %arg19[%c0_60, %c0_61] : memref<1x32xf32, #tpu.memory_space<vmem>>, vector<1x32xf32>
    %c0_62 = arith.constant 0 : index
    %c0_63 = arith.constant 0 : index
    %144 = vector.load %arg20[%c0_62, %c0_63] : memref<1x32xf32, #tpu.memory_space<vmem>>, vector<1x32xf32>
    %cst_64 = arith.constant dense<0.000000e+00> : vector<8xf32>
    %145 = vector.multi_reduction <add>, %142, %cst_64 [1] : vector<8x32xf32> to vector<8xf32>
    %146 = vector.shape_cast %145 : vector<8xf32> to vector<8x1xf32>
    %cst_65 = arith.constant 3.200000e+01 : f32
    %147 = vector.broadcast %cst_65 : f32 to vector<8x1xf32>
    %148 = arith.divf %146, %147 : vector<8x1xf32>
    %149 = vector.broadcast %148 : vector<8x1xf32> to vector<8x32xf32>
    %150 = arith.subf %142, %149 : vector<8x32xf32>
    %151 = arith.mulf %150, %150 : vector<8x32xf32>
    %cst_66 = arith.constant dense<0.000000e+00> : vector<8xf32>
    %152 = vector.multi_reduction <add>, %151, %cst_66 [1] : vector<8x32xf32> to vector<8xf32>
    %153 = vector.shape_cast %152 : vector<8xf32> to vector<8x1xf32>
    %cst_67 = arith.constant 3.200000e+01 : f32
    %154 = vector.broadcast %cst_67 : f32 to vector<8x1xf32>
    %155 = arith.divf %153, %154 : vector<8x1xf32>
    %156 = vector.broadcast %148 : vector<8x1xf32> to vector<8x32xf32>
    %157 = arith.subf %142, %156 : vector<8x32xf32>
    %cst_68 = arith.constant 9.99999974E-6 : f32
    %158 = vector.broadcast %cst_68 : f32 to vector<8x1xf32>
    %159 = arith.addf %155, %158 : vector<8x1xf32>
    %160 = math.rsqrt %159 : vector<8x1xf32>
    %161 = vector.broadcast %160 : vector<8x1xf32> to vector<8x32xf32>
    %162 = arith.mulf %157, %161 : vector<8x32xf32>
    %163 = vector.broadcast %143 : vector<1x32xf32> to vector<8x32xf32>
    %164 = arith.mulf %162, %163 : vector<8x32xf32>
    %165 = vector.broadcast %144 : vector<1x32xf32> to vector<8x32xf32>
    %166 = arith.addf %164, %165 : vector<8x32xf32>
    %c0_69 = arith.constant 0 : index
    %c0_70 = arith.constant 0 : index
    %c0_71 = arith.constant 0 : index
    %167 = vector.load %arg21[%c0_69, %c0_70, %c0_71] : memref<1x8x32xf32, #tpu.memory_space<vmem>>, vector<1x8x32xf32>
    %168 = vector.shape_cast %167 : vector<1x8x32xf32> to vector<8x32xf32>
    %169 = vector.shape_cast %166 : vector<8x32xf32> to vector<1x8x32xf32>
    tpu.vector_store %arg21[%c0_69, %c0_70, %c0_71], %169 {strides = array<i32>} : memref<1x8x32xf32, #tpu.memory_space<vmem>>, vector<1x8x32xf32>,
    return
  }
  func.func @transform_0(%arg0: i32, %arg1: i32) -> (i32, i32, i32) {
    %c0_i32 = arith.constant 0 : i32
    %c0_i32_0 = arith.constant 0 : i32
    return %arg0, %arg1, %c0_i32 : i32, i32, i32
  }
  func.func @transform_1(%arg0: i32, %arg1: i32) -> (i32, i32, i32) {
    %c0_i32 = arith.constant 0 : i32
    %c0_i32_0 = arith.constant 0 : i32
    %c0_i32_1 = arith.constant 0 : i32
    return %arg0, %c0_i32, %c0_i32_0 : i32, i32, i32
  }
  func.func @transform_2(%arg0: i32, %arg1: i32) -> (i32, i32, i32) {
    %c0_i32 = arith.constant 0 : i32
    %c0_i32_0 = arith.constant 0 : i32
    %c0_i32_1 = arith.constant 0 : i32
    return %arg0, %c0_i32, %c0_i32_0 : i32, i32, i32
  }
  func.func @transform_3(%arg0: i32, %arg1: i32) -> (i32, i32) {
    %c0_i32 = arith.constant 0 : i32
    %c0_i32_0 = arith.constant 0 : i32
    %c0_i32_1 = arith.constant 0 : i32
    return %c0_i32, %c0_i32_0 : i32, i32
  }
  func.func @transform_4(%arg0: i32, %arg1: i32) -> (i32, i32) {
    %c0_i32 = arith.constant 0 : i32
    %c0_i32_0 = arith.constant 0 : i32
    %c0_i32_1 = arith.constant 0 : i32
    return %c0_i32, %c0_i32_0 : i32, i32
  }
  func.func @transform_5(%arg0: i32, %arg1: i32) -> (i32, i32) {
    %c0_i32 = arith.constant 0 : i32
    %c0_i32_0 = arith.constant 0 : i32
    %c0_i32_1 = arith.constant 0 : i32
    return %c0_i32, %c0_i32_0 : i32, i32
  }
  func.func @transform_6(%arg0: i32, %arg1: i32) -> (i32, i32) {
    %c0_i32 = arith.constant 0 : i32
    %c0_i32_0 = arith.constant 0 : i32
    %c0_i32_1 = arith.constant 0 : i32
    return %c0_i32, %c0_i32_0 : i32, i32
  }
  func.func @transform_7(%arg0: i32, %arg1: i32) -> (i32, i32) {
    %c0_i32 = arith.constant 0 : i32
    %c0_i32_0 = arith.constant 0 : i32
    %c0_i32_1 = arith.constant 0 : i32
    return %c0_i32, %c0_i32_0 : i32, i32
  }
  func.func @transform_8(%arg0: i32, %arg1: i32) -> (i32, i32) {
    %c0_i32 = arith.constant 0 : i32
    %c0_i32_0 = arith.constant 0 : i32
    %c0_i32_1 = arith.constant 0 : i32
    return %c0_i32, %c0_i32_0 : i32, i32
  }
  func.func @transform_9(%arg0: i32, %arg1: i32) -> (i32, i32) {
    %c0_i32 = arith.constant 0 : i32
    %c0_i32_0 = arith.constant 0 : i32
    %c0_i32_1 = arith.constant 0 : i32
    return %c0_i32, %c0_i32_0 : i32, i32
  }
  func.func @transform_10(%arg0: i32, %arg1: i32) -> (i32, i32) {
    %c0_i32 = arith.constant 0 : i32
    %c0_i32_0 = arith.constant 0 : i32
    %c0_i32_1 = arith.constant 0 : i32
    return %c0_i32, %c0_i32_0 : i32, i32
  }
  func.func @transform_11(%arg0: i32, %arg1: i32) -> (i32, i32) {
    %c0_i32 = arith.constant 0 : i32
    %c0_i32_0 = arith.constant 0 : i32
    %c0_i32_1 = arith.constant 0 : i32
    return %c0_i32, %c0_i32_0 : i32, i32
  }
  func.func @transform_12(%arg0: i32, %arg1: i32) -> (i32, i32) {
    %c0_i32 = arith.constant 0 : i32
    %c0_i32_0 = arith.constant 0 : i32
    %c0_i32_1 = arith.constant 0 : i32
    return %c0_i32, %c0_i32_0 : i32, i32
  }
  func.func @transform_13(%arg0: i32, %arg1: i32) -> (i32, i32) {
    %c0_i32 = arith.constant 0 : i32
    %c0_i32_0 = arith.constant 0 : i32
    %c0_i32_1 = arith.constant 0 : i32
    return %c0_i32, %c0_i32_0 : i32, i32
  }
  func.func @transform_14(%arg0: i32, %arg1: i32) -> (i32, i32) {
    %c0_i32 = arith.constant 0 : i32
    %c0_i32_0 = arith.constant 0 : i32
    %c0_i32_1 = arith.constant 0 : i32
    return %c0_i32, %c0_i32_0 : i32, i32
  }
  func.func @transform_15(%arg0: i32, %arg1: i32) -> (i32, i32) {
    %c0_i32 = arith.constant 0 : i32
    %c0_i32_0 = arith.constant 0 : i32
    %c0_i32_1 = arith.constant 0 : i32
    return %c0_i32, %c0_i32_0 : i32, i32
  }
  func.func @transform_16(%arg0: i32, %arg1: i32) -> (i32, i32) {
    %c0_i32 = arith.constant 0 : i32
    %c0_i32_0 = arith.constant 0 : i32
    %c0_i32_1 = arith.constant 0 : i32
    return %c0_i32, %c0_i32_0 : i32, i32
  }
  func.func @transform_17(%arg0: i32, %arg1: i32) -> (i32, i32) {
    %c0_i32 = arith.constant 0 : i32
    %c0_i32_0 = arith.constant 0 : i32
    %c0_i32_1 = arith.constant 0 : i32
    return %c0_i32, %c0_i32_0 : i32, i32
  }
  func.func @transform_18(%arg0: i32, %arg1: i32) -> (i32, i32) {
    %c0_i32 = arith.constant 0 : i32
    %c0_i32_0 = arith.constant 0 : i32
    %c0_i32_1 = arith.constant 0 : i32
    return %c0_i32, %c0_i32_0 : i32, i32
  }
  func.func @transform_19(%arg0: i32, %arg1: i32) -> (i32, i32, i32) {
    %c0_i32 = arith.constant 0 : i32
    %c0_i32_0 = arith.constant 0 : i32
    return %arg0, %arg1, %c0_i32 : i32, i32, i32
  }
}

module attributes {stable_mosaic.version = 11 : i64} {
  func.func @_encoder_block_kernel(%arg0: i32, %arg1: i32, %arg2: memref<1x8x32xf32, #tpu.memory_space<vmem>>, %arg3: memref<1x8x32xbf16, #tpu.memory_space<vmem>>, %arg4: memref<1x8x32xbf16, #tpu.memory_space<vmem>>, %arg5: memref<32x32xbf16, #tpu.memory_space<vmem>>, %arg6: memref<1x32xf32, #tpu.memory_space<vmem>>, %arg7: memref<32x32xbf16, #tpu.memory_space<vmem>>, %arg8: memref<1x32xf32, #tpu.memory_space<vmem>>, %arg9: memref<32x32xbf16, #tpu.memory_space<vmem>>, %arg10: memref<1x32xf32, #tpu.memory_space<vmem>>, %arg11: memref<32x32xbf16, #tpu.memory_space<vmem>>, %arg12: memref<1x32xf32, #tpu.memory_space<vmem>>, %arg13: memref<1x32xf32, #tpu.memory_space<vmem>>, %arg14: memref<1x32xf32, #tpu.memory_space<vmem>>, %arg15: memref<32x128xbf16, #tpu.memory_space<vmem>>, %arg16: memref<1x128xf32, #tpu.memory_space<vmem>>, %arg17: memref<128x32xbf16, #tpu.memory_space<vmem>>, %arg18: memref<1x32xf32, #tpu.memory_space<vmem>>, %arg19: memref<1x32xf32, #tpu.memory_space<vmem>>, %arg20: memref<1x32xf32, #tpu.memory_space<vmem>>, %arg21: memref<1x8x32xf32, #tpu.memory_space<vmem>>, %arg22: memref<8x32xbf16, #tpu.memory_space<vmem>>, %arg23: memref<8x32xbf16, #tpu.memory_space<vmem>>) attributes {dimension_semantics = [#tpu.dimension_semantics<parallel>, #tpu.dimension_semantics<arbitrary>], iteration_bounds = array<i64: 2, 1>, scalar_prefetch = 0 : i64, scratch_operands = 2 : i64, tpu.core_type = #tpu.core_type<tc>, window_params = [{transform_indices = @transform_0, window_bounds = array<i64: 1, 8, 32>}, {transform_indices = @transform_1, window_bounds = array<i64: 1, 8, 32>}, {transform_indices = @transform_2, window_bounds = array<i64: 1, 8, 32>}, {pipeline_mode = #tpu.pipeline_mode<synchronous>, transform_indices = @transform_3, window_bounds = array<i64: 32, 32>}, {pipeline_mode = #tpu.pipeline_mode<synchronous>, transform_indices = @transform_4, window_bounds = array<i64: 1, 32>}, {pipeline_mode = #tpu.pipeline_mode<synchronous>, transform_indices = @transform_5, window_bounds = array<i64: 32, 32>}, {pipeline_mode = #tpu.pipeline_mode<synchronous>, transform_indices = @transform_6, window_bounds = array<i64: 1, 32>}, {pipeline_mode = #tpu.pipeline_mode<synchronous>, transform_indices = @transform_7, window_bounds = array<i64: 32, 32>}, {pipeline_mode = #tpu.pipeline_mode<synchronous>, transform_indices = @transform_8, window_bounds = array<i64: 1, 32>}, {pipeline_mode = #tpu.pipeline_mode<synchronous>, transform_indices = @transform_9, window_bounds = array<i64: 32, 32>}, {pipeline_mode = #tpu.pipeline_mode<synchronous>, transform_indices = @transform_10, window_bounds = array<i64: 1, 32>}, {pipeline_mode = #tpu.pipeline_mode<synchronous>, transform_indices = @transform_11, window_bounds = array<i64: 1, 32>}, {pipeline_mode = #tpu.pipeline_mode<synchronous>, transform_indices = @transform_12, window_bounds = array<i64: 1, 32>}, {pipeline_mode = #tpu.pipeline_mode<synchronous>, transform_indices = @transform_13, window_bounds = array<i64: 32, 128>}, {pipeline_mode = #tpu.pipeline_mode<synchronous>, transform_indices = @transform_14, window_bounds = array<i64: 1, 128>}, {pipeline_mode = #tpu.pipeline_mode<synchronous>, transform_indices = @transform_15, window_bounds = array<i64: 128, 32>}, {pipeline_mode = #tpu.pipeline_mode<synchronous>, transform_indices = @transform_16, window_bounds = array<i64: 1, 32>}, {pipeline_mode = #tpu.pipeline_mode<synchronous>, transform_indices = @transform_17, window_bounds = array<i64: 1, 32>}, {pipeline_mode = #tpu.pipeline_mode<synchronous>, transform_indices = @transform_18, window_bounds = array<i64: 1, 32>}, {transform_indices = @transform_19, window_bounds = array<i64: 1, 8, 32>}]} {
    %c0 = arith.constant 0 : index
    %c0_0 = arith.constant 0 : index
    %c0_1 = arith.constant 0 : index
    %0 = vector.load %arg2[%c0, %c0_0, %c0_1] : memref<1x8x32xf32, #tpu.memory_space<vmem>>, vector<1x8x32xf32>
    %1 = vector.shape_cast %0 : vector<1x8x32xf32> to vector<8x32xf32>
    %c0_i32 = arith.constant 0 : i32
    %2 = arith.cmpi eq, %arg1, %c0_i32 : i32
    %3 = arith.extui %2 : i1 to i32
    %c0_i32_2 = arith.constant 0 : i32
    %4 = arith.cmpi ne, %3, %c0_i32_2 : i32
    scf.if %4 {
      %c0_72 = arith.constant 0 : index
      %c0_73 = arith.constant 0 : index
      %c0_74 = arith.constant 0 : index
      %170 = vector.load %arg3[%c0_72, %c0_73, %c0_74] : memref<1x8x32xbf16, #tpu.memory_space<vmem>>, vector<1x8x32xbf16>
      %171 = vector.shape_cast %170 : vector<1x8x32xbf16> to vector<8x32xbf16>
      %c0_75 = arith.constant 0 : index
      %c0_76 = arith.constant 0 : index
      %c0_77 = arith.constant 0 : index
      %172 = vector.load %arg4[%c0_75, %c0_76, %c0_77] : memref<1x8x32xbf16, #tpu.memory_space<vmem>>, vector<1x8x32xbf16>
      %173 = vector.shape_cast %172 : vector<1x8x32xbf16> to vector<8x32xbf16>
      %c0_78 = arith.constant 0 : index
      %c0_79 = arith.constant 0 : index
      %174 = vector.load %arg7[%c0_78, %c0_79] : memref<32x32xbf16, #tpu.memory_space<vmem>>, vector<32x32xbf16>
      %cst_80 = arith.constant dense<0.000000e+00> : vector<8x32xf32>
      %175 = tpu.matmul %171, %174, %cst_80 {dimension_numbers = #tpu.dot_dimension_numbers<[1], [0], [0], [1], [0, 0, 1, 1], [], []>} : vector<8x32xbf16>, vector<32x32xbf16>, vector<8x32xf32> -> vector<8x32xf32>
      %c0_81 = arith.constant 0 : index
      %c0_82 = arith.constant 0 : index
      %176 = vector.load %arg8[%c0_81, %c0_82] : memref<1x32xf32, #tpu.memory_space<vmem>>, vector<1x32xf32>
      %177 = vector.broadcast %176 : vector<1x32xf32> to vector<8x32xf32>
      %178 = arith.addf %175, %177 : vector<8x32xf32>
      %179 = arith.truncf %178 : vector<8x32xf32> to vector<8x32xbf16>
      %c0_83 = arith.constant 0 : index
      %c0_84 = arith.constant 0 : index
      %180 = vector.load %arg22[%c0_83, %c0_84] : memref<8x32xbf16, #tpu.memory_space<vmem>>, vector<8x32xbf16>
      tpu.vector_store %arg22[%c0_83, %c0_84], %179 {strides = array<i32>} : memref<8x32xbf16, #tpu.memory_space<vmem>>, vector<8x32xbf16>,
      %c0_85 = arith.constant 0 : index
      %c0_86 = arith.constant 0 : index
      %181 = vector.load %arg9[%c0_85, %c0_86] : memref<32x32xbf16, #tpu.memory_space<vmem>>, vector<32x32xbf16>
      %cst_87 = arith.constant dense<0.000000e+00> : vector<8x32xf32>
      %182 = tpu.matmul %173, %181, %cst_87 {dimension_numbers = #tpu.dot_dimension_numbers<[1], [0], [0], [1], [0, 0, 1, 1], [], []>} : vector<8x32xbf16>, vector<32x32xbf16>, vector<8x32xf32> -> vector<8x32xf32>
      %c0_88 = arith.constant 0 : index
      %c0_89 = arith.constant 0 : index
      %183 = vector.load %arg10[%c0_88, %c0_89] : memref<1x32xf32, #tpu.memory_space<vmem>>, vector<1x32xf32>
      %184 = vector.broadcast %183 : vector<1x32xf32> to vector<8x32xf32>
      %185 = arith.addf %182, %184 : vector<8x32xf32>
      %186 = arith.truncf %185 : vector<8x32xf32> to vector<8x32xbf16>
      %c0_90 = arith.constant 0 : index
      %c0_91 = arith.constant 0 : index
      %187 = vector.load %arg23[%c0_90, %c0_91] : memref<8x32xbf16, #tpu.memory_space<vmem>>, vector<8x32xbf16>
      tpu.vector_store %arg23[%c0_90, %c0_91], %186 {strides = array<i32>} : memref<8x32xbf16, #tpu.memory_space<vmem>>, vector<8x32xbf16>,
    } else {
    }
    %5 = arith.truncf %1 : vector<8x32xf32> to vector<8x32xbf16>
    %c0_3 = arith.constant 0 : index
    %c0_4 = arith.constant 0 : index
    %6 = vector.load %arg5[%c0_3, %c0_4] : memref<32x32xbf16, #tpu.memory_space<vmem>>, vector<32x32xbf16>
    %cst = arith.constant dense<0.000000e+00> : vector<8x32xf32>
    %7 = tpu.matmul %5, %6, %cst {dimension_numbers = #tpu.dot_dimension_numbers<[1], [0], [0], [1], [0, 0, 1, 1], [], []>} : vector<8x32xbf16>, vector<32x32xbf16>, vector<8x32xf32> -> vector<8x32xf32>
    %c0_5 = arith.constant 0 : index
    %c0_6 = arith.constant 0 : index
    %8 = vector.load %arg6[%c0_5, %c0_6] : memref<1x32xf32, #tpu.memory_space<vmem>>, vector<1x32xf32>
    %9 = vector.broadcast %8 : vector<1x32xf32> to vector<8x32xf32>
    %10 = arith.addf %7, %9 : vector<8x32xf32>
    %cst_7 = arith.constant 0.353553385 : f32
    %11 = vector.broadcast %cst_7 : f32 to vector<8x32xf32>
    %12 = arith.mulf %10, %11 : vector<8x32xf32>
    %c0_8 = arith.constant 0 : index
    %c0_9 = arith.constant 0 : index
    %13 = vector.load %arg22[%c0_8, %c0_9] : memref<8x32xbf16, #tpu.memory_space<vmem>>, vector<8x32xbf16>
    %c0_10 = arith.constant 0 : index
    %c0_11 = arith.constant 0 : index
    %14 = vector.load %arg23[%c0_10, %c0_11] : memref<8x32xbf16, #tpu.memory_space<vmem>>, vector<8x32xbf16>
    %cst_12 = arith.constant 0.000000e+00 : f32
    %15 = vector.broadcast %cst_12 : f32 to vector<8x32xf32>
    %16 = vector.extract_strided_slice %12 {offsets = [0, 0], sizes = [8, 8], strides = [1, 1]} : vector<8x32xf32> to vector<8x8xf32>
    %17 = arith.truncf %16 : vector<8x8xf32> to vector<8x8xbf16>
    %18 = vector.extract_strided_slice %13 {offsets = [0, 0], sizes = [8, 8], strides = [1, 1]} : vector<8x32xbf16> to vector<8x8xbf16>
    %19 = vector.extract_strided_slice %14 {offsets = [0, 0], sizes = [8, 8], strides = [1, 1]} : vector<8x32xbf16> to vector<8x8xbf16>
    %cst_13 = arith.constant dense<0.000000e+00> : vector<8x8xf32>
    %20 = tpu.matmul %17, %18, %cst_13 {dimension_numbers = #tpu.dot_dimension_numbers<[1], [1], [0], [0], [0, 0, 1, 0], [], []>} : vector<8x8xbf16>, vector<8x8xbf16>, vector<8x8xf32> -> vector<8x8xf32>
    %cst_14 = arith.constant dense<0xFF800000> : vector<8xf32>
    %21 = vector.multi_reduction <maximumf>, %20, %cst_14 [1] : vector<8x8xf32> to vector<8xf32>
    %22 = vector.shape_cast %21 : vector<8xf32> to vector<8x1xf32>
    %23 = vector.broadcast %22 : vector<8x1xf32> to vector<8x8xf32>
    %24 = arith.subf %20, %23 : vector<8x8xf32>
    %25 = math.exp %24 : vector<8x8xf32>
    %cst_15 = arith.constant dense<0.000000e+00> : vector<8xf32>
    %26 = vector.multi_reduction <add>, %25, %cst_15 [1] : vector<8x8xf32> to vector<8xf32>
    %27 = vector.shape_cast %26 : vector<8xf32> to vector<8x1xf32>
    %28 = arith.truncf %25 : vector<8x8xf32> to vector<8x8xbf16>
    %cst_16 = arith.constant dense<0.000000e+00> : vector<8x8xf32>
    %29 = tpu.matmul %28, %19, %cst_16 {dimension_numbers = #tpu.dot_dimension_numbers<[1], [0], [0], [1], [0, 0, 1, 1], [], []>} : vector<8x8xbf16>, vector<8x8xbf16>, vector<8x8xf32> -> vector<8x8xf32>
    %30 = tpu.reciprocal %27 {approx = true} : vector<8x1xf32> -> vector<8x1xf32>
    %31 = vector.broadcast %30 : vector<8x1xf32> to vector<8x8xf32>
    %32 = arith.mulf %29, %31 : vector<8x8xf32>
    %33 = arith.truncf %32 : vector<8x8xf32> to vector<8x8xbf16>
    %c0_17 = arith.constant 0 : index
    %c0_18 = arith.constant 0 : index
    %34 = vector.load %arg11[%c0_17, %c0_18] : memref<32x32xbf16, #tpu.memory_space<vmem>>, vector<8x32xbf16>
    %cst_19 = arith.constant dense<0.000000e+00> : vector<8x32xf32>
    %35 = tpu.matmul %33, %34, %cst_19 {dimension_numbers = #tpu.dot_dimension_numbers<[1], [0], [0], [1], [0, 0, 1, 1], [], []>} : vector<8x8xbf16>, vector<8x32xbf16>, vector<8x32xf32> -> vector<8x32xf32>
    %36 = arith.addf %15, %35 : vector<8x32xf32>
    %37 = vector.extract_strided_slice %12 {offsets = [0, 8], sizes = [8, 8], strides = [1, 1]} : vector<8x32xf32> to vector<8x8xf32>
    %38 = arith.truncf %37 : vector<8x8xf32> to vector<8x8xbf16>
    %39 = vector.extract_strided_slice %13 {offsets = [0, 8], sizes = [8, 8], strides = [1, 1]} : vector<8x32xbf16> to vector<8x8xbf16>
    %40 = vector.extract_strided_slice %14 {offsets = [0, 8], sizes = [8, 8], strides = [1, 1]} : vector<8x32xbf16> to vector<8x8xbf16>
    %cst_20 = arith.constant dense<0.000000e+00> : vector<8x8xf32>
    %41 = tpu.matmul %38, %39, %cst_20 {dimension_numbers = #tpu.dot_dimension_numbers<[1], [1], [0], [0], [0, 0, 1, 0], [], []>} : vector<8x8xbf16>, vector<8x8xbf16>, vector<8x8xf32> -> vector<8x8xf32>
    %cst_21 = arith.constant dense<0xFF800000> : vector<8xf32>
    %42 = vector.multi_reduction <maximumf>, %41, %cst_21 [1] : vector<8x8xf32> to vector<8xf32>
    %43 = vector.shape_cast %42 : vector<8xf32> to vector<8x1xf32>
    %44 = vector.broadcast %43 : vector<8x1xf32> to vector<8x8xf32>
    %45 = arith.subf %41, %44 : vector<8x8xf32>
    %46 = math.exp %45 : vector<8x8xf32>
    %cst_22 = arith.constant dense<0.000000e+00> : vector<8xf32>
    %47 = vector.multi_reduction <add>, %46, %cst_22 [1] : vector<8x8xf32> to vector<8xf32>
    %48 = vector.shape_cast %47 : vector<8xf32> to vector<8x1xf32>
    %49 = arith.truncf %46 : vector<8x8xf32> to vector<8x8xbf16>
    %cst_23 = arith.constant dense<0.000000e+00> : vector<8x8xf32>
    %50 = tpu.matmul %49, %40, %cst_23 {dimension_numbers = #tpu.dot_dimension_numbers<[1], [0], [0], [1], [0, 0, 1, 1], [], []>} : vector<8x8xbf16>, vector<8x8xbf16>, vector<8x8xf32> -> vector<8x8xf32>
    %51 = tpu.reciprocal %48 {approx = true} : vector<8x1xf32> -> vector<8x1xf32>
    %52 = vector.broadcast %51 : vector<8x1xf32> to vector<8x8xf32>
    %53 = arith.mulf %50, %52 : vector<8x8xf32>
    %54 = arith.truncf %53 : vector<8x8xf32> to vector<8x8xbf16>
    %c8 = arith.constant 8 : index
    %c0_24 = arith.constant 0 : index
    %55 = vector.load %arg11[%c8, %c0_24] : memref<32x32xbf16, #tpu.memory_space<vmem>>, vector<8x32xbf16>
    %cst_25 = arith.constant dense<0.000000e+00> : vector<8x32xf32>
    %56 = tpu.matmul %54, %55, %cst_25 {dimension_numbers = #tpu.dot_dimension_numbers<[1], [0], [0], [1], [0, 0, 1, 1], [], []>} : vector<8x8xbf16>, vector<8x32xbf16>, vector<8x32xf32> -> vector<8x32xf32>
    %57 = arith.addf %36, %56 : vector<8x32xf32>
    %58 = vector.extract_strided_slice %12 {offsets = [0, 16], sizes = [8, 8], strides = [1, 1]} : vector<8x32xf32> to vector<8x8xf32>
    %59 = arith.truncf %58 : vector<8x8xf32> to vector<8x8xbf16>
    %60 = vector.extract_strided_slice %13 {offsets = [0, 16], sizes = [8, 8], strides = [1, 1]} : vector<8x32xbf16> to vector<8x8xbf16>
    %61 = vector.extract_strided_slice %14 {offsets = [0, 16], sizes = [8, 8], strides = [1, 1]} : vector<8x32xbf16> to vector<8x8xbf16>
    %cst_26 = arith.constant dense<0.000000e+00> : vector<8x8xf32>
    %62 = tpu.matmul %59, %60, %cst_26 {dimension_numbers = #tpu.dot_dimension_numbers<[1], [1], [0], [0], [0, 0, 1, 0], [], []>} : vector<8x8xbf16>, vector<8x8xbf16>, vector<8x8xf32> -> vector<8x8xf32>
    %cst_27 = arith.constant dense<0xFF800000> : vector<8xf32>
    %63 = vector.multi_reduction <maximumf>, %62, %cst_27 [1] : vector<8x8xf32> to vector<8xf32>
    %64 = vector.shape_cast %63 : vector<8xf32> to vector<8x1xf32>
    %65 = vector.broadcast %64 : vector<8x1xf32> to vector<8x8xf32>
    %66 = arith.subf %62, %65 : vector<8x8xf32>
    %67 = math.exp %66 : vector<8x8xf32>
    %cst_28 = arith.constant dense<0.000000e+00> : vector<8xf32>
    %68 = vector.multi_reduction <add>, %67, %cst_28 [1] : vector<8x8xf32> to vector<8xf32>
    %69 = vector.shape_cast %68 : vector<8xf32> to vector<8x1xf32>
    %70 = arith.truncf %67 : vector<8x8xf32> to vector<8x8xbf16>
    %cst_29 = arith.constant dense<0.000000e+00> : vector<8x8xf32>
    %71 = tpu.matmul %70, %61, %cst_29 {dimension_numbers = #tpu.dot_dimension_numbers<[1], [0], [0], [1], [0, 0, 1, 1], [], []>} : vector<8x8xbf16>, vector<8x8xbf16>, vector<8x8xf32> -> vector<8x8xf32>
    %72 = tpu.reciprocal %69 {approx = true} : vector<8x1xf32> -> vector<8x1xf32>
    %73 = vector.broadcast %72 : vector<8x1xf32> to vector<8x8xf32>
    %74 = arith.mulf %71, %73 : vector<8x8xf32>
    %75 = arith.truncf %74 : vector<8x8xf32> to vector<8x8xbf16>
    %c16 = arith.constant 16 : index
    %c0_30 = arith.constant 0 : index
    %76 = vector.load %arg11[%c16, %c0_30] : memref<32x32xbf16, #tpu.memory_space<vmem>>, vector<8x32xbf16>
    %cst_31 = arith.constant dense<0.000000e+00> : vector<8x32xf32>
    %77 = tpu.matmul %75, %76, %cst_31 {dimension_numbers = #tpu.dot_dimension_numbers<[1], [0], [0], [1], [0, 0, 1, 1], [], []>} : vector<8x8xbf16>, vector<8x32xbf16>, vector<8x32xf32> -> vector<8x32xf32>
    %78 = arith.addf %57, %77 : vector<8x32xf32>
    %79 = vector.extract_strided_slice %12 {offsets = [0, 24], sizes = [8, 8], strides = [1, 1]} : vector<8x32xf32> to vector<8x8xf32>
    %80 = arith.truncf %79 : vector<8x8xf32> to vector<8x8xbf16>
    %81 = vector.extract_strided_slice %13 {offsets = [0, 24], sizes = [8, 8], strides = [1, 1]} : vector<8x32xbf16> to vector<8x8xbf16>
    %82 = vector.extract_strided_slice %14 {offsets = [0, 24], sizes = [8, 8], strides = [1, 1]} : vector<8x32xbf16> to vector<8x8xbf16>
    %cst_32 = arith.constant dense<0.000000e+00> : vector<8x8xf32>
    %83 = tpu.matmul %80, %81, %cst_32 {dimension_numbers = #tpu.dot_dimension_numbers<[1], [1], [0], [0], [0, 0, 1, 0], [], []>} : vector<8x8xbf16>, vector<8x8xbf16>, vector<8x8xf32> -> vector<8x8xf32>
    %cst_33 = arith.constant dense<0xFF800000> : vector<8xf32>
    %84 = vector.multi_reduction <maximumf>, %83, %cst_33 [1] : vector<8x8xf32> to vector<8xf32>
    %85 = vector.shape_cast %84 : vector<8xf32> to vector<8x1xf32>
    %86 = vector.broadcast %85 : vector<8x1xf32> to vector<8x8xf32>
    %87 = arith.subf %83, %86 : vector<8x8xf32>
    %88 = math.exp %87 : vector<8x8xf32>
    %cst_34 = arith.constant dense<0.000000e+00> : vector<8xf32>
    %89 = vector.multi_reduction <add>, %88, %cst_34 [1] : vector<8x8xf32> to vector<8xf32>
    %90 = vector.shape_cast %89 : vector<8xf32> to vector<8x1xf32>
    %91 = arith.truncf %88 : vector<8x8xf32> to vector<8x8xbf16>
    %cst_35 = arith.constant dense<0.000000e+00> : vector<8x8xf32>
    %92 = tpu.matmul %91, %82, %cst_35 {dimension_numbers = #tpu.dot_dimension_numbers<[1], [0], [0], [1], [0, 0, 1, 1], [], []>} : vector<8x8xbf16>, vector<8x8xbf16>, vector<8x8xf32> -> vector<8x8xf32>
    %93 = tpu.reciprocal %90 {approx = true} : vector<8x1xf32> -> vector<8x1xf32>
    %94 = vector.broadcast %93 : vector<8x1xf32> to vector<8x8xf32>
    %95 = arith.mulf %92, %94 : vector<8x8xf32>
    %96 = arith.truncf %95 : vector<8x8xf32> to vector<8x8xbf16>
    %c24 = arith.constant 24 : index
    %c0_36 = arith.constant 0 : index
    %97 = vector.load %arg11[%c24, %c0_36] : memref<32x32xbf16, #tpu.memory_space<vmem>>, vector<8x32xbf16>
    %cst_37 = arith.constant dense<0.000000e+00> : vector<8x32xf32>
    %98 = tpu.matmul %96, %97, %cst_37 {dimension_numbers = #tpu.dot_dimension_numbers<[1], [0], [0], [1], [0, 0, 1, 1], [], []>} : vector<8x8xbf16>, vector<8x32xbf16>, vector<8x32xf32> -> vector<8x32xf32>
    %99 = arith.addf %78, %98 : vector<8x32xf32>
    %c0_38 = arith.constant 0 : index
    %c0_39 = arith.constant 0 : index
    %100 = vector.load %arg12[%c0_38, %c0_39] : memref<1x32xf32, #tpu.memory_space<vmem>>, vector<1x32xf32>
    %101 = vector.broadcast %100 : vector<1x32xf32> to vector<8x32xf32>
    %102 = arith.addf %99, %101 : vector<8x32xf32>
    %103 = arith.addf %102, %1 : vector<8x32xf32>
    %c0_40 = arith.constant 0 : index
    %c0_41 = arith.constant 0 : index
    %104 = vector.load %arg13[%c0_40, %c0_41] : memref<1x32xf32, #tpu.memory_space<vmem>>, vector<1x32xf32>
    %c0_42 = arith.constant 0 : index
    %c0_43 = arith.constant 0 : index
    %105 = vector.load %arg14[%c0_42, %c0_43] : memref<1x32xf32, #tpu.memory_space<vmem>>, vector<1x32xf32>
    %cst_44 = arith.constant dense<0.000000e+00> : vector<8xf32>
    %106 = vector.multi_reduction <add>, %103, %cst_44 [1] : vector<8x32xf32> to vector<8xf32>
    %107 = vector.shape_cast %106 : vector<8xf32> to vector<8x1xf32>
    %cst_45 = arith.constant 3.200000e+01 : f32
    %108 = vector.broadcast %cst_45 : f32 to vector<8x1xf32>
    %109 = arith.divf %107, %108 : vector<8x1xf32>
    %110 = vector.broadcast %109 : vector<8x1xf32> to vector<8x32xf32>
    %111 = arith.subf %103, %110 : vector<8x32xf32>
    %112 = arith.mulf %111, %111 : vector<8x32xf32>
    %cst_46 = arith.constant dense<0.000000e+00> : vector<8xf32>
    %113 = vector.multi_reduction <add>, %112, %cst_46 [1] : vector<8x32xf32> to vector<8xf32>
    %114 = vector.shape_cast %113 : vector<8xf32> to vector<8x1xf32>
    %cst_47 = arith.constant 3.200000e+01 : f32
    %115 = vector.broadcast %cst_47 : f32 to vector<8x1xf32>
    %116 = arith.divf %114, %115 : vector<8x1xf32>
    %117 = vector.broadcast %109 : vector<8x1xf32> to vector<8x32xf32>
    %118 = arith.subf %103, %117 : vector<8x32xf32>
    %cst_48 = arith.constant 9.99999974E-6 : f32
    %119 = vector.broadcast %cst_48 : f32 to vector<8x1xf32>
    %120 = arith.addf %116, %119 : vector<8x1xf32>
    %121 = math.rsqrt %120 : vector<8x1xf32>
    %122 = vector.broadcast %121 : vector<8x1xf32> to vector<8x32xf32>
    %123 = arith.mulf %118, %122 : vector<8x32xf32>
    %124 = vector.broadcast %104 : vector<1x32xf32> to vector<8x32xf32>
    %125 = arith.mulf %123, %124 : vector<8x32xf32>
    %126 = vector.broadcast %105 : vector<1x32xf32> to vector<8x32xf32>
    %127 = arith.addf %125, %126 : vector<8x32xf32>
    %128 = arith.truncf %127 : vector<8x32xf32> to vector<8x32xbf16>
    %c0_49 = arith.constant 0 : index
    %c0_50 = arith.constant 0 : index
    %129 = vector.load %arg15[%c0_49, %c0_50] : memref<32x128xbf16, #tpu.memory_space<vmem>>, vector<32x128xbf16>
    %cst_51 = arith.constant dense<0.000000e+00> : vector<8x128xf32>
    %130 = tpu.matmul %128, %129, %cst_51 {dimension_numbers = #tpu.dot_dimension_numbers<[1], [0], [0], [1], [0, 0, 1, 1], [], []>} : vector<8x32xbf16>, vector<32x128xbf16>, vector<8x128xf32> -> vector<8x128xf32>
    %c0_52 = arith.constant 0 : index
    %c0_53 = arith.constant 0 : index
    %131 = vector.load %arg16[%c0_52, %c0_53] : memref<1x128xf32, #tpu.memory_space<vmem>>, vector<1x128xf32>
    %132 = vector.broadcast %131 : vector<1x128xf32> to vector<8x128xf32>
    %133 = arith.addf %130, %132 : vector<8x128xf32>
    %cst_54 = arith.constant 0.000000e+00 : f32
    %134 = vector.broadcast %cst_54 : f32 to vector<8x128xf32>
    %135 = arith.maximumf %133, %134 : vector<8x128xf32>
    %136 = arith.truncf %135 : vector<8x128xf32> to vector<8x128xbf16>
    %c0_55 = arith.constant 0 : index
    %c0_56 = arith.constant 0 : index
    %137 = vector.load %arg17[%c0_55, %c0_56] : memref<128x32xbf16, #tpu.memory_space<vmem>>, vector<128x32xbf16>
    %cst_57 = arith.constant dense<0.000000e+00> : vector<8x32xf32>
    %138 = tpu.matmul %136, %137, %cst_57 {dimension_numbers = #tpu.dot_dimension_numbers<[1], [0], [0], [1], [0, 0, 1, 1], [], []>} : vector<8x128xbf16>, vector<128x32xbf16>, vector<8x32xf32> -> vector<8x32xf32>
    %c0_58 = arith.constant 0 : index
    %c0_59 = arith.constant 0 : index
    %139 = vector.load %arg18[%c0_58, %c0_59] : memref<1x32xf32, #tpu.memory_space<vmem>>, vector<1x32xf32>
    %140 = vector.broadcast %139 : vector<1x32xf32> to vector<8x32xf32>
    %141 = arith.addf %138, %140 : vector<8x32xf32>
    %142 = arith.addf %141, %127 : vector<8x32xf32>
    %c0_60 = arith.constant 0 : index
    %c0_61 = arith.constant 0 : index
    %143 = vector.load %arg19[%c0_60, %c0_61] : memref<1x32xf32, #tpu.memory_space<vmem>>, vector<1x32xf32>
    %c0_62 = arith.constant 0 : index
    %c0_63 = arith.constant 0 : index
    %144 = vector.load %arg20[%c0_62, %c0_63] : memref<1x32xf32, #tpu.memory_space<vmem>>, vector<1x32xf32>
    %cst_64 = arith.constant dense<0.000000e+00> : vector<8xf32>
    %145 = vector.multi_reduction <add>, %142, %cst_64 [1] : vector<8x32xf32> to vector<8xf32>
    %146 = vector.shape_cast %145 : vector<8xf32> to vector<8x1xf32>
    %cst_65 = arith.constant 3.200000e+01 : f32
    %147 = vector.broadcast %cst_65 : f32 to vector<8x1xf32>
    %148 = arith.divf %146, %147 : vector<8x1xf32>
    %149 = vector.broadcast %148 : vector<8x1xf32> to vector<8x32xf32>
    %150 = arith.subf %142, %149 : vector<8x32xf32>
    %151 = arith.mulf %150, %150 : vector<8x32xf32>
    %cst_66 = arith.constant dense<0.000000e+00> : vector<8xf32>
    %152 = vector.multi_reduction <add>, %151, %cst_66 [1] : vector<8x32xf32> to vector<8xf32>
    %153 = vector.shape_cast %152 : vector<8xf32> to vector<8x1xf32>
    %cst_67 = arith.constant 3.200000e+01 : f32
    %154 = vector.broadcast %cst_67 : f32 to vector<8x1xf32>
    %155 = arith.divf %153, %154 : vector<8x1xf32>
    %156 = vector.broadcast %148 : vector<8x1xf32> to vector<8x32xf32>
    %157 = arith.subf %142, %156 : vector<8x32xf32>
    %cst_68 = arith.constant 9.99999974E-6 : f32
    %158 = vector.broadcast %cst_68 : f32 to vector<8x1xf32>
    %159 = arith.addf %155, %158 : vector<8x1xf32>
    %160 = math.rsqrt %159 : vector<8x1xf32>
    %161 = vector.broadcast %160 : vector<8x1xf32> to vector<8x32xf32>
    %162 = arith.mulf %157, %161 : vector<8x32xf32>
    %163 = vector.broadcast %143 : vector<1x32xf32> to vector<8x32xf32>
    %164 = arith.mulf %162, %163 : vector<8x32xf32>
    %165 = vector.broadcast %144 : vector<1x32xf32> to vector<8x32xf32>
    %166 = arith.addf %164, %165 : vector<8x32xf32>
    %c0_69 = arith.constant 0 : index
    %c0_70 = arith.constant 0 : index
    %c0_71 = arith.constant 0 : index
    %167 = vector.load %arg21[%c0_69, %c0_70, %c0_71] : memref<1x8x32xf32, #tpu.memory_space<vmem>>, vector<1x8x32xf32>
    %168 = vector.shape_cast %167 : vector<1x8x32xf32> to vector<8x32xf32>
    %169 = vector.shape_cast %166 : vector<8x32xf32> to vector<1x8x32xf32>
    tpu.vector_store %arg21[%c0_69, %c0_70, %c0_71], %169 {strides = array<i32>} : memref<1x8x32xf32, #tpu.memory_space<vmem>>, vector<1x8x32xf32>,
    return
  }
  func.func @transform_0(%arg0: i32, %arg1: i32) -> (i32, i32, i32) {
    %c0_i32 = arith.constant 0 : i32
    %c0_i32_0 = arith.constant 0 : i32
    return %arg0, %arg1, %c0_i32 : i32, i32, i32
  }
  func.func @transform_1(%arg0: i32, %arg1: i32) -> (i32, i32, i32) {
    %c0_i32 = arith.constant 0 : i32
    %c0_i32_0 = arith.constant 0 : i32
    %c0_i32_1 = arith.constant 0 : i32
    return %arg0, %c0_i32, %c0_i32_0 : i32, i32, i32
  }
  func.func @transform_2(%arg0: i32, %arg1: i32) -> (i32, i32, i32) {
    %c0_i32 = arith.constant 0 : i32
    %c0_i32_0 = arith.constant 0 : i32
    %c0_i32_1 = arith.constant 0 : i32
    return %arg0, %c0_i32, %c0_i32_0 : i32, i32, i32
  }
  func.func @transform_3(%arg0: i32, %arg1: i32) -> (i32, i32) {
    %c0_i32 = arith.constant 0 : i32
    %c0_i32_0 = arith.constant 0 : i32
    %c0_i32_1 = arith.constant 0 : i32
    return %c0_i32, %c0_i32_0 : i32, i32
  }
  func.func @transform_4(%arg0: i32, %arg1: i32) -> (i32, i32) {
    %c0_i32 = arith.constant 0 : i32
    %c0_i32_0 = arith.constant 0 : i32
    %c0_i32_1 = arith.constant 0 : i32
    return %c0_i32, %c0_i32_0 : i32, i32
  }
  func.func @transform_5(%arg0: i32, %arg1: i32) -> (i32, i32) {
    %c0_i32 = arith.constant 0 : i32
    %c0_i32_0 = arith.constant 0 : i32
    %c0_i32_1 = arith.constant 0 : i32
    return %c0_i32, %c0_i32_0 : i32, i32
  }
  func.func @transform_6(%arg0: i32, %arg1: i32) -> (i32, i32) {
    %c0_i32 = arith.constant 0 : i32
    %c0_i32_0 = arith.constant 0 : i32
    %c0_i32_1 = arith.constant 0 : i32
    return %c0_i32, %c0_i32_0 : i32, i32
  }
  func.func @transform_7(%arg0: i32, %arg1: i32) -> (i32, i32) {
    %c0_i32 = arith.constant 0 : i32
    %c0_i32_0 = arith.constant 0 : i32
    %c0_i32_1 = arith.constant 0 : i32
    return %c0_i32, %c0_i32_0 : i32, i32
  }
  func.func @transform_8(%arg0: i32, %arg1: i32) -> (i32, i32) {
    %c0_i32 = arith.constant 0 : i32
    %c0_i32_0 = arith.constant 0 : i32
    %c0_i32_1 = arith.constant 0 : i32
    return %c0_i32, %c0_i32_0 : i32, i32
  }
  func.func @transform_9(%arg0: i32, %arg1: i32) -> (i32, i32) {
    %c0_i32 = arith.constant 0 : i32
    %c0_i32_0 = arith.constant 0 : i32
    %c0_i32_1 = arith.constant 0 : i32
    return %c0_i32, %c0_i32_0 : i32, i32
  }
  func.func @transform_10(%arg0: i32, %arg1: i32) -> (i32, i32) {
    %c0_i32 = arith.constant 0 : i32
    %c0_i32_0 = arith.constant 0 : i32
    %c0_i32_1 = arith.constant 0 : i32
    return %c0_i32, %c0_i32_0 : i32, i32
  }
  func.func @transform_11(%arg0: i32, %arg1: i32) -> (i32, i32) {
    %c0_i32 = arith.constant 0 : i32
    %c0_i32_0 = arith.constant 0 : i32
    %c0_i32_1 = arith.constant 0 : i32
    return %c0_i32, %c0_i32_0 : i32, i32
  }
  func.func @transform_12(%arg0: i32, %arg1: i32) -> (i32, i32) {
    %c0_i32 = arith.constant 0 : i32
    %c0_i32_0 = arith.constant 0 : i32
    %c0_i32_1 = arith.constant 0 : i32
    return %c0_i32, %c0_i32_0 : i32, i32
  }
  func.func @transform_13(%arg0: i32, %arg1: i32) -> (i32, i32) {
    %c0_i32 = arith.constant 0 : i32
    %c0_i32_0 = arith.constant 0 : i32
    %c0_i32_1 = arith.constant 0 : i32
    return %c0_i32, %c0_i32_0 : i32, i32
  }
  func.func @transform_14(%arg0: i32, %arg1: i32) -> (i32, i32) {
    %c0_i32 = arith.constant 0 : i32
    %c0_i32_0 = arith.constant 0 : i32
    %c0_i32_1 = arith.constant 0 : i32
    return %c0_i32, %c0_i32_0 : i32, i32
  }
  func.func @transform_15(%arg0: i32, %arg1: i32) -> (i32, i32) {
    %c0_i32 = arith.constant 0 : i32
    %c0_i32_0 = arith.constant 0 : i32
    %c0_i32_1 = arith.constant 0 : i32
    return %c0_i32, %c0_i32_0 : i32, i32
  }
  func.func @transform_16(%arg0: i32, %arg1: i32) -> (i32, i32) {
    %c0_i32 = arith.constant 0 : i32
    %c0_i32_0 = arith.constant 0 : i32
    %c0_i32_1 = arith.constant 0 : i32
    return %c0_i32, %c0_i32_0 : i32, i32
  }
  func.func @transform_17(%arg0: i32, %arg1: i32) -> (i32, i32) {
    %c0_i32 = arith.constant 0 : i32
    %c0_i32_0 = arith.constant 0 : i32
    %c0_i32_1 = arith.constant 0 : i32
    return %c0_i32, %c0_i32_0 : i32, i32
  }
  func.func @transform_18(%arg0: i32, %arg1: i32) -> (i32, i32) {
    %c0_i32 = arith.constant 0 : i32
    %c0_i32_0 = arith.constant 0 : i32
    %c0_i32_1 = arith.constant 0 : i32
    return %c0_i32, %c0_i32_0 : i32, i32
  }
  func.func @transform_19(%arg0: i32, %arg1: i32) -> (i32, i32, i32) {
    %c0_i32 = arith.constant 0 : i32
    %c0_i32_0 = arith.constant 0 : i32
    return %arg0, %arg1, %c0_i32 : i32, i32, i32
  }
}

</mosaic_0001>

<bundles_post_ra>
// kernel: tpu_custom_call.1
= control target key start
LH: loop header
LB: loop body
LE: loop exit
PB: predicated region body
PF: predicated region fallthrough
CT: control target
= control target key end

     0   :  { %s2968_s0 = inlined_call_operand.vmem [shape: f32[2,8,32], index: 0, kind: input, shape index: {}]   ;;  %s2969_s1 = inlined_call_operand.hbm [shape: bf16[2,8,32], index: 1, kind: input, shape index: {}]   ;;  %s2970_s2 = inlined_call_operand.hbm [shape: bf16[2,8,32], index: 2, kind: input, shape index: {}]   ;;  %s2971_s3 = inlined_call_operand.vmem [shape: bf16[32,32], index: 3, kind: input, shape index: {}]   ;;  %s2972_s4 = inlined_call_operand.vmem [shape: f32[1,32], index: 4, kind: input, shape index: {}]   ;;  %s2973_s5 = inlined_call_operand.vmem [shape: bf16[32,32], index: 5, kind: input, shape index: {}]   ;;  %s2974_s6 = inlined_call_operand.vmem [shape: f32[1,32], index: 6, kind: input, shape index: {}]   ;;  %s2975_s7 = inlined_call_operand.vmem [shape: bf16[32,32], index: 7, kind: input, shape index: {}]   ;;  %s2976_s8 = inlined_call_operand.vmem [shape: f32[1,32], index: 8, kind: input, shape index: {}]   ;;  %s2977_s9 = inlined_call_operand.vmem [shape: bf16[32,32], index: 9, kind: input, shape index: {}]   ;;  %s2978_s10 = inlined_call_operand.vmem [shape: f32[1,32], index: 10, kind: input, shape index: {}]   ;;  %s2979_s11 = inlined_call_operand.vmem [shape: f32[1,32], index: 11, kind: input, shape index: {}]   ;;  %s2980_s12 = inlined_call_operand.vmem [shape: f32[1,32], index: 12, kind: input, shape index: {}]   ;;  %s2981_s13 = inlined_call_operand.hbm [shape: bf16[32,128], index: 13, kind: input, shape index: {}]   ;;  %s2982_s14 = inlined_call_operand.vmem [shape: f32[1,128], index: 14, kind: input, shape index: {}]   ;;  %s2983_s15 = inlined_call_operand.vmem [shape: bf16[128,32], index: 15, kind: input, shape index: {}]   ;;  %s2984_s16 = inlined_call_operand.vmem [shape: f32[1,32], index: 16, kind: input, shape index: {}]   ;;  %s2985_s17 = inlined_call_operand.vmem [shape: f32[1,32], index: 17, kind: input, shape index: {}]   ;;  %s2986_s18 = inlined_call_operand.vmem [shape: f32[1,32], index: 18, kind: input, shape index: {}]   ;;  %s2987_s19 = inlined_call_operand.hbm [shape: f32[2,8,32], index: 19, kind: output, shape index: {}]  }
   0x1   :  { %3009 = sst [smem:[#allocation24_spill]] %s2968_s0 }
   0x2   :  { %3010 = sst [smem:[#allocation25_spill]] %s2969_s1 }
   0x3   :  { %3011 = sst [smem:[#allocation26_spill]] %s2970_s2 }
   0x4   :  { %3012 = sst [smem:[#allocation27_spill]] %s2971_s3 }
   0x5   :  { %3013 = sst [smem:[#allocation28_spill]] %s2972_s4 }
   0x6   :  { %3014 = sst [smem:[#allocation29_spill]] %s2980_s12 }
   0x7   :  { %3015 = sst [smem:[#allocation30_spill]] %s2982_s14 }
   0x8   :  { %3016 = sst [smem:[#allocation31_spill]] %s2984_s16 }
   0x9   :  { %3017 = sst [smem:[#allocation32_spill]] %s2985_s17 }
   0xa   :  { %3018 = sst [smem:[#allocation33_spill]] %s2986_s18 }
   0xb   :  { %3019 = sst [smem:[#allocation34_spill]] %s2987_s19 }
   0xc   :  { %24 = vsyncpa [#allocation5], 0 }
   0xd   :  { %25 = vsyncpa [#allocation8], 0 }
   0xe   :  { %26 = vsyncpa [#allocation6], 0 }
   0xf   :  { %28 = vsyncpa [#allocation6 + $0x1], 0  ;;  %s2537_s0 = smov 0   ;;  %s2539_s30 = smov 0  }
  0x10   :  { %s2541_s20 = smov 0   ;;  %s2543_s21 = smov 0  }
  0x11   :  { %s2545_s1 = smov 0   ;;  %s2547_s22 = smov 0  }
  0x12 LB: > { %3020 = sst [smem:[#allocation15_spill]] %s2404_s0  ;;  %s1903_s2 = sadd.s32 4294967295, %s2424_s22   ;;  %s2424_s22 = sphi %s2547_s22, %s34_s22   ;;  %s2420_s1 = sphi %s2545_s1, %s3064_s1   ;;  %s2416_s21 = sphi %s2543_s21, %s3063_s21   ;;  %s2412_s20 = sphi %s2541_s20, %s3062_s20   ;;  %s2408_s30 = sphi %s2539_s30, %s3061_s30   ;;  %s2404_s0 = sphi %s2537_s0, %s3060_s0  }
  0x13   : > { %3021 = sst [smem:[#allocation16_spill]] %s2408_s30  ;;  %s1904_s23 = sadd.s32 4294967294, %s2424_s22  }
  0x14   : > { %3022 = sst [smem:[#allocation17_spill]] %s2412_s20  ;;  %s46_s24 = sadd.s32 1, %s2420_s1 }
  0x15   : > { %3023 = sst [smem:[#allocation18_spill]] %s2420_s1  ;;  %s81_s25 = sadd.s32 1, %s2412_s20 }
  0x16   : > { %3024 = sst [smem:[#allocation19_spill]] %s2424_s22  ;;  %p48_p0 = scmp.ge.s32.totalorder %s46_s24, 2 }
  0x17   : > { %p94_p1 = scmp.ne.s32.totalorder %s2408_s30, %s2404_s0  ;;  %p2573_p2 = scmp.eq.s32.totalorder %s1903_s2, 0 }
  0x18   : > { %p481_p3 = scmp.ne.s32.totalorder %s2412_s20, %s2408_s30  ;;  %s3066_s24 = smov (%p48_p0, %s46_s24), 0 }
  0x19   : > { %s3025_s3 = scalar_select %p2573_p2, 1, 0 }
  0x1a   : > { %3026 = sst [smem:[#allocation20_spill]] %s3066_s24  ;;  %p2583_p4 = por %p2573_p2, %p94_p1 }
  0x1b   : > { %p482_p5 = scmp.eq.s32.totalorder %s1903_s2, 1  ;;  %s78_s27 = ssub.s32 %s2420_s1, %s3066_s24 }
  0x1c   : > { %s3027_s26 = scalar_select %p2583_p4, 1, 0 }
  0x1d   : > { %p488_p6 = scmp.eq.s32.totalorder %s1904_s23, 1  ;;  %p79_p7 = scmp.eq.s32.totalorder %s78_s27, 0 }
  0x1e   : > { %p2589_p8 = por %p482_p5, %p481_p3  ;;  %p1905_p10 = scmp.ge.s32.totalorder %s2424_s22, 1 }
  0x1f   : > { %p2593_p9 = por %p488_p6, %p94_p1  ;;  %p495_p11 = scmp.lt.s32.totalorder %s2424_s22, 3 }
  0x20   : > { %s3028_s28 = scalar_select %p2589_p8, 1, 0 }
  0x21   : > { %s3030_s29 = scalar_select %p2593_p9, 1, 0 }
  0x22   : > { %3029 = sst [smem:[#allocation21_spill]] %s3028_s28  ;;  %s1906_s19 = sshll.u32 %s2416_s21, 6 }
  0x23   : > { %3031 = sst [smem:[#allocation22_spill]] %s3030_s29  ;;  %p2608_p12 = pnand %p1905_p10, %p495_p11 }
  0x24   : > { %s2599_s0 = scalar_select %p79_p7, %s2412_s20, %s81_s25  }
  0x25   : > { %s3033_s24 = sld [smem:[#allocation26_spill]]  ;;  %s2426_s27 = smov [#allocation7]  }
  0x26   : > { %3032 = sst [smem:[#allocation23_spill]] %s2599_s0  ;;  %s523_s17 = sshll.u32 %s2426_s27, 4  ;;  %s2612_s17 = int_to_ptr.vmem [resolvable:$true] %s523_s17 }
  0x27   : > { %s3034_s23 = scalar_select %p2608_p12, 1, 0 }
  0x28   : > { %p2141_p13 = pneg %p2608_p12  ;;  %s3035_s20 = sld [smem:[#allocation25_spill]] }
  0x29   : > { %s2427_s22 = smov [#allocation4]   ;;  %s2428_s30 = smov [#allocation9]  }
  0x2a   : > { %p2623_p0 = pnand %p2141_p13, %p2583_p4  ;;  %p2629_p1 = pnand %p2141_p13, %p2573_p2 }
  0x2b   : > { %s2606_s1 = scalar_lea.hbm %s3033_s24, %s1906_s19  ;;  %s510_s28 = sshll.u32 %s2427_s22, 4  ;;  %s511_s28 = int_to_ptr.vmem [resolvable:$true] %s510_s28 }
  0x2c   : > { %s3038_s27 = scalar_select %p2629_p1, 1, 0 }
  0x2d   : > { %s563_s16 = sshll.u32 %s2428_s30, 4  ;;  %s2254_s14 = scalar_lea.hbm %s2606_s1, 64  ;;  %s2658_s16 = int_to_ptr.vmem [resolvable:$true] %s563_s16 }
  0x2e   : > { %s3036_s29 = smov %s3035_s20  ;;  %s2619_s18 = scalar_lea.hbm %s3035_s20, %s1906_s19 }
  0x2f   : > { %p2255_p3 = scmp.ne.s32.totalorder %s2606_s1, %s2254_s14  ;;  %p2256_p5 = pneg %p2623_p0 }
  0x30   : > { %s2259_s20 = scalar_lea.hbm %s3033_s24, 128  ;;  %p2260_p10 = scmp.lt.s32.totalorder %s2606_s1, %s3033_s24 }
  0x31   : > { %p2257_p6 = pnand %p2256_p5, %p2255_p3  ;;  %p2261_p11 = scmp.lt.s32.totalorder %s2259_s20, %s2254_s14 }
  0x33   : > { %p2258_p7 = pneg %p2257_p6  ;;  %p2262_p13 = por %p2261_p11, %p2260_p10 }
  0x35   : > { %p2263_p9 = pnand %p2262_p13, %p2258_p7 }
  0x37   : > { %2266 = shalt.err (!%p2263_p9)
}
  0x38   : > { %s2267_s30 = scalar_lea.vmem %s2612_s17, 64  ;;  %p2275_p2 = scmp.lt.s32.totalorder %s2612_s17, %s2612_s17 }
  0x39   : > { %p2268_p8 = scmp.ne.s32.totalorder %s2612_s17, %s2267_s30  ;;  %p2276_p4 = scmp.lt.s32.totalorder %s2267_s30, %s2267_s30 }
  0x3b   : > { %p2270_p3 = pnand %p2268_p8, %p2256_p5  ;;  %p2277_p12 = por %p2276_p4, %p2275_p2 }
  0x3d   : > { %p2271_p6 = pneg %p2270_p3 }
  0x3f   : > { %p2278_p1 = pnand %p2277_p12, %p2271_p6 }
  0x41   : > { %2281 = shalt.err (!%p2278_p1)
}
  0x42   : > { %2147 = dma.hbm_to_vmem [thread:$0]  (!%p2623_p0), %s2606_s1, 64, %s2612_s17, [#allocation8]  }
  0x43   : > { %s2282_s12 = scalar_lea.hbm %s2619_s18, 64  ;;  %s2287_s19 = scalar_lea.hbm %s3036_s29, 128 }
  0x44   : > { %p2283_p8 = scmp.ne.s32.totalorder %s2619_s18, %s2282_s12  ;;  %p2288_p4 = scmp.lt.s32.totalorder %s2619_s18, %s3036_s29 }
  0x45   : > { %p2289_p12 = scmp.lt.s32.totalorder %s2287_s19, %s2282_s12 }
  0x46   : > { %p2285_p9 = pnand %p2283_p8, %p2256_p5 }
  0x47   : > { %p2290_p1 = por %p2289_p12, %p2288_p4 }
  0x48   : > { %p2286_p2 = pneg %p2285_p9 }
  0x4a   : > { %p2291_p7 = pnand %p2290_p1, %p2286_p2 }
  0x4c   : > { %2294 = shalt.err (!%p2291_p7)
}
  0x4d   : > { %s2295_s17 = scalar_lea.vmem %s511_s28, 64  ;;  %p2303_p3 = scmp.lt.s32.totalorder %s511_s28, %s511_s28 }
  0x4e   : > { %p2296_p10 = scmp.ne.s32.totalorder %s511_s28, %s2295_s17  ;;  %p2304_p6 = scmp.lt.s32.totalorder %s2295_s17, %s2295_s17 }
  0x50   : > { %p2298_p11 = pnand %p2296_p10, %p2256_p5  ;;  %p2305_p8 = por %p2304_p6, %p2303_p3 }
  0x52   : > { %p2299_p13 = pneg %p2298_p11 }
  0x54   : > { %p2306_p9 = pnand %p2305_p8, %p2299_p13 }
  0x56   : > { %2309 = shalt.err (!%p2306_p9)
}
  0x57   : > { %2144 = dma.hbm_to_vmem [thread:$0]  (!%p2623_p0), %s2619_s18, 64, %s511_s28, [#allocation5]  }
  0x58   : > { %p3039_p2 = scmp.ne.s32.totalorder %s3038_s27, 0  ;;  %s2321_s1 = scalar_lea.vmem %s2658_s16, 256 }
  0x59   : > { %p2322_p12 = scmp.ne.s32.totalorder %s2658_s16, %s2321_s1  ;;  %p2329_p7 = scmp.lt.s32.totalorder %s2658_s16, %s2658_s16 }
  0x5a   : > { %p2312_p4 = pneg %p3039_p2  ;;  %p2330_p10 = scmp.lt.s32.totalorder %s2321_s1, %s2321_s1 }
  0x5c   : > { %p2324_p1 = pnand %p2322_p12, %p2312_p4  ;;  %p2331_p11 = por %p2330_p10, %p2329_p7 }
  0x5e   : > { %p2325_p5 = pneg %p2324_p1 }
  0x60   : > { %p2332_p13 = pnand %p2331_p11, %p2325_p5 }
  0x62   : > { %2335 = shalt.err (!%p2332_p13)
}
  0x63   : > { %s2429_s25 = smov 64   ;;  %s2430_s2 = smov 4  }
  0x64   : > { %2150 = dma.hbm_to_vmem [thread:$0]  (!%p3039_p2), %s2981_s13, 256, %s2658_s16, [#allocation8], %s2429_s25, %s2429_s25, %s2430_s2  }
  0x65   : > { %p3040_p0 = scmp.ne.s32.totalorder %s3034_s23, 0 }
  0x66   : > { %p3041_p3 = scmp.ne.s32.totalorder (!%p3040_p0), %s3027_s26, 0 }
  0x67   : > { %604 = sbr.rel (%p3040_p0) target bundleno = 3146 (0xc4a), region = 96 }
  0x6c   : > { %2387 = dma.done.wait (%p3041_p3), [#allocation5], 64  }
  0x6d   : > { %2389 = vsyncadd (%p3041_p3), [#allocation5], 4294967232 }
  0x6e   : > { %2391 = dma.done.wait (%p3041_p3), [#allocation8], 64  }
  0x6f   : > { %2393 = vsyncadd (%p3041_p3), [#allocation8], 4294967232  ;;  %p3042_p6 = scmp.ne.s32.totalorder %s3025_s3, 0 }
  0x71   : > { %2395 = dma.done.wait (%p3042_p6), [#allocation8], 256  }
  0x72   : > { %2397 = vsyncadd (%p3042_p6), [#allocation8], 4294967040  ;;  %v2431_v0 = vmov 0.0   ;;  %vm2432_vm0 = vmmov 0   ;;  %p670_p8 = scmp.lt.s32.totalorder %s2416_s21, 1  ;;  %v2216_v1 = vld [vmem:[%s2973_s5 + $0x8] sm:$0xff]  }
  0x73   : > { %2007 = vmatprep.subr.bf16.mxu1 %v2431_v0  ;;  %2011 = vmatprep.mubr.msk.bf16.mxu1 %vm2432_vm0, %v2431_v0  ;;  %v2217_v2 = vld [vmem:[%s2973_s5] sm:$0xff]   ;;  %v683_v3 = vld [vmem:[#allocation4] sm:$0xf]  ;;  %vm708_vm1 = vcmask 261120   ;;  %v684_v6 = vld [vmem:[#allocation7] sm:$0xf] }
  0x74   : > { %2037 = vmatprep.subr.bf16.mxu0 %v2431_v0  ;;  %2039 = vmatprep.mubr.msk.bf16.mxu0 %vm2432_vm0, %v2431_v0  ;;  %s671_s23 = scalar_select %p670_p8, %s2416_s21, 1  ;;  %v2218_v4 = vld [vmem:[%s2975_s7 + $0x8] sm:$0xff]   ;;  %v2219_v5 = vld [vmem:[%s2975_s7] sm:$0xff]   ;;  %vm753_vm2 = vcmask 257024   ;;  %vm895_vm3 = vcmask 64512   ;;  %vm955_vm4 = vcmask 1043456  }
  0x75   : > { %2008 = vmatpush3.bf16.msra.mxu1 %v2216_v1  ;;  %s3043_s17 = sld [smem:[#allocation27_spill]]  ;;  %v1914_v11 = vld [vmem:[%s2974_s6] ss:$0 sm:$0xff]  ;;  %s2434_s22 = smov 112  }
  0x76   : > { %2009 = vmatprep.subr.bf16.mxu1 %v2431_v0  ;;  %s1913_s14 = sshll.u32 %s671_s23, 3  ;;  %s3044_s2 = sld [smem:[#allocation24_spill]]  ;;  %v1918_v18 = vld [vmem:[%s2976_s8] ss:$0 sm:$0xff] }
  0x77   : > { %s3045_s4 = sld [smem:[#allocation28_spill]]  ;;  %s2435_s19 = smov 104   ;;  %v1002_v63 = vld [vmem:[%s2977_s9] sm:$0xf] }
  0x78   : > { %s3046_s3 = sld [smem:[#allocation29_spill]]  ;;  %s1959_s27 = sshll.u32 %s2416_s21, 7 }
  0x79   : > { %2010 = vmatpush3.bf16.msra.mxu1 %v2217_v2  ;;  %s3048_s1 = sld [smem:[#allocation31_spill]]  ;;  %s2436_s26 = smov [#allocation10]  }
  0x7a   : > { %2015 = vmatprep.subr.bf16.mxu1 %v2431_v0  ;;  %s3049_s25 = sld [smem:[#allocation16_spill]] }
  0x7b   : > { %v2220_v7 = vld [vmem:[%s3043_s17 + $0x8] sm:$0xff]   ;;  %v2221_v8 = vld [vmem:[%s3043_s17] sm:$0xff]   ;;  %s3050_s12 = sld [smem:[#allocation21_spill]] }
  0x7c   : > { %2012 = vmatmul.mubr.msk.bf16.vlgmr.msra.gmra.mxu1 %vm708_vm1, %v683_v3  ;;  %s676_s30 = scalar_lea.vmem %s3044_s2, %s1913_s14  ;;  %s2433_s14 = smov 120  }
  0x7d   : > { %2016 = vmatpush3.bf16.msra.mxu1 %v2218_v4  ;;  %2019 = vmatprep.mubr.msk.bf16.mxu1 %vm2432_vm0, %v2431_v0  ;;  %v2743_v9 = vld [vmem:[%s676_s30] sm:$0xff]  ;;  %v1172_v4 = vsel %vm955_vm4, %v1002_v63, 0  ;;  %s3052_s18 = sld [smem:[#allocation33_spill]] }
  0x7e   : > { %2017 = vmatprep.subr.bf16.mxu1 %v2431_v0  ;;  %v823_v10 = vpack.c.bf16 %v2743_v9, %v2743_v9  ;;  %v1922_v28 = vld [vmem:[%s3045_s4] ss:$0 sm:$0xff]  ;;  %s3053_s20 = sld [smem:[#allocation34_spill]] }
  0x80   : > { %s667_s2 = sand.u32 1, %s3049_s25  }
  0x81   : > { %2018 = vmatpush3.bf16.msra.mxu1 %v2219_v5  ;;  %v1121_v5 = vld [vmem:[%s2977_s9 + $0x4] sm:$0xf]  ;;  %s1912_s30 = sshll.u32 %s667_s2, 3  ;;  %s1783_s4 = scalar_lea.sflag [#allocation6], %s667_s2 }
  0x82   : > { %2023 = vmatprep.subr.bf16.mxu1 %v2431_v0  ;;  %p3055_p2 = scmp.ne.s32.totalorder %s3050_s12, 0 }
  0x84   : > { %2020 = vmatmul.mubr.msk.bf16.vlgmr.msra.gmra.mxu1 %vm708_vm1, %v684_v6  ;;  %v1126_v6 = vsel %vm955_vm4, %v1121_v5, 0  ;;  %s3054_s25 = smov %s3053_s20 }
  0x85   : > { %2024 = vmatpush3.bf16.msra.mxu1 %v2220_v7  ;;  %2027 = vmatprep.mubr.msk.bf16.mxu1 %vm2432_vm0, %v2431_v0 }
  0x86   : > { %2025 = vmatprep.subr.bf16.mxu1 %v2431_v0 }
  0x89   : > { %2026 = vmatpush3.bf16.msra.mxu1 %v2221_v8 }
  0x8a   : > { %2031 = vmatprep.subr.bf16.mxu1 %v2431_v0 }
  0x8c   : > { %2028 = vmatmul.mubr.msk.bf16.vlgmr.msra.gmra.mxu1 %vm708_vm1, %v823_v10 }
  0x8d   : > { %2033 = vmatprep.mubr.msk.bf16.mxu1 %vm2432_vm0, %v2431_v0 }
 0x13c   : > { %v746_v12 = vpop.f32.mrf.mxu1 }
 0x13d   : > { %v747_v13 = vadd.f32 %v1914_v11, %v746_v12 }
 0x13e   : > { %v2013_v14 = vpop.f32.mrf.mxu1 }
 0x13f   : > { %v752_v15 = vpack.c.bf16 %v747_v13, %v747_v13 }
 0x140   : > { %v749_v16 = vpop.f32.mrf.mxu1 }
 0x141   : > { %754 = vst.msk [vmem:[#allocation2] sm:$0xf] %vm753_vm2, %v752_v15 }
 0x142   : > { %v2014_v17 = vpop.f32.mrf.mxu1 }
 0x144   : > { %v815_v19 = vpop.f32.mrf.mxu1 }
 0x145   : > { %v816_v20 = vadd.f32 %v1918_v18, %v815_v19 }
 0x146   : > { %v2021_v21 = vpop.f32.mrf.mxu1 }
 0x147   : > { %v821_v22 = vpack.c.bf16 %v816_v20, %v816_v20 }
 0x148   : > { %v818_v23 = vpop.f32.mrf.mxu1  ;;  %v892_v24 = vld [vmem:[#allocation2] sm:$0xf] }
 0x149   : > { %822 = vst.msk [vmem:[#allocation3] sm:$0xf] %vm753_vm2, %v821_v22  ;;  %v900_v25 = vsel %vm895_vm3, %v892_v24, 0  ;;  %v2759_v26 = vcombine.low %v892_v24, %v892_v24 }
 0x14a   : > { %v2022_v27 = vpop.f32.mrf.mxu1  ;;  %2032 = vmatpush3.bf16.xpose.msra.mxu1 %v900_v25 }
 0x14b   : > { %1009 = vrot.lane.b32.xlu0 %v2759_v26, %s2433_s14  ;;  %2043 = vmatprep.subr.bf16.mxu1 %v2431_v0 }
 0x14c   : > { %v885_v29 = vpop.f32.mrf.mxu1 }
 0x14d   : > { %v886_v30 = vadd.f32 %v1922_v28, %v885_v29 }
 0x14e   : > { %v2029_v31 = vpop.f32.mrf.mxu1 }
 0x14f   : > { %v891_v32 = vmul.f32 0.35355338, %v886_v30 }
 0x150   : > { %v888_v33 = vpop.f32.mrf.mxu1  ;;  %v893_v34 = vld [vmem:[#allocation3] sm:$0xf] }
 0x151   : > { %v2766_v35 = vpack.c.bf16 %v891_v32, %v891_v32  ;;  %v957_v36 = vsel %vm955_vm4, %v893_v34, 0  ;;  %v2775_v38 = vcombine.low %v893_v34, %v893_v34 }
 0x152   : > { %v2030_v37 = vpop.f32.mrf.mxu1  ;;  %2038 = vmatpush3.bf16.msra.mxu0 %v957_v36 }
 0x153   : > { %1004 = vrot.lane.b32.xlu0 %v2766_v35, %s2433_s14  ;;  %2034 = vmatmul.mubr.msk.bf16.vlgmr.msra.gmra.mxu1 %vm895_vm3, %v2766_v35 }
 0x154   : > { %2045 = vmatprep.mubr.msk.bf16.mxu1 %vm2432_vm0, %v2431_v0  ;;  %2049 = vmatprep.subr.bf16.mxu0 %v2431_v0 }
 0x157   : > { %1070 = vrot.lane.b32.xlu0 %v2775_v38, %s2433_s14  ;;  %s669_s14 = scalar_lea.vmem [#allocation10], %s1912_s30 }
 0x15b   : > { %1216 = vrot.lane.b32.xlu0 %v2759_v26, %s2434_s22 }
 0x1bd   : > { %v1010_v39 = vpop.permute.xlu0 %1009 }
 0x1be   : > { %v1015_v40 = vsel %vm895_vm3, %v1010_v39, 0 }
 0x1bf   : > { %2044 = vmatpush3.bf16.xpose.msra.mxu1 %v1015_v40 }
 0x1c0   : > { %2055 = vmatprep.subr.bf16.mxu1 %v2431_v0 }
 0x1c5   : > { %v1005_v41 = vpop.permute.xlu0 %1004 }
 0x1c6   : > { %2046 = vmatmul.mubr.msk.bf16.vlgmr.msra.gmra.mxu1 %vm895_vm3, %v1005_v41 }
 0x1c7   : > { %2057 = vmatprep.mubr.msk.bf16.mxu1 %vm2432_vm0, %v2431_v0  ;;  %2056 = vmatpush3.bf16.msra.mxu1 %v1126_v6 }
 0x1c8   : > { %2067 = vmatprep.subr.bf16.mxu1 %v2431_v0 }
 0x1c9   : > { %v1071_v56 = vpop.permute.xlu0 %1070 }
 0x1ca   : > { %v1076_v59 = vsel %vm955_vm4, %v1071_v56, 0 }
 0x1cd   : > { %v1217_v7 = vpop.permute.xlu0 %1216 }
 0x1ce   : > { %v1222_v27 = vsel %vm895_vm3, %v1217_v7, 0 }
 0x213   : > { %v936_v42 = vpop.f32.mrf.mxu1 }
 0x214   : > { %v942_v43 = vsel %vm895_vm3, %v936_v42, -inf }
 0x215   : > { %943 = vmax.xlane.f32.xlu1 %v942_v43  ;;  %v2035_v44 = vpop.f32.mrf.mxu1 }
 0x217   : > { %v939_v45 = vpop.f32.mrf.mxu1 }
 0x219   : > { %v2036_v46 = vpop.f32.mrf.mxu1 }
 0x286   : > { %v1051_v47 = vpop.f32.mrf.mxu1 }
 0x287   : > { %v1057_v48 = vsel %vm895_vm3, %v1051_v47, -inf }
 0x288   : > { %1058 = vmax.xlane.f32.xlu1 %v1057_v48  ;;  %v2047_v49 = vpop.f32.mrf.mxu1 }
 0x28a   : > { %v1054_v50 = vpop.f32.mrf.mxu1 }
 0x28c   : > { %v2048_v51 = vpop.f32.mrf.mxu1 }
 0x29e   : > { %v944_v52 = vpop.xlane.xlu1 %943 }
 0x29f   : > { %v945_v53 = vsub.f32 %v936_v42, %v944_v52  ;;  %v1325_v52 = vld [vmem:[%s2977_s9 + $0x8] sm:$0xf] }
 0x2a1   : > { %v946_v54 = vmul.f32 1.442695, %v945_v53  ;;  %v1330_v53 = vsel %vm955_vm4, %v1325_v52, 0 }
 0x2a3   : > { %2234 = vpow2.f32 %v946_v54 }
 0x2b0   : > { %v2235_v55 = vpop.eup %2234 }
 0x2b1   : > { %v948_v57 = vsel %vm895_vm3, %v2235_v55, 0.0  ;;  %v951_v58 = vpack.c.bf16 %v2235_v55, %v2235_v55 }
 0x2b2   : > { %949 = vadd.xlane.f32.xlu0 %v948_v57 }
 0x2b3   : > { %2040 = vmatmul.mubr.msk.bf16.vlgmr.msra.gmra.mxu0 %vm895_vm3, %v951_v58 }
 0x2b4   : > { %2050 = vmatpush3.bf16.msra.mxu0 %v1076_v59  ;;  %2051 = vmatprep.mubr.msk.bf16.mxu0 %vm2432_vm0, %v2431_v0 }
 0x2b5   : > { %2061 = vmatprep.subr.bf16.mxu0 %v2431_v0 }
 0x2c8   : > { %1274 = vrot.lane.b32.xlu0 %v2775_v38, %s2434_s22 }
 0x2cc   : > { %1373 = vrot.lane.b32.xlu0 %v2766_v35, %s2435_s19 }
 0x311   : > { %v1059_v60 = vpop.xlane.xlu1 %1058 }
 0x312   : > { %v1060_v61 = vsub.f32 %v1051_v47, %v1059_v60 }
 0x314   : > { %v1061_v62 = vmul.f32 1.442695, %v1060_v61 }
 0x316   : > { %2236 = vpow2.f32 %v1061_v62 }
 0x323   : > { %v2237_v1 = vpop.eup %2236 }
 0x324   : > { %v1063_v2 = vsel %vm895_vm3, %v2237_v1, 0.0  ;;  %v1066_v3 = vpack.c.bf16 %v2237_v1, %v2237_v1 }
 0x325   : > { %1064 = vadd.xlane.f32.xlu1 %v1063_v2 }
 0x326   : > { %2052 = vmatmul.mubr.msk.bf16.vlgmr.msra.gmra.mxu0 %vm895_vm3, %v1066_v3 }
 0x327   : > { %2062 = vmatpush3.bf16.msra.mxu0 %v1172_v4  ;;  %2063 = vmatprep.mubr.msk.bf16.mxu0 %vm2432_vm0, %v2431_v0 }
 0x328   : > { %2073 = vmatprep.subr.bf16.mxu0 %v2431_v0 }
 0x336   : > { %1214 = vrot.lane.b32.xlu1 %v2766_v35, %s2434_s22  ;;  %s1797_s22 = sshll.u32 %s669_s14, 4  ;;  %s1798_s22 = int_to_ptr.vmem [resolvable:$true] %s1797_s22 }
 0x337   : > { %s2336_s16 = scalar_lea.vmem %s1798_s22, 128 }
 0x338   : > { %p2337_p9 = scmp.ne.s32.totalorder %s1798_s22, %s2336_s16 }
 0x33a   : > { %p2338_p4 = pnand %p2337_p9, %p3055_p2 }
 0x33b   : > { %v950_v8 = vpop.xlane.xlu0 %949 }
 0x33c   : > { %2238 = vrcp.f32 %v950_v8  ;;  %p2339_p12 = pneg %p2338_p4 }
 0x33f   : > { %v1275_v13 = vpop.permute.xlu0 %1274 }
 0x340   : > { %v1280_v17 = vsel %vm955_vm4, %v1275_v13, 0 }
 0x349   : > { %v2239_v10 = vpop.eup %2238 }
 0x373   : > { %v993_v11 = vpop.f32.mrf.mxu0 }
 0x374   : > { %v1000_v12 = vmul.f32 %v2239_v10, %v993_v11 }
 0x375   : > { %v2041_v14 = vpop.f32.mrf.mxu0 }
 0x376   : > { %v1001_v15 = vpack.c.bf16 %v1000_v12, %v1000_v12  ;;  %v1484_v12 = vld [vmem:[%s2977_s9 + $0xc] sm:$0xf] }
 0x377   : > { %v996_v16 = vpop.f32.mrf.mxu0  ;;  %v1489_v13 = vsel %vm955_vm4, %v1484_v12, 0 }
 0x378   : > { %2064 = vmatmul.mubr.msk.bf16.vlgmr.msra.gmra.mxu0 %vm895_vm3, %v1001_v15 }
 0x379   : > { %2074 = vmatpush3.bf16.msra.mxu0 %v1280_v17  ;;  %v2042_v18 = vpop.f32.mrf.mxu0  ;;  %2075 = vmatprep.mubr.msk.bf16.mxu0 %vm2432_vm0, %v2431_v0 }
 0x37a   : > { %2085 = vmatprep.subr.bf16.mxu0 %v2431_v0 }
 0x3ae   : > { %v1065_v19 = vpop.xlane.xlu1 %1064 }
 0x3af   : > { %2240 = vrcp.f32 %v1065_v19 }
 0x3b2   : > { %v1215_v29 = vpop.permute.xlu1 %1214 }
 0x3bc   : > { %v2241_v20 = vpop.eup %2240 }
 0x3e6   : > { %v1112_v21 = vpop.f32.mrf.mxu0 }
 0x3e7   : > { %v1119_v22 = vmul.f32 %v2241_v20, %v1112_v21 }
 0x3e8   : > { %v2053_v23 = vpop.f32.mrf.mxu0 }
 0x3e9   : > { %v1120_v24 = vpack.c.bf16 %v1119_v22, %v1119_v22 }
 0x3ea   : > { %v1115_v25 = vpop.f32.mrf.mxu0 }
 0x3eb   : > { %2058 = vmatmul.mubr.msk.bf16.vlgmr.msra.gmra.mxu1 %vm895_vm3, %v1120_v24 }
 0x3ec   : > { %2068 = vmatpush3.bf16.xpose.msra.mxu1 %v1222_v27  ;;  %v2054_v28 = vpop.f32.mrf.mxu0  ;;  %2069 = vmatprep.mubr.msk.bf16.mxu1 %vm2432_vm0, %v2431_v0 }
 0x3ed   : > { %2079 = vmatprep.subr.bf16.mxu1 %v2431_v0 }
 0x3f3   : > { %2070 = vmatmul.mubr.msk.bf16.vlgmr.msra.gmra.mxu1 %vm895_vm3, %v1215_v29 }
 0x3f4   : > { %2081 = vmatprep.mubr.msk.bf16.mxu1 %vm2432_vm0, %v2431_v0  ;;  %2080 = vmatpush3.bf16.msra.mxu1 %v1330_v53 }
 0x3f5   : > { %2091 = vmatprep.subr.bf16.mxu1 %v2431_v0 }
 0x438   : > { %v2826_v30 = vpop.f32.mrf.mxu0 }
 0x43a   : > { %v2065_v31 = vpop.f32.mrf.mxu0 }
 0x43c   : > { %v1211_v32 = vpop.f32.mrf.mxu0 }
 0x43e   : > { %v2066_v33 = vpop.f32.mrf.mxu0 }
 0x4ab   : > { %v2828_v34 = vpop.f32.mrf.mxu1 }
 0x4ac   : > { %v1209_v14 = vadd.f32 %v2826_v30, %v2828_v34  ;;  %v1940_v30 = vld [vmem:[%s2978_s10] ss:$0 sm:$0xff] }
 0x4ad   : > { %v2059_v35 = vpop.f32.mrf.mxu1 }
 0x4af   : > { %v1165_v36 = vpop.f32.mrf.mxu1 }
 0x4b1   : > { %v2060_v37 = vpop.f32.mrf.mxu1 }
 0x4b3   : > { %v1258_v39 = vpop.f32.mrf.mxu1 }
 0x4b4   : > { %v1264_v40 = vsel %vm895_vm3, %v1258_v39, -inf }
 0x4b5   : > { %1265 = vmax.xlane.f32.xlu1 %v1264_v40  ;;  %v2071_v41 = vpop.f32.mrf.mxu1 }
 0x4b7   : > { %v1261_v42 = vpop.f32.mrf.mxu1 }
 0x4b9   : > { %v2072_v43 = vpop.f32.mrf.mxu1 }
 0x4c6   : > { %1375 = vrot.lane.b32.xlu1 %v2759_v26, %s2435_s19  ;;  %v1374_v26 = vpop.permute.xlu0 %1373 }
 0x53e   : > { %v1266_v44 = vpop.xlane.xlu1 %1265 }
 0x53f   : > { %v1267_v45 = vsub.f32 %v1258_v39, %v1266_v44  ;;  %v2224_v44 = vld [vmem:[#allocation9 + $0x8] sm:$0xff]  }
 0x541   : > { %v1268_v46 = vmul.f32 1.442695, %v1267_v45  ;;  %v2225_v45 = vld [vmem:[#allocation9] sm:$0xff]  }
 0x542   : > { %v1376_v48 = vpop.permute.xlu1 %1375 }
 0x543   : > { %2242 = vpow2.f32 %v1268_v46  ;;  %v1381_v51 = vsel %vm895_vm3, %v1376_v48, 0  ;;  %v2227_v46 = vld [vmem:[%s2983_s15 + $0x30] sm:$0xff]   ;;  %v2229_v48 = vld [vmem:[%s2983_s15 + $0x20] sm:$0xff]  }
 0x550   : > { %v2243_v47 = vpop.eup %2242 }
 0x551   : > { %v1270_v49 = vsel %vm895_vm3, %v2243_v47, 0.0  ;;  %v1273_v50 = vpack.c.bf16 %v2243_v47, %v2243_v47  ;;  %v2228_v47 = vld [vmem:[%s2983_s15 + $0x28] sm:$0xff]  }
 0x552   : > { %1271 = vadd.xlane.f32.xlu0 %v1270_v49  ;;  %v2230_v49 = vld [vmem:[%s2983_s15 + $0x18] sm:$0xff]  }
 0x553   : > { %2076 = vmatmul.mubr.msk.bf16.vlgmr.msra.gmra.mxu0 %vm895_vm3, %v1273_v50  ;;  %v2231_v50 = vld [vmem:[%s2983_s15 + $0x10] sm:$0xff]  }
 0x554   : > { %2086 = vmatpush3.bf16.xpose.msra.mxu0 %v1381_v51  ;;  %2087 = vmatprep.mubr.msk.bf16.mxu0 %vm2432_vm0, %v2431_v0 }
 0x555   : > { %2097 = vmatprep.subr.bf16.mxu0 %v2431_v0 }
 0x55b   : > { %2088 = vmatmul.mubr.msk.bf16.vlgmr.msra.gmra.mxu0 %vm895_vm3, %v1374_v26 }
 0x55c   : > { %2099 = vmatprep.mubr.msk.bf16.mxu0 %vm2432_vm0, %v2431_v0  ;;  %2098 = vmatpush3.bf16.msra.mxu0 %v1489_v13 }
 0x55d   : > { %2111 = vmatprep.subr.bf16.mxu0 %v2431_v0 }
 0x568   : > { %1433 = vrot.lane.b32.xlu0 %v2775_v38, %s2435_s19  ;;  %s3047_s19 = sld [smem:[#allocation30_spill]] }
 0x5db   : > { %v1272_v54 = vpop.xlane.xlu0 %1271 }
 0x5dc   : > { %2244 = vrcp.f32 %v1272_v54  ;;  %v1941_v54 = vld [vmem:[%s2979_s11] ss:$0 sm:$0xff] }
 0x5df   : > { %v1434_v58 = vpop.permute.xlu0 %1433 }
 0x5e0   : > { %v1439_v38 = vsel %vm955_vm4, %v1434_v58, 0 }
 0x5e9   : > { %v2245_v55 = vpop.eup %2244 }
 0x613   : > { %v1316_v56 = vpop.f32.mrf.mxu0 }
 0x614   : > { %v1323_v57 = vmul.f32 %v2245_v55, %v1316_v56  ;;  %v1942_v56 = vld [vmem:[%s3046_s3] ss:$0 sm:$0xff]  ;;  %s3051_s3 = sld [smem:[#allocation32_spill]] }
 0x615   : > { %v2077_v59 = vpop.f32.mrf.mxu0 }
 0x616   : > { %v1324_v60 = vpack.c.bf16 %v1323_v57, %v1323_v57 }
 0x617   : > { %v1319_v61 = vpop.f32.mrf.mxu0 }
 0x618   : > { %2082 = vmatmul.mubr.msk.bf16.vlgmr.msra.gmra.mxu1 %vm895_vm3, %v1324_v60  ;;  %v2232_v60 = vld [vmem:[%s2983_s15 + $0x8] sm:$0xff]   ;;  %v2233_v61 = vld [vmem:[%s2983_s15] sm:$0xff]  }
 0x619   : > { %2092 = vmatpush3.bf16.msra.mxu1 %v1439_v38  ;;  %v2078_v62 = vpop.f32.mrf.mxu0  ;;  %2093 = vmatprep.mubr.msk.bf16.mxu1 %vm2432_vm0, %v2431_v0  ;;  %v1943_v38 = vld [vmem:[%s3047_s19] ss:$0 sm:$0xff] }
 0x61a   : > { %2103 = vmatprep.subr.bf16.mxu1 %v2431_v0 }
 0x61b   : > { %v1417_v63 = vpop.f32.mrf.mxu0 }
 0x61c   : > { %v1423_v1 = vsel %vm895_vm3, %v1417_v63, -inf }
 0x61d   : > { %1424 = vmax.xlane.f32.xlu1 %v1423_v1  ;;  %v2089_v2 = vpop.f32.mrf.mxu0 }
 0x61f   : > { %v1420_v3 = vpop.f32.mrf.mxu0 }
 0x621   : > { %v2090_v4 = vpop.f32.mrf.mxu0 }
 0x6a6   : > { %v1425_v5 = vpop.xlane.xlu1 %1424 }
 0x6a7   : > { %v1426_v6 = vsub.f32 %v1417_v63, %v1425_v5 }
 0x6a9   : > { %v1427_v7 = vmul.f32 1.442695, %v1426_v6 }
 0x6ab   : > { %2246 = vpow2.f32 %v1427_v7 }
 0x6b8   : > { %v2247_v8 = vpop.eup %2246 }
 0x6b9   : > { %v1429_v10 = vsel %vm895_vm3, %v2247_v8, 0.0  ;;  %v1432_v11 = vpack.c.bf16 %v2247_v8, %v2247_v8 }
 0x6ba   : > { %1430 = vadd.xlane.f32.xlu1 %v1429_v10 }
 0x6bb   : > { %2094 = vmatmul.mubr.msk.bf16.vlgmr.msra.gmra.mxu1 %vm895_vm3, %v1432_v11 }
 0x6bc   : > { %2107 = vmatprep.mubr.msk.bf16.mxu1 %vm2432_vm0, %v2431_v0  ;;  %2104 = vmatpush3.bf16.msra.mxu1 %v2224_v44 }
 0x6bd   : > { %2105 = vmatprep.subr.bf16.mxu1 %v2431_v0 }
 0x6c0   : > { %2106 = vmatpush3.bf16.msra.mxu1 %v2225_v45 }
 0x6d8   : > { %v1366_v15 = vpop.f32.mrf.mxu1 }
 0x6d9   : > { %v1372_v16 = vadd.f32 %v1366_v15, %v1209_v14 }
 0x6da   : > { %v2083_v17 = vpop.f32.mrf.mxu1 }
 0x6dc   : > { %v1369_v18 = vpop.f32.mrf.mxu1 }
 0x6de   : > { %v2084_v19 = vpop.f32.mrf.mxu1 }
 0x743   : > { %v1431_v20 = vpop.xlane.xlu1 %1430 }
 0x744   : > { %2248 = vrcp.f32 %v1431_v20 }
 0x751   : > { %v2249_v21 = vpop.eup %2248 }
 0x77b   : > { %v1475_v22 = vpop.f32.mrf.mxu1 }
 0x77c   : > { %v1482_v23 = vmul.f32 %v2249_v21, %v1475_v22 }
 0x77d   : > { %v2095_v24 = vpop.f32.mrf.mxu1 }
 0x77e   : > { %v1483_v25 = vpack.c.bf16 %v1482_v23, %v1482_v23  ;;  %v1956_v23 = vld [vmem:[%s3051_s3] ss:$0 sm:$0xff]  ;;  %s2340_s3 = sshll.u32 %s2436_s26, 4  ;;  %s2341_s3 = int_to_ptr.vmem [resolvable:$false] %s2340_s3 }
 0x77f   : > { %v1478_v27 = vpop.f32.mrf.mxu1  ;;  %s2342_s21 = scalar_lea.vmem %s2341_s3, 256  ;;  %p2343_p1 = scmp.lt.s32.totalorder %s1798_s22, %s2341_s3 }
 0x780   : > { %2100 = vmatmul.mubr.msk.bf16.vlgmr.msra.gmra.mxu0 %vm895_vm3, %v1483_v25  ;;  %v1957_v25 = vld [vmem:[%s3052_s18] ss:$0 sm:$0xff]  ;;  %p2344_p5 = scmp.lt.s32.totalorder %s2342_s21, %s2336_s16 }
 0x781   : > { %v2096_v28 = vpop.f32.mrf.mxu1  ;;  %2127 = vmatprep.mubr.msk.bf16.mxu0 %vm2432_vm0, %v2431_v0 }
 0x782   : > { %p2345_p7 = por %p2344_p5, %p2343_p1 }
 0x784   : > { %p2346_p10 = pnand %p2345_p7, %p2339_p12 }
 0x840   : > { %v1525_v29 = vpop.f32.mrf.mxu0 }
 0x841   : > { %v1531_v31 = vadd.f32 %v1525_v29, %v1372_v16 }
 0x842   : > { %v2101_v32 = vpop.f32.mrf.mxu0 }
 0x843   : > { %v1539_v33 = vadd.f32 %v1940_v30, %v1531_v31 }
 0x844   : > { %v1528_v34 = vpop.f32.mrf.mxu0 }
 0x845   : > { %v1540_v35 = vadd.f32 %v1539_v33, %v2743_v9  ;;  %v2226_v9 = vld [vmem:[%s2983_s15 + $0x38] sm:$0xff]  }
 0x846   : > { %v2102_v36 = vpop.f32.mrf.mxu0  ;;  %2112 = vmatpush3.bf16.msra.mxu0 %v2226_v9 }
 0x847   : > { %v1543_v37 = vsel %vm708_vm1, %v1540_v35, 0.0  ;;  %2113 = vmatprep.subr.bf16.mxu0 %v2431_v0 }
 0x848   : > { %1544 = vadd.xlane.f32.xlu1 %v1543_v37 }
 0x84a   : > { %2114 = vmatpush3.bf16.msra.mxu0 %v2227_v46 }
 0x84b   : > { %2115 = vmatprep.subr.bf16.mxu0 %v2431_v0 }
 0x84e   : > { %2116 = vmatpush3.bf16.msra.mxu0 %v2228_v47 }
 0x84f   : > { %2117 = vmatprep.subr.bf16.mxu0 %v2431_v0 }
 0x852   : > { %2118 = vmatpush3.bf16.msra.mxu0 %v2229_v48 }
 0x853   : > { %2119 = vmatprep.subr.bf16.mxu0 %v2431_v0 }
 0x856   : > { %2120 = vmatpush3.bf16.msra.mxu0 %v2230_v49 }
 0x857   : > { %2121 = vmatprep.subr.bf16.mxu0 %v2431_v0 }
 0x85a   : > { %2122 = vmatpush3.bf16.msra.mxu0 %v2231_v50 }
 0x85b   : > { %2123 = vmatprep.subr.bf16.mxu0 %v2431_v0 }
 0x85e   : > { %2124 = vmatpush3.bf16.msra.mxu0 %v2232_v60 }
 0x85f   : > { %2125 = vmatprep.subr.bf16.mxu0 %v2431_v0  ;;  %v1947_v0 = vld [vmem:[%s3048_s1] ss:$0 sm:$0xff]  ;;  %s1795_s1 = scalar_lea.hbm %s3053_s20, %s1959_s27 }
 0x862   : > { %2126 = vmatpush3.bf16.msra.mxu0 %v2233_v61 }
 0x8d1   : > { %v1545_v39 = vpop.xlane.xlu1 %1544 }
 0x8d2   : > { %v1547_v40 = vmul.f32 0.03125, %v1545_v39 }
 0x8d4   : > { %v1548_v41 = vsub.f32 %v1540_v35, %v1547_v40 }
 0x8d6   : > { %v1549_v42 = vmul.f32 %v1548_v41, %v1548_v41 }
 0x8d8   : > { %v1550_v43 = vsel %vm708_vm1, %v1549_v42, 0.0 }
 0x8d9   : > { %1551 = vadd.xlane.f32.xlu0 %v1550_v43 }
 0x962   : > { %v1552_v51 = vpop.xlane.xlu0 %1551 }
 0x963   : > { %v1553_v26 = vmul.f32 0.03125, %v1552_v51 }
 0x965   : > { %v1554_v52 = vadd.f32 1e-05, %v1553_v26 }
 0x967   : > { %2250 = vrsqrt.f32 %v1554_v52 }
 0x974   : > { %v2251_v53 = vpop.eup %2250 }
 0x975   : > { %v1556_v55 = vmul.f32 %v2251_v53, %v1548_v41 }
 0x977   : > { %v1563_v57 = vmul.f32 %v1941_v54, %v1556_v55 }
 0x979   : > { %v1570_v58 = vadd.f32 %v1942_v56, %v1563_v57 }
 0x97b   : > { %v1571_v59 = vpack.c.bf16 %v1570_v58, %v1570_v58 }
 0x97d   : > { %2108 = vmatmul.mubr.msk.bf16.vlgmr.msra.gmra.mxu1 %vm708_vm1, %v1571_v59 }
 0xa3d   : > { %v1632_v62 = vpop.f32.mrf.mxu1 }
 0xa3e   : > { %v1633_v63 = vadd.f32 %v1943_v38, %v1632_v62 }
 0xa3f   : > { %v2109_v1 = vpop.f32.mrf.mxu1 }
 0xa40   : > { %v1638_v2 = vmax.f32 %v1633_v63, 0.0 }
 0xa41   : > { %v1635_v3 = vpop.f32.mrf.mxu1 }
 0xa42   : > { %v1639_v4 = vpack.c.bf16 %v1638_v2, %v1638_v2 }
 0xa43   : > { %v2110_v5 = vpop.f32.mrf.mxu1 }
 0xa44   : > { %2128 = vmatmul.mubr.bf16.vlgmr.msra.gmra.mxu0 %v1639_v4 }
 0xb04   : > { %v1745_v6 = vpop.f32.mrf.mxu0 }
 0xb05   : > { %v1746_v7 = vadd.f32 %v1947_v0, %v1745_v6 }
 0xb06   : > { %v2129_v8 = vpop.f32.mrf.mxu0 }
 0xb07   : > { %v1751_v10 = vadd.f32 %v1746_v7, %v1570_v58 }
 0xb08   : > { %v1748_v11 = vpop.f32.mrf.mxu0 }
 0xb09   : > { %v1754_v12 = vsel %vm708_vm1, %v1751_v10, 0.0 }
 0xb0a   : > { %1755 = vadd.xlane.f32.xlu1 %v1754_v12  ;;  %v2130_v13 = vpop.f32.mrf.mxu0 }
 0xb93   : > { %v1756_v14 = vpop.xlane.xlu1 %1755 }
 0xb94   : > { %v1757_v15 = vmul.f32 0.03125, %v1756_v14 }
 0xb96   : > { %v1758_v16 = vsub.f32 %v1751_v10, %v1757_v15 }
 0xb98   : > { %v1759_v17 = vmul.f32 %v1758_v16, %v1758_v16 }
 0xb9a   : > { %v1760_v18 = vsel %vm708_vm1, %v1759_v17, 0.0 }
 0xb9b   : > { %1761 = vadd.xlane.f32.xlu1 %v1760_v18 }
 0xc24   : > { %v1762_v19 = vpop.xlane.xlu1 %1761 }
 0xc25   : > { %v1763_v20 = vmul.f32 0.03125, %v1762_v19 }
 0xc27   : > { %v1764_v21 = vadd.f32 1e-05, %v1763_v20 }
 0xc29   : > { %2252 = vrsqrt.f32 %v1764_v21 }
 0xc36   : > { %v2253_v22 = vpop.eup %2252 }
 0xc37   : > { %v1766_v24 = vmul.f32 %v2253_v22, %v1758_v16 }
 0xc39   : > { %v1773_v27 = vmul.f32 %v1956_v23, %v1766_v24 }
 0xc3b   : > { %v1780_v28 = vadd.f32 %v1957_v25, %v1773_v27 }
 0xc3d   : > { %1781 = vst.msk [vmem:[%s669_s14] sm:$0xff] %vm708_vm1, %v1780_v28 }
 0xc3e   : > { %2349 = shalt.err (!%p2346_p10)
}
 0xc3f   : > { %s2350_s30 = scalar_lea.hbm %s1795_s1, 128  ;;  %s2354_s23 = scalar_lea.hbm %s3054_s25, 256 }
 0xc40   : > { %p2351_p11 = scmp.ne.s32.totalorder %s1795_s1, %s2350_s30  ;;  %p2355_p3 = scmp.lt.s32.totalorder %s1795_s1, %s3054_s25 }
 0xc41   : > { %p2356_p6 = scmp.lt.s32.totalorder %s2354_s23, %s2350_s30 }
 0xc42   : > { %p2352_p13 = pnand %p2351_p11, %p3055_p2 }
 0xc43   : > { %p2357_p8 = por %p2356_p6, %p2355_p3 }
 0xc44   : > { %p2353_p0 = pneg %p2352_p13 }
 0xc46   : > { %p2358_p9 = pnand %p2357_p8, %p2353_p0 }
 0xc48   : > { %2361 = shalt.err (!%p2358_p9)
}
 0xc49   : > { %2139 = dma.vmem_to_hbm [thread:$0]  (%p3055_p2), %s1798_s22, 128, %s1795_s1, %s1783_s4  }
 0xc4a PF: > { %s3056_s14 = sld [smem:[#allocation19_spill]] }
 0xc4b   : > { %s3057_s19 = sld [smem:[#allocation15_spill]] }
 0xc4c   : > { %s3058_s0 = sld [smem:[#allocation22_spill]] }
 0xc50   : > { %p2157_p4 = scmp.ge.s32.totalorder %s3056_s14, 2 }
 0xc51   : > { %s1809_s20 = sand.u32 1, %s3057_s19  }
 0xc52   : > { %p3059_p12 = scmp.ne.s32.totalorder %s3058_s0, 0  ;;  %s1810_s16 = scalar_lea.sflag [#allocation6], %s1809_s20 }
 0xc54   : > { %p2152_p1 = pnand %p2157_p4, %p3059_p12 }
 0xc56   : > { %p2153_p5 = pneg %p2152_p1 }
 0xc58   : > { %2399 = dma.done.wait (%p2153_p5), %s1810_s16, 128  }
 0xc59   : > { %2401 = vsyncadd (%p2153_p5), %s1810_s16, 4294967168  ;;  %s34_s22 = sadd.s32 1, %s3056_s14   ;;  %s3060_s0 = sld [smem:[#allocation16_spill]] }
 0xc5a   : > { %p31_p7 = scmp.ge.s32.totalorder %s34_s22, 4   ;;  %s3061_s30 = sld [smem:[#allocation17_spill]] }
 0xc5b   : > { %s3062_s20 = sld [smem:[#allocation23_spill]] }
 0xc5c   : > { %s3063_s21 = sld [smem:[#allocation18_spill]]  ;;  %33 = sbr.rel (!%p31_p7) target bundleno = 18 (0x12), region = 150 }
 0xc5d   : > { %s3064_s1 = sld [smem:[#allocation20_spill]] }
 0xc61   :  { %1815 = vsyncpa [#allocation5], 1 }
 0xc62   :  { %1817 = vsyncpa [#allocation5 + $0x1], 1 }
 0xc63   :  { %1818 = vsyncpa [#allocation8], 1 }
 0xc64   :  { %1819 = vsyncpa [#allocation6], 1 }
 0xc65   :  { %1821 = vsyncpa [#allocation6 + $0x1], 1 }

// kernel: tpu_custom_call.1
= control target key start
LH: loop header
LB: loop body
LE: loop exit
PB: predicated region body
PF: predicated region fallthrough
CT: control target
= control target key end

     0   :  { %s3004_s0 = inlined_call_operand.vmem [shape: f32[2,8,32], index: 0, kind: input, shape index: {}]   ;;  %s3005_s1 = inlined_call_operand.hbm [shape: bf16[2,8,32], index: 1, kind: input, shape index: {}]   ;;  %s3006_s2 = inlined_call_operand.hbm [shape: bf16[2,8,32], index: 2, kind: input, shape index: {}]   ;;  %s3007_s3 = inlined_call_operand.vmem [shape: bf16[32,32], index: 3, kind: input, shape index: {}]   ;;  %s3008_s4 = inlined_call_operand.vmem [shape: f32[1,32], index: 4, kind: input, shape index: {}]   ;;  %s3009_s5 = inlined_call_operand.vmem [shape: bf16[32,32], index: 5, kind: input, shape index: {}]   ;;  %s3010_s6 = inlined_call_operand.vmem [shape: f32[1,32], index: 6, kind: input, shape index: {}]   ;;  %s3011_s7 = inlined_call_operand.vmem [shape: bf16[32,32], index: 7, kind: input, shape index: {}]   ;;  %s3012_s8 = inlined_call_operand.vmem [shape: f32[1,32], index: 8, kind: input, shape index: {}]   ;;  %s3013_s9 = inlined_call_operand.vmem [shape: bf16[32,32], index: 9, kind: input, shape index: {}]   ;;  %s3014_s10 = inlined_call_operand.vmem [shape: f32[1,32], index: 10, kind: input, shape index: {}]   ;;  %s3015_s11 = inlined_call_operand.vmem [shape: f32[1,32], index: 11, kind: input, shape index: {}]   ;;  %s3016_s12 = inlined_call_operand.vmem [shape: f32[1,32], index: 12, kind: input, shape index: {}]   ;;  %s3017_s13 = inlined_call_operand.hbm [shape: bf16[32,128], index: 13, kind: input, shape index: {}]   ;;  %s3018_s14 = inlined_call_operand.vmem [shape: f32[1,128], index: 14, kind: input, shape index: {}]   ;;  %s3019_s15 = inlined_call_operand.vmem [shape: bf16[128,32], index: 15, kind: input, shape index: {}]   ;;  %s3020_s16 = inlined_call_operand.vmem [shape: f32[1,32], index: 16, kind: input, shape index: {}]   ;;  %s3021_s17 = inlined_call_operand.vmem [shape: f32[1,32], index: 17, kind: input, shape index: {}]   ;;  %s3022_s18 = inlined_call_operand.vmem [shape: f32[1,32], index: 18, kind: input, shape index: {}]   ;;  %s3023_s19 = inlined_call_operand.hbm [shape: f32[2,8,32], index: 19, kind: output, shape index: {}]  }
   0x1   :  { %3033 = sst [smem:[#allocation21_spill]] %s3004_s0 }
   0x2   :  { %3034 = sst [smem:[#allocation22_spill]] %s3005_s1 }
   0x3   :  { %3035 = sst [smem:[#allocation23_spill]] %s3006_s2 }
   0x4   :  { %3036 = sst [smem:[#allocation24_spill]] %s3007_s3 }
   0x5   :  { %3037 = sst [smem:[#allocation25_spill]] %s3015_s11 }
   0x6   :  { %3038 = sst [smem:[#allocation26_spill]] %s3016_s12 }
   0x7   :  { %3039 = sst [smem:[#allocation27_spill]] %s3017_s13 }
   0x8   :  { %3040 = sst [smem:[#allocation28_spill]] %s3018_s14 }
   0x9   :  { %3041 = sst [smem:[#allocation29_spill]] %s3019_s15 }
   0xa   :  { %3042 = sst [smem:[#allocation30_spill]] %s3020_s16 }
   0xb   :  { %3043 = sst [smem:[#allocation31_spill]] %s3021_s17 }
   0xc   :  { %3044 = sst [smem:[#allocation32_spill]] %s3022_s18 }
   0xd   :  { %3045 = sst [smem:[#allocation33_spill]] %s3023_s19 }
   0xe   :  { %24 = vsyncpa [#allocation5], 0 }
   0xf   :  { %26 = vsyncpa [#allocation5 + $0x1], 0 }
  0x10   :  { %27 = vsyncpa [#allocation8], 0 }
  0x11   :  { %29 = vsyncpa [#allocation8 + $0x1], 0 }
  0x12   :  { %30 = vsyncpa [#allocation6], 0 }
  0x13   :  { %32 = vsyncpa [#allocation6 + $0x1], 0  ;;  %s2595_s0 = smov 0   ;;  %s2597_s30 = smov 0  }
  0x14   :  { %s2599_s20 = smov 0   ;;  %s2601_s21 = smov 0  }
  0x15   :  { %s2603_s1 = smov 0   ;;  %s2605_s22 = smov 0  }
  0x16 LB: > { %3046 = sst [smem:[#allocation15_spill]] %s2462_s0  ;;  %s2626_s2 = sadd.s32 4294967295, %s2482_s22   ;;  %s2482_s22 = sphi %s2605_s22, %s38_s22   ;;  %s2478_s1 = sphi %s2603_s1, %s3081_s1   ;;  %s2474_s21 = sphi %s2601_s21, %s3080_s21   ;;  %s2470_s20 = sphi %s2599_s20, %s3084_s20   ;;  %s2466_s30 = sphi %s2597_s30, %s3083_s30   ;;  %s2462_s0 = sphi %s2595_s0, %s3082_s0  }
  0x17   : > { %3047 = sst [smem:[#allocation16_spill]] %s2478_s1  ;;  %s1958_s23 = sadd.s32 4294967294, %s2482_s22  }
  0x18   : > { %p98_p0 = scmp.ne.s32.totalorder %s2466_s30, %s2462_s0  ;;  %p99_p1 = scmp.eq.s32.totalorder %s2626_s2, 0 }
  0x19   : > { %p492_p3 = scmp.eq.s32.totalorder %s1958_s23, 1  ;;  %p1959_p5 = scmp.ge.s32.totalorder %s2482_s22, 1 }
  0x1a   : > { %p2635_p4 = por %p99_p1, %p98_p0  ;;  %p499_p7 = scmp.lt.s32.totalorder %s2482_s22, 3 }
  0x1b   : > { %p2640_p6 = por %p492_p3, %p98_p0  ;;  %s2484_s26 = smov [#allocation9]  }
  0x1c   : > { %p2645_p8 = pnand %p1959_p5, %p499_p7  ;;  %s541_s27 = sshll.u32 %s2484_s26, 4  ;;  %s542_s27 = int_to_ptr.vmem [resolvable:$true] %s541_s27 }
  0x1d   : > { %s3049_s25 = scalar_select %p2640_p6, 1, 0 }
  0x1e   : > { %p2199_p9 = pneg %p2645_p8  ;;  %s50_s29 = sadd.s32 1, %s2478_s1 }
  0x1f   : > { %3050 = sst [smem:[#allocation17_spill]] %s3049_s25  ;;  %s2323_s23 = scalar_lea.vmem %s542_s27, 256 }
  0x20   : > { %p2654_p11 = pnand %p2199_p9, %p99_p1  ;;  %p2324_p13 = scmp.ne.s32.totalorder %s542_s27, %s2323_s23 }
  0x21   : > { %p2331_p5 = scmp.lt.s32.totalorder %s542_s27, %s542_s27  ;;  %p2332_p7 = scmp.lt.s32.totalorder %s2323_s23, %s2323_s23 }
  0x22   : > { %p2314_p12 = pneg %p2654_p11 }
  0x23   : > { %p2333_p2 = por %p2332_p7, %p2331_p5 }
  0x24   : > { %p2326_p0 = pnand %p2324_p13, %p2314_p12 }
  0x26   : > { %p2327_p3 = pneg %p2326_p0 }
  0x28   : > { %p2334_p6 = pnand %p2333_p2, %p2327_p3 }
  0x2a   : > { %2337 = shalt.err (!%p2334_p6)
}
  0x2b   : > { %s2485_s26 = smov 64   ;;  %s2486_s25 = smov 4  }
  0x2c   : > { %s3053_s13 = sld [smem:[#allocation27_spill]]  ;;  %p52_p2 = scmp.ge.s32.totalorder %s50_s29, 2 }
  0x2d   : > { %s85_s23 = sadd.s32 1, %s2470_s20  ;;  %p92_p6 = scmp.ne.s32.totalorder %s2470_s20, %s2466_s30 }
  0x2e   : > { %p93_p9 = scmp.eq.s32.totalorder %s2482_s22, 0  ;;  %s3086_s29 = smov (%p52_p2, %s50_s29), 0 }
  0x2f   : > { %3054 = sst [smem:[#allocation18_spill]] %s3086_s29  ;;  %p3056_p13 = scmp.eq.s32.totalorder %s2626_s2, 1 }
  0x30   : > { %p2672_p12 = por %p93_p9, %p92_p6  ;;  %s82_s19 = ssub.s32 %s2478_s1, %s3086_s29 }
  0x31   : > { %p2678_p0 = por %p3056_p13, %p92_p6  ;;  %p83_p3 = scmp.eq.s32.totalorder %s82_s19, 0 }
  0x32   : > { %2202 = dma.hbm_to_vmem [thread:$0]  (!%p2654_p11), %s3053_s13, 256, %s542_s27, [#allocation8], %s2485_s26, %s2485_s26, %s2486_s25  }
  0x33   : > { %s3057_s28 = scalar_select %p2678_p0, 1, 0 }
  0x34   : > { %p2215_p11 = scmp.lt.s32.totalorder %s2482_s22, 2  ;;  %s580_s0 = sand.u32 1, %s2470_s20  }
  0x35   : > { %3058 = sst [smem:[#allocation19_spill]] %s3057_s28  ;;  %s1962_s25 = sshll.u32 %s580_s0, 2 }
  0x36   : > { %s2687_s27 = scalar_select %p83_p3, %s2470_s20, %s85_s23  }
  0x37   : > { %s1963_s26 = sshll.u32 %s2478_s1, 6  ;;  %s3060_s16 = sld [smem:[#allocation22_spill]] }
  0x38   : > { %3059 = sst [smem:[#allocation20_spill]] %s2687_s27  ;;  %s584_s12 = scalar_lea.vmem [#allocation4], %s1962_s25 }
  0x39   : > { %s591_s11 = sshll.u32 %s584_s12, 4  ;;  %p2695_p5 = pnand %p2215_p11, %p2672_p12  ;;  %s592_s11 = int_to_ptr.vmem [resolvable:$true] %s591_s11 }
  0x3a   : > { %s3062_s19 = sld [smem:[#allocation23_spill]]  ;;  %s598_s1 = sand.u32 1, %s2482_s22  }
  0x3b   : > { %s581_s27 = scalar_lea.sflag [#allocation5], %s580_s0  ;;  %p2340_p7 = pneg %p2695_p5 }
  0x3c   : > { %s2351_s13 = scalar_lea.vmem %s592_s11, 64  ;;  %s2487_s12 = smov [#allocation4]  }
  0x3d   : > { %s589_s14 = scalar_lea.hbm %s3060_s16, %s1963_s26  ;;  %p2352_p2 = scmp.ne.s32.totalorder %s592_s11, %s2351_s13 }
  0x3e   : > { %s2356_s16 = sshll.u32 %s2487_s12, 4  ;;  %s2357_s16 = int_to_ptr.vmem [resolvable:$false] %s2356_s16 }
  0x3f   : > { %p2354_p6 = pnand %p2352_p2, %p2340_p7  ;;  %s2358_s17 = scalar_lea.vmem %s2357_s16, 128 }
  0x40   : > { %s2702_s23 = scalar_lea.hbm %s3062_s19, %s1963_s26  ;;  %p2359_p12 = scmp.lt.s32.totalorder %s592_s11, %s2357_s16 }
  0x41   : > { %p2355_p9 = pneg %p2354_p6  ;;  %p2360_p13 = scmp.lt.s32.totalorder %s2358_s17, %s2351_s13 }
  0x43   : > { %p2361_p11 = por %p2360_p13, %p2359_p12 }
  0x45   : > { %p2362_p3 = pnand %p2361_p11, %p2355_p9 }
  0x47   : > { %2365 = shalt.err (!%p2362_p3)
}
  0x48   : > { %2206 = dma.hbm_to_vmem [thread:$0]  (!%p2695_p5), %s589_s14, 64, %s592_s11, %s581_s27  }
  0x49   : > { %s602_s18 = scalar_lea.vmem [#allocation7], %s1962_s25  ;;  %s599_s28 = scalar_lea.sflag [#allocation8], %s598_s1 }
  0x4a   : > { %s609_s29 = sshll.u32 %s602_s18, 4  ;;  %s2488_s26 = smov [#allocation7]   ;;  %s610_s29 = int_to_ptr.vmem [resolvable:$true] %s609_s29 }
  0x4b   : > { %s2379_s0 = scalar_lea.vmem %s610_s29, 64  ;;  %s2384_s19 = sshll.u32 %s2488_s26, 4  ;;  %s2385_s19 = int_to_ptr.vmem [resolvable:$false] %s2384_s19 }
  0x4c   : > { %p2380_p2 = scmp.ne.s32.totalorder %s610_s29, %s2379_s0  ;;  %s2386_s13 = scalar_lea.vmem %s2385_s19, 128 }
  0x4d   : > { %p2387_p9 = scmp.lt.s32.totalorder %s610_s29, %s2385_s19  ;;  %p2388_p12 = scmp.lt.s32.totalorder %s2386_s13, %s2379_s0 }
  0x4e   : > { %p2382_p6 = pnand %p2380_p2, %p2340_p7 }
  0x4f   : > { %p2389_p13 = por %p2388_p12, %p2387_p9 }
  0x50   : > { %p2383_p10 = pneg %p2382_p6 }
  0x52   : > { %p2390_p11 = pnand %p2389_p13, %p2383_p10 }
  0x54   : > { %2393 = shalt.err (!%p2390_p11)
}
  0x55   : > { %2209 = dma.hbm_to_vmem [thread:$0]  (!%p2695_p5), %s2702_s23, 64, %s610_s29, %s599_s28  }
  0x56   : > { %618 = sbr.rel (%p2645_p8) target bundleno = 3129 (0xc39), region = 96  ;;  %s2721_s11 = sand.u32 (!%p2645_p8), 1, %s2466_s30  }
  0x57   : > { %s1967_s14 = sshll.u32 (!%p2645_p8), %s2721_s11, 2  ;;  %s621_s1 = scalar_lea.sflag (!%p2645_p8), [#allocation5], %s2721_s11 }
  0x58   : > { %s624_s25 = scalar_lea.vmem (!%p2645_p8), [#allocation4], %s1967_s14 }
  0x5b   : > { %2445 = dma.done.wait (%p2635_p4), %s621_s1, 64  }
  0x5c   : > { %2447 = vsyncadd (%p2635_p4), %s621_s1, 4294967232  ;;  %s629_s15 = sand.u32 1, %s2626_s2   ;;  %s633_s3 = scalar_lea.vmem [#allocation7], %s1967_s14 }
  0x5d   : > { %s630_s27 = scalar_lea.sflag [#allocation8], %s629_s15 }
  0x5e   : > { %2449 = dma.done.wait (%p2635_p4), %s630_s27, 64  }
  0x5f   : > { %2451 = vsyncadd (%p2635_p4), %s630_s27, 4294967232 }
  0x60   : > { %2453 = dma.done.wait (%p99_p1), [#allocation8], 256  }
  0x61   : > { %2455 = vsyncadd (%p99_p1), [#allocation8], 4294967040  ;;  %v2489_v0 = vmov 0.0   ;;  %vm2490_vm0 = vmmov 0   ;;  %p704_p4 = scmp.lt.s32.totalorder %s2474_s21, 1  ;;  %v2274_v1 = vld [vmem:[%s3009_s5 + $0x8] sm:$0xff]  }
  0x62   : > { %2065 = vmatprep.subr.bf16.mxu1 %v2489_v0  ;;  %2069 = vmatprep.mubr.msk.bf16.mxu1 %vm2490_vm0, %v2489_v0  ;;  %v2275_v2 = vld [vmem:[%s3009_s5] sm:$0xff]   ;;  %v717_v3 = vld [vmem:[%s624_s25] sm:$0xf]  ;;  %vm742_vm1 = vcmask 261120   ;;  %v718_v6 = vld [vmem:[%s633_s3] sm:$0xf] }
  0x63   : > { %2095 = vmatprep.subr.bf16.mxu0 %v2489_v0  ;;  %2097 = vmatprep.mubr.msk.bf16.mxu0 %vm2490_vm0, %v2489_v0  ;;  %s705_s16 = scalar_select %p704_p4, %s2474_s21, 1  ;;  %v2276_v4 = vld [vmem:[%s3011_s7 + $0x8] sm:$0xff]   ;;  %v2277_v5 = vld [vmem:[%s3011_s7] sm:$0xff]   ;;  %vm787_vm2 = vcmask 257024   ;;  %vm929_vm3 = vcmask 64512   ;;  %vm989_vm4 = vcmask 1043456  }
  0x64   : > { %2066 = vmatpush3.bf16.msra.mxu1 %v2274_v1  ;;  %s3063_s13 = sld [smem:[#allocation24_spill]]  ;;  %v1972_v11 = vld [vmem:[%s3010_s6] ss:$0 sm:$0xff]  ;;  %s2491_s18 = smov 120  }
  0x65   : > { %2067 = vmatprep.subr.bf16.mxu1 %v2489_v0  ;;  %s1971_s29 = sshll.u32 %s705_s16, 3  ;;  %s3064_s25 = sld [smem:[#allocation21_spill]]  ;;  %v1976_v18 = vld [vmem:[%s3012_s8] ss:$0 sm:$0xff] }
  0x66   : > { %v1980_v28 = vld [vmem:[%s3008_s4] ss:$0 sm:$0xff]  ;;  %s2493_s28 = smov 104   ;;  %s3065_s12 = sld [smem:[#allocation29_spill]] }
  0x67   : > { %v1036_v63 = vld [vmem:[%s3013_s9] sm:$0xf]  ;;  %s3066_s27 = sld [smem:[#allocation25_spill]]  ;;  %s1970_s1 = sshll.u32 %s2721_s11, 3 }
  0x68   : > { %2068 = vmatpush3.bf16.msra.mxu1 %v2275_v2  ;;  %s3067_s23 = sld [smem:[#allocation26_spill]]  ;;  %s2017_s16 = sshll.u32 %s2474_s21, 7 }
  0x69   : > { %2073 = vmatprep.subr.bf16.mxu1 %v2489_v0  ;;  %s3068_s0 = sld [smem:[#allocation28_spill]]  ;;  %s703_s17 = scalar_lea.vmem [#allocation10], %s1970_s1 }
  0x6a   : > { %v2278_v7 = vld [vmem:[%s3063_s13 + $0x8] sm:$0xff]   ;;  %v2279_v8 = vld [vmem:[%s3063_s13] sm:$0xff]   ;;  %s3069_s14 = sld [smem:[#allocation30_spill]] }
  0x6b   : > { %2070 = vmatmul.mubr.msk.bf16.vlgmr.msra.gmra.mxu1 %vm742_vm1, %v717_v3  ;;  %s710_s15 = scalar_lea.vmem %s3064_s25, %s1971_s29  ;;  %s2492_s29 = smov 112  }
  0x6c   : > { %2074 = vmatpush3.bf16.msra.mxu1 %v2276_v4  ;;  %2077 = vmatprep.mubr.msk.bf16.mxu1 %vm2490_vm0, %v2489_v0  ;;  %v2777_v9 = vld [vmem:[%s710_s15] sm:$0xff]  ;;  %v1206_v4 = vsel %vm989_vm4, %v1036_v63, 0  ;;  %s3071_s24 = sld [smem:[#allocation31_spill]] }
  0x6d   : > { %2075 = vmatprep.subr.bf16.mxu1 %v2489_v0  ;;  %v857_v10 = vpack.c.bf16 %v2777_v9, %v2777_v9  ;;  %s3072_s2 = sld [smem:[#allocation32_spill]] }
  0x70   : > { %2076 = vmatpush3.bf16.msra.mxu1 %v2277_v5  ;;  %v1155_v5 = vld [vmem:[%s3013_s9 + $0x4] sm:$0xf] }
  0x71   : > { %2081 = vmatprep.subr.bf16.mxu1 %v2489_v0 }
  0x73   : > { %2078 = vmatmul.mubr.msk.bf16.vlgmr.msra.gmra.mxu1 %vm742_vm1, %v718_v6  ;;  %v1160_v6 = vsel %vm989_vm4, %v1155_v5, 0 }
  0x74   : > { %2082 = vmatpush3.bf16.msra.mxu1 %v2278_v7  ;;  %2085 = vmatprep.mubr.msk.bf16.mxu1 %vm2490_vm0, %v2489_v0 }
  0x75   : > { %2083 = vmatprep.subr.bf16.mxu1 %v2489_v0 }
  0x78   : > { %2084 = vmatpush3.bf16.msra.mxu1 %v2279_v8 }
  0x79   : > { %2089 = vmatprep.subr.bf16.mxu1 %v2489_v0 }
  0x7b   : > { %2086 = vmatmul.mubr.msk.bf16.vlgmr.msra.gmra.mxu1 %vm742_vm1, %v857_v10 }
  0x7c   : > { %2091 = vmatprep.mubr.msk.bf16.mxu1 %vm2490_vm0, %v2489_v0 }
 0x12b   : > { %v780_v12 = vpop.f32.mrf.mxu1 }
 0x12c   : > { %v781_v13 = vadd.f32 %v1972_v11, %v780_v12 }
 0x12d   : > { %v2071_v14 = vpop.f32.mrf.mxu1 }
 0x12e   : > { %v786_v15 = vpack.c.bf16 %v781_v13, %v781_v13 }
 0x12f   : > { %v783_v16 = vpop.f32.mrf.mxu1 }
 0x130   : > { %788 = vst.msk [vmem:[#allocation2] sm:$0xf] %vm787_vm2, %v786_v15 }
 0x131   : > { %v2072_v17 = vpop.f32.mrf.mxu1 }
 0x133   : > { %v849_v19 = vpop.f32.mrf.mxu1 }
 0x134   : > { %v850_v20 = vadd.f32 %v1976_v18, %v849_v19 }
 0x135   : > { %v2079_v21 = vpop.f32.mrf.mxu1 }
 0x136   : > { %v855_v22 = vpack.c.bf16 %v850_v20, %v850_v20 }
 0x137   : > { %v852_v23 = vpop.f32.mrf.mxu1  ;;  %v926_v24 = vld [vmem:[#allocation2] sm:$0xf] }
 0x138   : > { %856 = vst.msk [vmem:[#allocation3] sm:$0xf] %vm787_vm2, %v855_v22  ;;  %v934_v25 = vsel %vm929_vm3, %v926_v24, 0  ;;  %v2793_v26 = vcombine.low %v926_v24, %v926_v24 }
 0x139   : > { %v2080_v27 = vpop.f32.mrf.mxu1  ;;  %2090 = vmatpush3.bf16.xpose.msra.mxu1 %v934_v25 }
 0x13a   : > { %1043 = vrot.lane.b32.xlu0 %v2793_v26, %s2491_s18  ;;  %2101 = vmatprep.subr.bf16.mxu1 %v2489_v0 }
 0x13b   : > { %v919_v29 = vpop.f32.mrf.mxu1 }
 0x13c   : > { %v920_v30 = vadd.f32 %v1980_v28, %v919_v29 }
 0x13d   : > { %v2087_v31 = vpop.f32.mrf.mxu1 }
 0x13e   : > { %v925_v32 = vmul.f32 0.35355338, %v920_v30 }
 0x13f   : > { %v922_v33 = vpop.f32.mrf.mxu1  ;;  %v927_v34 = vld [vmem:[#allocation3] sm:$0xf] }
 0x140   : > { %v2800_v35 = vpack.c.bf16 %v925_v32, %v925_v32  ;;  %v991_v36 = vsel %vm989_vm4, %v927_v34, 0  ;;  %v2809_v38 = vcombine.low %v927_v34, %v927_v34 }
 0x141   : > { %v2088_v37 = vpop.f32.mrf.mxu1  ;;  %2096 = vmatpush3.bf16.msra.mxu0 %v991_v36 }
 0x142   : > { %1038 = vrot.lane.b32.xlu0 %v2800_v35, %s2491_s18  ;;  %2092 = vmatmul.mubr.msk.bf16.vlgmr.msra.gmra.mxu1 %vm929_vm3, %v2800_v35 }
 0x143   : > { %2103 = vmatprep.mubr.msk.bf16.mxu1 %vm2490_vm0, %v2489_v0  ;;  %2107 = vmatprep.subr.bf16.mxu0 %v2489_v0 }
 0x146   : > { %1104 = vrot.lane.b32.xlu0 %v2809_v38, %s2491_s18  ;;  %s1831_s18 = sshll.u32 %s703_s17, 4  ;;  %s1832_s18 = int_to_ptr.vmem [resolvable:$true] %s1831_s18 }
 0x147   : > { %s2394_s15 = scalar_lea.vmem %s1832_s18, 128 }
 0x148   : > { %p2395_p1 = scmp.ne.s32.totalorder %s1832_s18, %s2394_s15 }
 0x14a   : > { %1250 = vrot.lane.b32.xlu0 %v2793_v26, %s2492_s29  ;;  %p2396_p8 = pnand %p2395_p1, %p2678_p0 }
 0x14c   : > { %p2397_p10 = pneg %p2396_p8 }
 0x1ac   : > { %v1044_v39 = vpop.permute.xlu0 %1043 }
 0x1ad   : > { %v1049_v40 = vsel %vm929_vm3, %v1044_v39, 0 }
 0x1ae   : > { %2102 = vmatpush3.bf16.xpose.msra.mxu1 %v1049_v40 }
 0x1af   : > { %2113 = vmatprep.subr.bf16.mxu1 %v2489_v0 }
 0x1b4   : > { %v1039_v41 = vpop.permute.xlu0 %1038 }
 0x1b5   : > { %2104 = vmatmul.mubr.msk.bf16.vlgmr.msra.gmra.mxu1 %vm929_vm3, %v1039_v41 }
 0x1b6   : > { %2115 = vmatprep.mubr.msk.bf16.mxu1 %vm2490_vm0, %v2489_v0  ;;  %2114 = vmatpush3.bf16.msra.mxu1 %v1160_v6 }
 0x1b7   : > { %2125 = vmatprep.subr.bf16.mxu1 %v2489_v0 }
 0x1b8   : > { %v1105_v56 = vpop.permute.xlu0 %1104 }
 0x1b9   : > { %v1110_v59 = vsel %vm989_vm4, %v1105_v56, 0 }
 0x1bc   : > { %v1251_v7 = vpop.permute.xlu0 %1250 }
 0x1bd   : > { %v1256_v27 = vsel %vm929_vm3, %v1251_v7, 0 }
 0x202   : > { %v970_v42 = vpop.f32.mrf.mxu1 }
 0x203   : > { %v976_v43 = vsel %vm929_vm3, %v970_v42, -inf }
 0x204   : > { %977 = vmax.xlane.f32.xlu1 %v976_v43  ;;  %v2093_v44 = vpop.f32.mrf.mxu1 }
 0x206   : > { %v973_v45 = vpop.f32.mrf.mxu1 }
 0x208   : > { %v2094_v46 = vpop.f32.mrf.mxu1 }
 0x275   : > { %v1085_v47 = vpop.f32.mrf.mxu1 }
 0x276   : > { %v1091_v48 = vsel %vm929_vm3, %v1085_v47, -inf }
 0x277   : > { %1092 = vmax.xlane.f32.xlu1 %v1091_v48  ;;  %v2105_v49 = vpop.f32.mrf.mxu1 }
 0x279   : > { %v1088_v50 = vpop.f32.mrf.mxu1 }
 0x27b   : > { %v2106_v51 = vpop.f32.mrf.mxu1 }
 0x28d   : > { %v978_v52 = vpop.xlane.xlu1 %977 }
 0x28e   : > { %v979_v53 = vsub.f32 %v970_v42, %v978_v52  ;;  %v1359_v52 = vld [vmem:[%s3013_s9 + $0x8] sm:$0xf] }
 0x290   : > { %v980_v54 = vmul.f32 1.442695, %v979_v53  ;;  %v1364_v53 = vsel %vm989_vm4, %v1359_v52, 0 }
 0x292   : > { %2292 = vpow2.f32 %v980_v54 }
 0x29f   : > { %v2293_v55 = vpop.eup %2292 }
 0x2a0   : > { %v982_v57 = vsel %vm929_vm3, %v2293_v55, 0.0  ;;  %v985_v58 = vpack.c.bf16 %v2293_v55, %v2293_v55 }
 0x2a1   : > { %983 = vadd.xlane.f32.xlu0 %v982_v57 }
 0x2a2   : > { %2098 = vmatmul.mubr.msk.bf16.vlgmr.msra.gmra.mxu0 %vm929_vm3, %v985_v58 }
 0x2a3   : > { %2108 = vmatpush3.bf16.msra.mxu0 %v1110_v59  ;;  %2109 = vmatprep.mubr.msk.bf16.mxu0 %vm2490_vm0, %v2489_v0 }
 0x2a4   : > { %2119 = vmatprep.subr.bf16.mxu0 %v2489_v0 }
 0x2b7   : > { %1308 = vrot.lane.b32.xlu0 %v2809_v38, %s2492_s29 }
 0x2bb   : > { %1407 = vrot.lane.b32.xlu0 %v2800_v35, %s2493_s28 }
 0x300   : > { %v1093_v60 = vpop.xlane.xlu1 %1092 }
 0x301   : > { %v1094_v61 = vsub.f32 %v1085_v47, %v1093_v60 }
 0x303   : > { %v1095_v62 = vmul.f32 1.442695, %v1094_v61 }
 0x305   : > { %2294 = vpow2.f32 %v1095_v62 }
 0x312   : > { %v2295_v1 = vpop.eup %2294 }
 0x313   : > { %v1097_v2 = vsel %vm929_vm3, %v2295_v1, 0.0  ;;  %v1100_v3 = vpack.c.bf16 %v2295_v1, %v2295_v1 }
 0x314   : > { %1098 = vadd.xlane.f32.xlu1 %v1097_v2 }
 0x315   : > { %2110 = vmatmul.mubr.msk.bf16.vlgmr.msra.gmra.mxu0 %vm929_vm3, %v1100_v3 }
 0x316   : > { %2120 = vmatpush3.bf16.msra.mxu0 %v1206_v4  ;;  %2121 = vmatprep.mubr.msk.bf16.mxu0 %vm2490_vm0, %v2489_v0 }
 0x317   : > { %2131 = vmatprep.subr.bf16.mxu0 %v2489_v0 }
 0x325   : > { %1248 = vrot.lane.b32.xlu1 %v2800_v35, %s2492_s29 }
 0x32a   : > { %v984_v8 = vpop.xlane.xlu0 %983 }
 0x32b   : > { %2296 = vrcp.f32 %v984_v8 }
 0x32e   : > { %v1309_v13 = vpop.permute.xlu0 %1308 }
 0x32f   : > { %v1314_v17 = vsel %vm989_vm4, %v1309_v13, 0 }
 0x338   : > { %v2297_v10 = vpop.eup %2296 }
 0x362   : > { %v1027_v11 = vpop.f32.mrf.mxu0 }
 0x363   : > { %v1034_v12 = vmul.f32 %v2297_v10, %v1027_v11 }
 0x364   : > { %v2099_v14 = vpop.f32.mrf.mxu0 }
 0x365   : > { %v1035_v15 = vpack.c.bf16 %v1034_v12, %v1034_v12  ;;  %v1518_v12 = vld [vmem:[%s3013_s9 + $0xc] sm:$0xf] }
 0x366   : > { %v1030_v16 = vpop.f32.mrf.mxu0  ;;  %v1523_v13 = vsel %vm989_vm4, %v1518_v12, 0 }
 0x367   : > { %2122 = vmatmul.mubr.msk.bf16.vlgmr.msra.gmra.mxu0 %vm929_vm3, %v1035_v15 }
 0x368   : > { %2132 = vmatpush3.bf16.msra.mxu0 %v1314_v17  ;;  %v2100_v18 = vpop.f32.mrf.mxu0  ;;  %2133 = vmatprep.mubr.msk.bf16.mxu0 %vm2490_vm0, %v2489_v0 }
 0x369   : > { %2143 = vmatprep.subr.bf16.mxu0 %v2489_v0 }
 0x39d   : > { %v1099_v19 = vpop.xlane.xlu1 %1098 }
 0x39e   : > { %2298 = vrcp.f32 %v1099_v19 }
 0x3a1   : > { %v1249_v29 = vpop.permute.xlu1 %1248 }
 0x3ab   : > { %v2299_v20 = vpop.eup %2298 }
 0x3d5   : > { %v1146_v21 = vpop.f32.mrf.mxu0 }
 0x3d6   : > { %v1153_v22 = vmul.f32 %v2299_v20, %v1146_v21 }
 0x3d7   : > { %v2111_v23 = vpop.f32.mrf.mxu0 }
 0x3d8   : > { %v1154_v24 = vpack.c.bf16 %v1153_v22, %v1153_v22 }
 0x3d9   : > { %v1149_v25 = vpop.f32.mrf.mxu0 }
 0x3da   : > { %2116 = vmatmul.mubr.msk.bf16.vlgmr.msra.gmra.mxu1 %vm929_vm3, %v1154_v24 }
 0x3db   : > { %2126 = vmatpush3.bf16.xpose.msra.mxu1 %v1256_v27  ;;  %v2112_v28 = vpop.f32.mrf.mxu0  ;;  %2127 = vmatprep.mubr.msk.bf16.mxu1 %vm2490_vm0, %v2489_v0 }
 0x3dc   : > { %2137 = vmatprep.subr.bf16.mxu1 %v2489_v0 }
 0x3e2   : > { %2128 = vmatmul.mubr.msk.bf16.vlgmr.msra.gmra.mxu1 %vm929_vm3, %v1249_v29 }
 0x3e3   : > { %2139 = vmatprep.mubr.msk.bf16.mxu1 %vm2490_vm0, %v2489_v0  ;;  %2138 = vmatpush3.bf16.msra.mxu1 %v1364_v53 }
 0x3e4   : > { %2149 = vmatprep.subr.bf16.mxu1 %v2489_v0 }
 0x427   : > { %v2860_v30 = vpop.f32.mrf.mxu0 }
 0x429   : > { %v2123_v31 = vpop.f32.mrf.mxu0 }
 0x42b   : > { %v1245_v32 = vpop.f32.mrf.mxu0 }
 0x42d   : > { %v2124_v33 = vpop.f32.mrf.mxu0 }
 0x49a   : > { %v2862_v34 = vpop.f32.mrf.mxu1 }
 0x49b   : > { %v1243_v14 = vadd.f32 %v2860_v30, %v2862_v34  ;;  %v1998_v30 = vld [vmem:[%s3014_s10] ss:$0 sm:$0xff] }
 0x49c   : > { %v2117_v35 = vpop.f32.mrf.mxu1 }
 0x49e   : > { %v1199_v36 = vpop.f32.mrf.mxu1 }
 0x4a0   : > { %v2118_v37 = vpop.f32.mrf.mxu1 }
 0x4a2   : > { %v1292_v39 = vpop.f32.mrf.mxu1 }
 0x4a3   : > { %v1298_v40 = vsel %vm929_vm3, %v1292_v39, -inf }
 0x4a4   : > { %1299 = vmax.xlane.f32.xlu1 %v1298_v40  ;;  %v2129_v41 = vpop.f32.mrf.mxu1 }
 0x4a6   : > { %v1295_v42 = vpop.f32.mrf.mxu1 }
 0x4a8   : > { %v2130_v43 = vpop.f32.mrf.mxu1 }
 0x4b5   : > { %1409 = vrot.lane.b32.xlu1 %v2793_v26, %s2493_s28  ;;  %v1408_v26 = vpop.permute.xlu0 %1407 }
 0x52d   : > { %v1300_v44 = vpop.xlane.xlu1 %1299 }
 0x52e   : > { %v1301_v45 = vsub.f32 %v1292_v39, %v1300_v44  ;;  %v2282_v44 = vld [vmem:[#allocation9 + $0x8] sm:$0xff]  }
 0x530   : > { %v1302_v46 = vmul.f32 1.442695, %v1301_v45  ;;  %v2283_v45 = vld [vmem:[#allocation9] sm:$0xff]  }
 0x531   : > { %v1410_v48 = vpop.permute.xlu1 %1409 }
 0x532   : > { %2300 = vpow2.f32 %v1302_v46  ;;  %v1415_v51 = vsel %vm929_vm3, %v1410_v48, 0  ;;  %v2285_v46 = vld [vmem:[%s3065_s12 + $0x30] sm:$0xff]   ;;  %v2287_v48 = vld [vmem:[%s3065_s12 + $0x20] sm:$0xff]  }
 0x53f   : > { %v2301_v47 = vpop.eup %2300 }
 0x540   : > { %v1304_v49 = vsel %vm929_vm3, %v2301_v47, 0.0  ;;  %v1307_v50 = vpack.c.bf16 %v2301_v47, %v2301_v47  ;;  %v2286_v47 = vld [vmem:[%s3065_s12 + $0x28] sm:$0xff]  }
 0x541   : > { %1305 = vadd.xlane.f32.xlu0 %v1304_v49  ;;  %v2288_v49 = vld [vmem:[%s3065_s12 + $0x18] sm:$0xff]  }
 0x542   : > { %2134 = vmatmul.mubr.msk.bf16.vlgmr.msra.gmra.mxu0 %vm929_vm3, %v1307_v50  ;;  %v2289_v50 = vld [vmem:[%s3065_s12 + $0x10] sm:$0xff]  }
 0x543   : > { %2144 = vmatpush3.bf16.xpose.msra.mxu0 %v1415_v51  ;;  %2145 = vmatprep.mubr.msk.bf16.mxu0 %vm2490_vm0, %v2489_v0 }
 0x544   : > { %2155 = vmatprep.subr.bf16.mxu0 %v2489_v0 }
 0x54a   : > { %2146 = vmatmul.mubr.msk.bf16.vlgmr.msra.gmra.mxu0 %vm929_vm3, %v1408_v26 }
 0x54b   : > { %2157 = vmatprep.mubr.msk.bf16.mxu0 %vm2490_vm0, %v2489_v0  ;;  %2156 = vmatpush3.bf16.msra.mxu0 %v1523_v13 }
 0x54c   : > { %2169 = vmatprep.subr.bf16.mxu0 %v2489_v0 }
 0x557   : > { %1467 = vrot.lane.b32.xlu0 %v2809_v38, %s2493_s28 }
 0x5ca   : > { %v1306_v54 = vpop.xlane.xlu0 %1305 }
 0x5cb   : > { %2302 = vrcp.f32 %v1306_v54  ;;  %v1999_v54 = vld [vmem:[%s3066_s27] ss:$0 sm:$0xff]  ;;  %s2494_s27 = smov [#allocation10]  }
 0x5ce   : > { %v1468_v58 = vpop.permute.xlu0 %1467 }
 0x5cf   : > { %v1473_v38 = vsel %vm989_vm4, %v1468_v58, 0 }
 0x5d8   : > { %v2303_v55 = vpop.eup %2302 }
 0x602   : > { %v1350_v56 = vpop.f32.mrf.mxu0 }
 0x603   : > { %v1357_v57 = vmul.f32 %v2303_v55, %v1350_v56  ;;  %v2000_v56 = vld [vmem:[%s3067_s23] ss:$0 sm:$0xff] }
 0x604   : > { %v2135_v59 = vpop.f32.mrf.mxu0 }
 0x605   : > { %v1358_v60 = vpack.c.bf16 %v1357_v57, %v1357_v57 }
 0x606   : > { %v1353_v61 = vpop.f32.mrf.mxu0 }
 0x607   : > { %2140 = vmatmul.mubr.msk.bf16.vlgmr.msra.gmra.mxu1 %vm929_vm3, %v1358_v60  ;;  %v2290_v60 = vld [vmem:[%s3065_s12 + $0x8] sm:$0xff]   ;;  %v2291_v61 = vld [vmem:[%s3065_s12] sm:$0xff]  }
 0x608   : > { %2150 = vmatpush3.bf16.msra.mxu1 %v1473_v38  ;;  %v2136_v62 = vpop.f32.mrf.mxu0  ;;  %2151 = vmatprep.mubr.msk.bf16.mxu1 %vm2490_vm0, %v2489_v0  ;;  %v2001_v38 = vld [vmem:[%s3068_s0] ss:$0 sm:$0xff]  ;;  %s3073_s0 = sld [smem:[#allocation33_spill]] }
 0x609   : > { %2161 = vmatprep.subr.bf16.mxu1 %v2489_v0 }
 0x60a   : > { %v1451_v63 = vpop.f32.mrf.mxu0 }
 0x60b   : > { %v1457_v1 = vsel %vm929_vm3, %v1451_v63, -inf }
 0x60c   : > { %1458 = vmax.xlane.f32.xlu1 %v1457_v1  ;;  %v2147_v2 = vpop.f32.mrf.mxu0 }
 0x60e   : > { %v1454_v3 = vpop.f32.mrf.mxu0  ;;  %s3074_s26 = smov %s3073_s0  ;;  %s1829_s19 = scalar_lea.hbm %s3073_s0, %s2017_s16 }
 0x610   : > { %v2148_v4 = vpop.f32.mrf.mxu0 }
 0x695   : > { %v1459_v5 = vpop.xlane.xlu1 %1458 }
 0x696   : > { %v1460_v6 = vsub.f32 %v1451_v63, %v1459_v5 }
 0x698   : > { %v1461_v7 = vmul.f32 1.442695, %v1460_v6 }
 0x69a   : > { %2304 = vpow2.f32 %v1461_v7 }
 0x6a7   : > { %v2305_v8 = vpop.eup %2304 }
 0x6a8   : > { %v1463_v10 = vsel %vm929_vm3, %v2305_v8, 0.0  ;;  %v1466_v11 = vpack.c.bf16 %v2305_v8, %v2305_v8 }
 0x6a9   : > { %1464 = vadd.xlane.f32.xlu1 %v1463_v10 }
 0x6aa   : > { %2152 = vmatmul.mubr.msk.bf16.vlgmr.msra.gmra.mxu1 %vm929_vm3, %v1466_v11 }
 0x6ab   : > { %2165 = vmatprep.mubr.msk.bf16.mxu1 %vm2490_vm0, %v2489_v0  ;;  %2162 = vmatpush3.bf16.msra.mxu1 %v2282_v44 }
 0x6ac   : > { %2163 = vmatprep.subr.bf16.mxu1 %v2489_v0 }
 0x6af   : > { %2164 = vmatpush3.bf16.msra.mxu1 %v2283_v45 }
 0x6c7   : > { %v1400_v15 = vpop.f32.mrf.mxu1 }
 0x6c8   : > { %v1406_v16 = vadd.f32 %v1400_v15, %v1243_v14 }
 0x6c9   : > { %v2141_v17 = vpop.f32.mrf.mxu1 }
 0x6cb   : > { %v1403_v18 = vpop.f32.mrf.mxu1 }
 0x6cd   : > { %v2142_v19 = vpop.f32.mrf.mxu1 }
 0x732   : > { %v1465_v20 = vpop.xlane.xlu1 %1464 }
 0x733   : > { %2306 = vrcp.f32 %v1465_v20 }
 0x740   : > { %v2307_v21 = vpop.eup %2306 }
 0x76a   : > { %v1509_v22 = vpop.f32.mrf.mxu1 }
 0x76b   : > { %v1516_v23 = vmul.f32 %v2307_v21, %v1509_v22 }
 0x76c   : > { %v2153_v24 = vpop.f32.mrf.mxu1 }
 0x76d   : > { %v1517_v25 = vpack.c.bf16 %v1516_v23, %v1516_v23  ;;  %v2014_v23 = vld [vmem:[%s3071_s24] ss:$0 sm:$0xff]  ;;  %s2398_s24 = sshll.u32 %s2494_s27, 4  ;;  %s2399_s24 = int_to_ptr.vmem [resolvable:$false] %s2398_s24 }
 0x76e   : > { %v1512_v27 = vpop.f32.mrf.mxu1  ;;  %s2400_s21 = scalar_lea.vmem %s2399_s24, 256  ;;  %p2401_p5 = scmp.lt.s32.totalorder %s1832_s18, %s2399_s24 }
 0x76f   : > { %2158 = vmatmul.mubr.msk.bf16.vlgmr.msra.gmra.mxu0 %vm929_vm3, %v1517_v25  ;;  %v2015_v25 = vld [vmem:[%s3072_s2] ss:$0 sm:$0xff]  ;;  %p2402_p7 = scmp.lt.s32.totalorder %s2400_s21, %s2394_s15 }
 0x770   : > { %v2154_v28 = vpop.f32.mrf.mxu1  ;;  %2185 = vmatprep.mubr.msk.bf16.mxu0 %vm2490_vm0, %v2489_v0 }
 0x771   : > { %p2403_p3 = por %p2402_p7, %p2401_p5 }
 0x773   : > { %p2404_p2 = pnand %p2403_p3, %p2397_p10 }
 0x82f   : > { %v1559_v29 = vpop.f32.mrf.mxu0 }
 0x830   : > { %v1565_v31 = vadd.f32 %v1559_v29, %v1406_v16 }
 0x831   : > { %v2159_v32 = vpop.f32.mrf.mxu0 }
 0x832   : > { %v1573_v33 = vadd.f32 %v1998_v30, %v1565_v31 }
 0x833   : > { %v1562_v34 = vpop.f32.mrf.mxu0 }
 0x834   : > { %v1574_v35 = vadd.f32 %v1573_v33, %v2777_v9  ;;  %v2284_v9 = vld [vmem:[%s3065_s12 + $0x38] sm:$0xff]  }
 0x835   : > { %v2160_v36 = vpop.f32.mrf.mxu0  ;;  %2170 = vmatpush3.bf16.msra.mxu0 %v2284_v9 }
 0x836   : > { %v1577_v37 = vsel %vm742_vm1, %v1574_v35, 0.0  ;;  %2171 = vmatprep.subr.bf16.mxu0 %v2489_v0 }
 0x837   : > { %1578 = vadd.xlane.f32.xlu1 %v1577_v37 }
 0x839   : > { %2172 = vmatpush3.bf16.msra.mxu0 %v2285_v46 }
 0x83a   : > { %2173 = vmatprep.subr.bf16.mxu0 %v2489_v0 }
 0x83d   : > { %2174 = vmatpush3.bf16.msra.mxu0 %v2286_v47 }
 0x83e   : > { %2175 = vmatprep.subr.bf16.mxu0 %v2489_v0 }
 0x841   : > { %2176 = vmatpush3.bf16.msra.mxu0 %v2287_v48 }
 0x842   : > { %2177 = vmatprep.subr.bf16.mxu0 %v2489_v0 }
 0x845   : > { %2178 = vmatpush3.bf16.msra.mxu0 %v2288_v49 }
 0x846   : > { %2179 = vmatprep.subr.bf16.mxu0 %v2489_v0 }
 0x849   : > { %2180 = vmatpush3.bf16.msra.mxu0 %v2289_v50 }
 0x84a   : > { %2181 = vmatprep.subr.bf16.mxu0 %v2489_v0 }
 0x84d   : > { %2182 = vmatpush3.bf16.msra.mxu0 %v2290_v60 }
 0x84e   : > { %2183 = vmatprep.subr.bf16.mxu0 %v2489_v0  ;;  %v2005_v0 = vld [vmem:[%s3069_s14] ss:$0 sm:$0xff]  ;;  %s1817_s14 = scalar_lea.sflag [#allocation6], %s2721_s11 }
 0x851   : > { %2184 = vmatpush3.bf16.msra.mxu0 %v2291_v61 }
 0x8c0   : > { %v1579_v39 = vpop.xlane.xlu1 %1578 }
 0x8c1   : > { %v1581_v40 = vmul.f32 0.03125, %v1579_v39 }
 0x8c3   : > { %v1582_v41 = vsub.f32 %v1574_v35, %v1581_v40 }
 0x8c5   : > { %v1583_v42 = vmul.f32 %v1582_v41, %v1582_v41 }
 0x8c7   : > { %v1584_v43 = vsel %vm742_vm1, %v1583_v42, 0.0 }
 0x8c8   : > { %1585 = vadd.xlane.f32.xlu0 %v1584_v43 }
 0x951   : > { %v1586_v51 = vpop.xlane.xlu0 %1585 }
 0x952   : > { %v1587_v26 = vmul.f32 0.03125, %v1586_v51 }
 0x954   : > { %v1588_v52 = vadd.f32 1e-05, %v1587_v26 }
 0x956   : > { %2308 = vrsqrt.f32 %v1588_v52 }
 0x963   : > { %v2309_v53 = vpop.eup %2308 }
 0x964   : > { %v1590_v55 = vmul.f32 %v2309_v53, %v1582_v41 }
 0x966   : > { %v1597_v57 = vmul.f32 %v1999_v54, %v1590_v55 }
 0x968   : > { %v1604_v58 = vadd.f32 %v2000_v56, %v1597_v57 }
 0x96a   : > { %v1605_v59 = vpack.c.bf16 %v1604_v58, %v1604_v58 }
 0x96c   : > { %2166 = vmatmul.mubr.msk.bf16.vlgmr.msra.gmra.mxu1 %vm742_vm1, %v1605_v59 }
 0xa2c   : > { %v1666_v62 = vpop.f32.mrf.mxu1 }
 0xa2d   : > { %v1667_v63 = vadd.f32 %v2001_v38, %v1666_v62 }
 0xa2e   : > { %v2167_v1 = vpop.f32.mrf.mxu1 }
 0xa2f   : > { %v1672_v2 = vmax.f32 %v1667_v63, 0.0 }
 0xa30   : > { %v1669_v3 = vpop.f32.mrf.mxu1 }
 0xa31   : > { %v1673_v4 = vpack.c.bf16 %v1672_v2, %v1672_v2 }
 0xa32   : > { %v2168_v5 = vpop.f32.mrf.mxu1 }
 0xa33   : > { %2186 = vmatmul.mubr.bf16.vlgmr.msra.gmra.mxu0 %v1673_v4 }
 0xaf3   : > { %v1779_v6 = vpop.f32.mrf.mxu0 }
 0xaf4   : > { %v1780_v7 = vadd.f32 %v2005_v0, %v1779_v6 }
 0xaf5   : > { %v2187_v8 = vpop.f32.mrf.mxu0 }
 0xaf6   : > { %v1785_v10 = vadd.f32 %v1780_v7, %v1604_v58 }
 0xaf7   : > { %v1782_v11 = vpop.f32.mrf.mxu0 }
 0xaf8   : > { %v1788_v12 = vsel %vm742_vm1, %v1785_v10, 0.0 }
 0xaf9   : > { %1789 = vadd.xlane.f32.xlu1 %v1788_v12  ;;  %v2188_v13 = vpop.f32.mrf.mxu0 }
 0xb82   : > { %v1790_v14 = vpop.xlane.xlu1 %1789 }
 0xb83   : > { %v1791_v15 = vmul.f32 0.03125, %v1790_v14 }
 0xb85   : > { %v1792_v16 = vsub.f32 %v1785_v10, %v1791_v15 }
 0xb87   : > { %v1793_v17 = vmul.f32 %v1792_v16, %v1792_v16 }
 0xb89   : > { %v1794_v18 = vsel %vm742_vm1, %v1793_v17, 0.0 }
 0xb8a   : > { %1795 = vadd.xlane.f32.xlu1 %v1794_v18 }
 0xc13   : > { %v1796_v19 = vpop.xlane.xlu1 %1795 }
 0xc14   : > { %v1797_v20 = vmul.f32 0.03125, %v1796_v19 }
 0xc16   : > { %v1798_v21 = vadd.f32 1e-05, %v1797_v20 }
 0xc18   : > { %2310 = vrsqrt.f32 %v1798_v21 }
 0xc25   : > { %v2311_v22 = vpop.eup %2310 }
 0xc26   : > { %v1800_v24 = vmul.f32 %v2311_v22, %v1792_v16 }
 0xc28   : > { %v1807_v27 = vmul.f32 %v2014_v23, %v1800_v24 }
 0xc2a   : > { %v1814_v28 = vadd.f32 %v2015_v25, %v1807_v27 }
 0xc2c   : > { %1815 = vst.msk [vmem:[%s703_s17] sm:$0xff] %vm742_vm1, %v1814_v28 }
 0xc2d   : > { %2407 = shalt.err (!%p2404_p2)
}
 0xc2e   : > { %s2408_s1 = scalar_lea.hbm %s1829_s19, 128  ;;  %s2412_s23 = scalar_lea.hbm %s3074_s26, 256 }
 0xc2f   : > { %p2409_p6 = scmp.ne.s32.totalorder %s1829_s19, %s2408_s1  ;;  %p2413_p13 = scmp.lt.s32.totalorder %s1829_s19, %s3074_s26 }
 0xc30   : > { %p2414_p11 = scmp.lt.s32.totalorder %s2412_s23, %s2408_s1 }
 0xc31   : > { %p2410_p9 = pnand %p2409_p6, %p2678_p0 }
 0xc32   : > { %p2415_p4 = por %p2414_p11, %p2413_p13 }
 0xc33   : > { %p2411_p12 = pneg %p2410_p9 }
 0xc35   : > { %p2416_p1 = pnand %p2415_p4, %p2411_p12 }
 0xc37   : > { %2419 = shalt.err (!%p2416_p1)
}
 0xc38   : > { %2197 = dma.vmem_to_hbm [thread:$0]  (%p2678_p0), %s1832_s18, 128, %s1829_s19, %s1817_s14  }
 0xc39 PF: > { %s3075_s17 = sld [smem:[#allocation15_spill]]  ;;  %p3078_p10 = scmp.ge.s32.totalorder %s2482_s22, 2 }
 0xc3a   : > { %s3076_s29 = sld [smem:[#allocation17_spill]] }
 0xc3f   : > { %s1843_s28 = sand.u32 1, %s3075_s17  }
 0xc40   : > { %p3077_p8 = scmp.ne.s32.totalorder %s3076_s29, 0  ;;  %s1844_s0 = scalar_lea.sflag [#allocation6], %s1843_s28 }
 0xc42   : > { %p2211_p5 = pnand %p3078_p10, %p3077_p8 }
 0xc44   : > { %p2212_p7 = pneg %p2211_p5 }
 0xc46   : > { %2457 = dma.done.wait (%p2212_p7), %s1844_s0, 128  }
 0xc47   : > { %2459 = vsyncadd (%p2212_p7), %s1844_s0, 4294967168  ;;  %s38_s22 = sadd.s32 1, %s2482_s22   ;;  %s3079_s15 = sld [smem:[#allocation20_spill]] }
 0xc48   : > { %p35_p3 = scmp.ge.s32.totalorder %s38_s22, 4   ;;  %s3080_s21 = sld [smem:[#allocation16_spill]] }
 0xc49   : > { %s3081_s1 = sld [smem:[#allocation18_spill]]  ;;  %s3082_s0 = smov %s2466_s30 }
 0xc4a   : > { %s3083_s30 = smov %s2470_s20  ;;  %37 = sbr.rel (!%p35_p3) target bundleno = 22 (0x16), region = 165 }
 0xc4d   : > { %s3084_s20 = smov %s3079_s15 }
 0xc4f   :  { %1849 = vsyncpa [#allocation5], 1 }
 0xc50   :  { %1851 = vsyncpa [#allocation5 + $0x1], 1 }
 0xc51   :  { %1852 = vsyncpa [#allocation8], 1 }
 0xc52   :  { %1854 = vsyncpa [#allocation8 + $0x1], 1 }
 0xc53   :  { %1855 = vsyncpa [#allocation6], 1 }
 0xc54   :  { %1857 = vsyncpa [#allocation6 + $0x1], 1 }

</bundles_post_ra>
